<compile_context>
chip_gen: v5e
topology: v5e:2x2
jax: 0.10.0
libtpu: 0.0.40
codegen_flags: <defaults>
</compile_context>

<pallas_src>
import jax
import jax.numpy as jnp
from jax.experimental import pallas as pl
from jax.experimental.pallas import tpu as pltpu
import numpy as np

_INV_SQRT2 = 0.7071067811865476


def _erf_poly(x):
    # Abramowitz & Stegun 7.1.26, |error| <= 1.5e-7 (f32).
    a1, a2, a3, a4, a5 = (0.254829592, -0.284496736, 1.421413741,
                          -1.453152027, 1.061405429)
    p = 0.3275911
    ax = jnp.abs(x)
    t = 1.0 / (1.0 + p * ax)
    poly = ((((a5 * t + a4) * t + a3) * t + a2) * t + a1) * t
    y = 1.0 - poly * jnp.exp(-(ax * ax))
    return jnp.where(x < 0.0, -y, y)


def _gelu_exact(x):
    # nn.GELU() default is the exact erf-based GELU; computed in f32.
    return 0.5 * x * (1.0 + _erf_poly(x * _INV_SQRT2))


def mixer_kernel(x_ref,
                 tw1t_ref, tb1_ref, tw2t_ref, tb2_ref,
                 cw1_ref, cb1_ref, cw2_ref, cb2_ref,
                 o_ref):
    bblk, t, d = x_ref.shape
    x = x_ref[...].astype(jnp.float32)            # (bblk, T, D)  residual path
    x_bf = x.astype(jnp.bfloat16)                 # MXU operand

    tw1t = tw1t_ref[...]                          # (H, T)  bf16
    tw2t = tw2t_ref[...]                          # (T, H)  bf16
    tb1 = tb1_ref[...]                            # (H, 1)  f32
    tb2 = tb2_ref[...]                            # (T, 1)  f32

    # ---- token-mixing MLP (transposed formulation -> no x.T / y.T).
    # Static (fully unrolled) per-batch loop; each dot is a plain (M,K)x(K,N)
    # MXU matmul with N = D on the lanes.
    x1_rows = []
    for b in range(bblk):
        h = jnp.dot(tw1t, x_bf[b],
                    preferred_element_type=jnp.float32)        # (H, D)
        h = _gelu_exact(h + tb1)
        y = jnp.dot(tw2t, h.astype(jnp.bfloat16),
                    preferred_element_type=jnp.float32)        # (T, D)
        x1_rows.append(x[b] + y + tb2)                         # residual (T, D)
    x1 = jnp.concatenate(x1_rows, axis=0)                      # (bblk*T, D) f32

    # ---- channel-mixing MLP on the batch-flattened slab: M = bblk*T rows.
    h2 = jnp.dot(x1.astype(jnp.bfloat16), cw1_ref[...],
                 preferred_element_type=jnp.float32)           # (M, H)
    h2 = _gelu_exact(h2 + cb1_ref[...])
    z = jnp.dot(h2.astype(jnp.bfloat16), cw2_ref[...],
                preferred_element_type=jnp.float32)            # (M, D)
    out = x1 + z + cb2_ref[...]                                # residual (M, D)

    o_ref[...] = out.reshape(bblk, t, d).astype(o_ref.dtype)


def _largest_divisor_leq(n, cap):
    for cand in range(min(n, cap), 0, -1):
        if n % cand == 0:
            return cand
    return 1


def mlp_mixer_layer(x, params, *, block_b=None):
    """x: (B, T, D) float32. params: weights in (in, out) layout (PyTorch W.T)."""
    B, T, D = x.shape
    H = params["tw1"].shape[1]
    assert params["tw1"].shape == (T, H) and params["cw1"].shape == (D, H)

    if block_b is None:
        # Merge several batch elements per grid step so the channel-MLP matmul
        # sees M = block_b * T rows and the ~0.35us/step grid overhead is
        # amortized; remaining grid steps are "parallel" so megacore chips can
        # split them when B is large.
        block_b = _largest_divisor_leq(B, 8)
    grid = (B // block_b,)

    # Weight prep: token weights pre-transposed (kills in-kernel transposes);
    # matmul operands in bf16, biases as 2-D f32 columns/rows.
    wdt = jnp.bfloat16
    tw1t = jnp.asarray(params["tw1"], jnp.float32).T.astype(wdt)   # (H, T)
    tw2t = jnp.asarray(params["tw2"], jnp.float32).T.astype(wdt)   # (T, H)
    cw1 = jnp.asarray(params["cw1"], jnp.float32).astype(wdt)      # (D, H)
    cw2 = jnp.asarray(params["cw2"], jnp.float32).astype(wdt)      # (H, D)
    tb1 = jnp.asarray(params["tb1"], jnp.float32).reshape(H, 1)
    tb2 = jnp.asarray(params["tb2"], jnp.float32).reshape(T, 1)
    cb1 = jnp.asarray(params["cb1"], jnp.float32).reshape(1, H)
    cb2 = jnp.asarray(params["cb2"], jnp.float32).reshape(1, D)

    # Whole-array VMEM-resident specs: weights are placed in VMEM once, not
    # double-buffered per grid step.
    resident = pl.BlockSpec(memory_space=pltpu.MemorySpace.VMEM)

    # VMEM budget from the actual footprint (resident weights + double-buffered
    # x/out blocks + f32 intermediates) plus headroom, clamped to a value that
    # is safe on v5e / v6e / v7x.
    # TODO(synk): at production Mixer widths on v7x (64 MiB VMEM) the channel
    # MLP should additionally be tiled over H/D with a VMEM accumulator.
    weight_bytes = sum(int(np.prod(a.shape)) * a.dtype.itemsize
                       for a in (tw1t, tw2t, cw1, cw2, tb1, tb2, cb1, cb2))
    io_bytes = 2 * 2 * block_b * T * D * x.dtype.itemsize
    inter_bytes = 4 * 4 * block_b * T * max(H, D)
    vmem_limit = int(min(max(weight_bytes + io_bytes + inter_bytes + (8 << 20),
                             16 << 20), 32 << 20))

    return pl.pallas_call(
        mixer_kernel,
        out_shape=jax.ShapeDtypeStruct((B, T, D), x.dtype),
        grid=grid,
        in_specs=[
            pl.BlockSpec((block_b, T, D), lambda b: (b, 0, 0)),   # x slab
            resident, resident, resident, resident,               # token MLP
            resident, resident, resident, resident,               # channel MLP
        ],
        out_specs=pl.BlockSpec((block_b, T, D), lambda b: (b, 0, 0)),
        compiler_params=pltpu.CompilerParams(
            dimension_semantics=("parallel",),
            vmem_limit_bytes=vmem_limit),
    )(x, tw1t, tb1, tw2t, tb2, cw1, cb1, cw2, cb2)


def reference(x, p):
    """Pure-JAX f32 reference mirroring the PyTorch forward (exact erf GELU)."""
    def gelu(v):
        return 0.5 * v * (1.0 + jax.lax.erf(v * _INV_SQRT2))
    xt = jnp.transpose(x, (0, 2, 1))                        # (B, D, T)
    y = gelu(xt @ p["tw1"] + p["tb1"]) @ p["tw2"] + p["tb2"]
    x1 = x + jnp.transpose(y, (0, 2, 1))
    z = gelu(x1 @ p["cw1"] + p["cb1"]) @ p["cw2"] + p["cb2"]
    return x1 + z


if __name__ == "__main__":
    # Small but lane-dense shapes: num_tokens=8, dim=128, hidden_dim=256.
    B, T, D, H = 2, 8, 128, 256

    key = jax.random.PRNGKey(0)
    keys = jax.random.split(key, 9)
    scale = 0.05
    params = {
        "tw1": scale * jax.random.normal(keys[0], (T, H), jnp.float32),
        "tb1": scale * jax.random.normal(keys[1], (H,), jnp.float32),
        "tw2": scale * jax.random.normal(keys[2], (H, T), jnp.float32),
        "tb2": scale * jax.random.normal(keys[3], (T,), jnp.float32),
        "cw1": scale * jax.random.normal(keys[4], (D, H), jnp.float32),
        "cb1": scale * jax.random.normal(keys[5], (H,), jnp.float32),
        "cw2": scale * jax.random.normal(keys[6], (H, D), jnp.float32),
        "cb2": scale * jax.random.normal(keys[7], (D,), jnp.float32),
    }
    x = jax.random.normal(keys[8], (B, T, D), jnp.float32)

    out = jax.block_until_ready(mlp_mixer_layer(x, params))
    ref = jax.block_until_ready(reference(x, params))

    # Kernel uses bf16 MXU operands with f32 accumulation -> relaxed tolerance
    # vs the exact-f32 reference.
    np.testing.assert_allclose(np.asarray(out), np.asarray(ref),
                               rtol=3e-2, atol=3e-2)
    print("KERNEL_OK")
</pallas_src>

<mosaic_0001>
module attributes {stable_mosaic.version = 11 : i64} {
  func.func @mixer_kernel(%arg0: i32, %arg1: memref<2x8x128xf32, #tpu.memory_space<vmem>>, %arg2: memref<256x8xbf16, #tpu.memory_space<vmem>>, %arg3: memref<256x1xf32, #tpu.memory_space<vmem>>, %arg4: memref<8x256xbf16, #tpu.memory_space<vmem>>, %arg5: memref<8x1xf32, #tpu.memory_space<vmem>>, %arg6: memref<128x256xbf16, #tpu.memory_space<vmem>>, %arg7: memref<1x256xf32, #tpu.memory_space<vmem>>, %arg8: memref<256x128xbf16, #tpu.memory_space<vmem>>, %arg9: memref<1x128xf32, #tpu.memory_space<vmem>>, %arg10: memref<2x8x128xf32, #tpu.memory_space<vmem>>) attributes {dimension_semantics = [#tpu.dimension_semantics<parallel>], iteration_bounds = array<i64: 1>, scalar_prefetch = 0 : i64, scratch_operands = 0 : i64, tpu.core_type = #tpu.core_type<tc>, window_params = [{transform_indices = @transform_0, window_bounds = array<i64: 2, 8, 128>}, {pipeline_mode = #tpu.pipeline_mode<synchronous>, transform_indices = @transform_1, window_bounds = array<i64: 256, 8>}, {pipeline_mode = #tpu.pipeline_mode<synchronous>, transform_indices = @transform_2, window_bounds = array<i64: 256, 1>}, {pipeline_mode = #tpu.pipeline_mode<synchronous>, transform_indices = @transform_3, window_bounds = array<i64: 8, 256>}, {pipeline_mode = #tpu.pipeline_mode<synchronous>, transform_indices = @transform_4, window_bounds = array<i64: 8, 1>}, {pipeline_mode = #tpu.pipeline_mode<synchronous>, transform_indices = @transform_5, window_bounds = array<i64: 128, 256>}, {pipeline_mode = #tpu.pipeline_mode<synchronous>, transform_indices = @transform_6, window_bounds = array<i64: 1, 256>}, {pipeline_mode = #tpu.pipeline_mode<synchronous>, transform_indices = @transform_7, window_bounds = array<i64: 256, 128>}, {pipeline_mode = #tpu.pipeline_mode<synchronous>, transform_indices = @transform_8, window_bounds = array<i64: 1, 128>}, {transform_indices = @transform_9, window_bounds = array<i64: 2, 8, 128>}]} {
    %c0 = arith.constant 0 : index
    %c0_0 = arith.constant 0 : index
    %c0_1 = arith.constant 0 : index
    %0 = vector.load %arg1[%c0, %c0_0, %c0_1] : memref<2x8x128xf32, #tpu.memory_space<vmem>>, vector<2x8x128xf32>
    %1 = arith.truncf %0 : vector<2x8x128xf32> to vector<2x8x128xbf16>
    %c0_2 = arith.constant 0 : index
    %c0_3 = arith.constant 0 : index
    %2 = vector.load %arg2[%c0_2, %c0_3] : memref<256x8xbf16, #tpu.memory_space<vmem>>, vector<256x8xbf16>
    %c0_4 = arith.constant 0 : index
    %c0_5 = arith.constant 0 : index
    %3 = vector.load %arg4[%c0_4, %c0_5] : memref<8x256xbf16, #tpu.memory_space<vmem>>, vector<8x256xbf16>
    %c0_6 = arith.constant 0 : index
    %c0_7 = arith.constant 0 : index
    %4 = vector.load %arg3[%c0_6, %c0_7] : memref<256x1xf32, #tpu.memory_space<vmem>>, vector<256x1xf32>
    %c0_8 = arith.constant 0 : index
    %c0_9 = arith.constant 0 : index
    %5 = vector.load %arg5[%c0_8, %c0_9] : memref<8x1xf32, #tpu.memory_space<vmem>>, vector<8x1xf32>
    %6 = vector.extract_strided_slice %1 {offsets = [0, 0, 0], sizes = [1, 8, 128], strides = [1, 1, 1]} : vector<2x8x128xbf16> to vector<1x8x128xbf16>
    %7 = vector.shape_cast %6 : vector<1x8x128xbf16> to vector<8x128xbf16>
    %cst = arith.constant dense<0.000000e+00> : vector<256x128xf32>
    %8 = tpu.matmul %2, %7, %cst {dimension_numbers = #tpu.dot_dimension_numbers<[1], [0], [0], [1], [0, 0, 1, 1], [], []>} : vector<256x8xbf16>, vector<8x128xbf16>, vector<256x128xf32> -> vector<256x128xf32>
    %9 = vector.broadcast %4 : vector<256x1xf32> to vector<256x128xf32>
    %10 = arith.addf %8, %9 : vector<256x128xf32>
    %cst_10 = arith.constant 5.000000e-01 : f32
    %11 = vector.broadcast %cst_10 : f32 to vector<256x128xf32>
    %12 = arith.mulf %11, %10 : vector<256x128xf32>
    %cst_11 = arith.constant 0.707106769 : f32
    %13 = vector.broadcast %cst_11 : f32 to vector<256x128xf32>
    %14 = arith.mulf %10, %13 : vector<256x128xf32>
    %15 = math.absf %14 : vector<256x128xf32>
    %cst_12 = arith.constant 0.327591091 : f32
    %16 = vector.broadcast %cst_12 : f32 to vector<256x128xf32>
    %17 = arith.mulf %16, %15 : vector<256x128xf32>
    %cst_13 = arith.constant 1.000000e+00 : f32
    %18 = vector.broadcast %cst_13 : f32 to vector<256x128xf32>
    %19 = arith.addf %18, %17 : vector<256x128xf32>
    %cst_14 = arith.constant 1.000000e+00 : f32
    %20 = vector.broadcast %cst_14 : f32 to vector<256x128xf32>
    %21 = arith.divf %20, %19 : vector<256x128xf32>
    %cst_15 = arith.constant 1.06140542 : f32
    %22 = vector.broadcast %cst_15 : f32 to vector<256x128xf32>
    %23 = arith.mulf %22, %21 : vector<256x128xf32>
    %cst_16 = arith.constant -1.45315206 : f32
    %24 = vector.broadcast %cst_16 : f32 to vector<256x128xf32>
    %25 = arith.addf %23, %24 : vector<256x128xf32>
    %26 = arith.mulf %25, %21 : vector<256x128xf32>
    %cst_17 = arith.constant 1.42141378 : f32
    %27 = vector.broadcast %cst_17 : f32 to vector<256x128xf32>
    %28 = arith.addf %26, %27 : vector<256x128xf32>
    %29 = arith.mulf %28, %21 : vector<256x128xf32>
    %cst_18 = arith.constant -0.284496725 : f32
    %30 = vector.broadcast %cst_18 : f32 to vector<256x128xf32>
    %31 = arith.addf %29, %30 : vector<256x128xf32>
    %32 = arith.mulf %31, %21 : vector<256x128xf32>
    %cst_19 = arith.constant 0.254829586 : f32
    %33 = vector.broadcast %cst_19 : f32 to vector<256x128xf32>
    %34 = arith.addf %32, %33 : vector<256x128xf32>
    %35 = arith.mulf %34, %21 : vector<256x128xf32>
    %36 = arith.mulf %15, %15 : vector<256x128xf32>
    %cst_20 = arith.constant 0.000000e+00 : f32
    %37 = vector.broadcast %cst_20 : f32 to vector<256x128xf32>
    %38 = arith.subf %37, %36 : vector<256x128xf32>
    %39 = math.exp %38 : vector<256x128xf32>
    %40 = arith.mulf %35, %39 : vector<256x128xf32>
    %cst_21 = arith.constant 1.000000e+00 : f32
    %41 = vector.broadcast %cst_21 : f32 to vector<256x128xf32>
    %42 = arith.subf %41, %40 : vector<256x128xf32>
    %cst_22 = arith.constant 0.000000e+00 : f32
    %43 = vector.broadcast %cst_22 : f32 to vector<256x128xf32>
    %44 = arith.cmpf olt, %14, %43 : vector<256x128xf32>
    %cst_23 = arith.constant 0.000000e+00 : f32
    %45 = vector.broadcast %cst_23 : f32 to vector<256x128xf32>
    %46 = arith.subf %45, %42 : vector<256x128xf32>
    %47 = arith.select %44, %46, %42 : vector<256x128xi1>, vector<256x128xf32>
    %cst_24 = arith.constant 1.000000e+00 : f32
    %48 = vector.broadcast %cst_24 : f32 to vector<256x128xf32>
    %49 = arith.addf %48, %47 : vector<256x128xf32>
    %50 = arith.mulf %12, %49 : vector<256x128xf32>
    %51 = arith.truncf %50 : vector<256x128xf32> to vector<256x128xbf16>
    %cst_25 = arith.constant dense<0.000000e+00> : vector<8x128xf32>
    %52 = tpu.matmul %3, %51, %cst_25 {dimension_numbers = #tpu.dot_dimension_numbers<[1], [0], [0], [1], [0, 0, 1, 1], [], []>} : vector<8x256xbf16>, vector<256x128xbf16>, vector<8x128xf32> -> vector<8x128xf32>
    %53 = vector.extract_strided_slice %0 {offsets = [0, 0, 0], sizes = [1, 8, 128], strides = [1, 1, 1]} : vector<2x8x128xf32> to vector<1x8x128xf32>
    %54 = vector.shape_cast %53 : vector<1x8x128xf32> to vector<8x128xf32>
    %55 = arith.addf %54, %52 : vector<8x128xf32>
    %56 = vector.broadcast %5 : vector<8x1xf32> to vector<8x128xf32>
    %57 = arith.addf %55, %56 : vector<8x128xf32>
    %58 = vector.extract_strided_slice %1 {offsets = [1, 0, 0], sizes = [1, 8, 128], strides = [1, 1, 1]} : vector<2x8x128xbf16> to vector<1x8x128xbf16>
    %59 = vector.shape_cast %58 : vector<1x8x128xbf16> to vector<8x128xbf16>
    %cst_26 = arith.constant dense<0.000000e+00> : vector<256x128xf32>
    %60 = tpu.matmul %2, %59, %cst_26 {dimension_numbers = #tpu.dot_dimension_numbers<[1], [0], [0], [1], [0, 0, 1, 1], [], []>} : vector<256x8xbf16>, vector<8x128xbf16>, vector<256x128xf32> -> vector<256x128xf32>
    %61 = vector.broadcast %4 : vector<256x1xf32> to vector<256x128xf32>
    %62 = arith.addf %60, %61 : vector<256x128xf32>
    %cst_27 = arith.constant 5.000000e-01 : f32
    %63 = vector.broadcast %cst_27 : f32 to vector<256x128xf32>
    %64 = arith.mulf %63, %62 : vector<256x128xf32>
    %cst_28 = arith.constant 0.707106769 : f32
    %65 = vector.broadcast %cst_28 : f32 to vector<256x128xf32>
    %66 = arith.mulf %62, %65 : vector<256x128xf32>
    %67 = math.absf %66 : vector<256x128xf32>
    %cst_29 = arith.constant 0.327591091 : f32
    %68 = vector.broadcast %cst_29 : f32 to vector<256x128xf32>
    %69 = arith.mulf %68, %67 : vector<256x128xf32>
    %cst_30 = arith.constant 1.000000e+00 : f32
    %70 = vector.broadcast %cst_30 : f32 to vector<256x128xf32>
    %71 = arith.addf %70, %69 : vector<256x128xf32>
    %cst_31 = arith.constant 1.000000e+00 : f32
    %72 = vector.broadcast %cst_31 : f32 to vector<256x128xf32>
    %73 = arith.divf %72, %71 : vector<256x128xf32>
    %cst_32 = arith.constant 1.06140542 : f32
    %74 = vector.broadcast %cst_32 : f32 to vector<256x128xf32>
    %75 = arith.mulf %74, %73 : vector<256x128xf32>
    %cst_33 = arith.constant -1.45315206 : f32
    %76 = vector.broadcast %cst_33 : f32 to vector<256x128xf32>
    %77 = arith.addf %75, %76 : vector<256x128xf32>
    %78 = arith.mulf %77, %73 : vector<256x128xf32>
    %cst_34 = arith.constant 1.42141378 : f32
    %79 = vector.broadcast %cst_34 : f32 to vector<256x128xf32>
    %80 = arith.addf %78, %79 : vector<256x128xf32>
    %81 = arith.mulf %80, %73 : vector<256x128xf32>
    %cst_35 = arith.constant -0.284496725 : f32
    %82 = vector.broadcast %cst_35 : f32 to vector<256x128xf32>
    %83 = arith.addf %81, %82 : vector<256x128xf32>
    %84 = arith.mulf %83, %73 : vector<256x128xf32>
    %cst_36 = arith.constant 0.254829586 : f32
    %85 = vector.broadcast %cst_36 : f32 to vector<256x128xf32>
    %86 = arith.addf %84, %85 : vector<256x128xf32>
    %87 = arith.mulf %86, %73 : vector<256x128xf32>
    %88 = arith.mulf %67, %67 : vector<256x128xf32>
    %cst_37 = arith.constant 0.000000e+00 : f32
    %89 = vector.broadcast %cst_37 : f32 to vector<256x128xf32>
    %90 = arith.subf %89, %88 : vector<256x128xf32>
    %91 = math.exp %90 : vector<256x128xf32>
    %92 = arith.mulf %87, %91 : vector<256x128xf32>
    %cst_38 = arith.constant 1.000000e+00 : f32
    %93 = vector.broadcast %cst_38 : f32 to vector<256x128xf32>
    %94 = arith.subf %93, %92 : vector<256x128xf32>
    %cst_39 = arith.constant 0.000000e+00 : f32
    %95 = vector.broadcast %cst_39 : f32 to vector<256x128xf32>
    %96 = arith.cmpf olt, %66, %95 : vector<256x128xf32>
    %cst_40 = arith.constant 0.000000e+00 : f32
    %97 = vector.broadcast %cst_40 : f32 to vector<256x128xf32>
    %98 = arith.subf %97, %94 : vector<256x128xf32>
    %99 = arith.select %96, %98, %94 : vector<256x128xi1>, vector<256x128xf32>
    %cst_41 = arith.constant 1.000000e+00 : f32
    %100 = vector.broadcast %cst_41 : f32 to vector<256x128xf32>
    %101 = arith.addf %100, %99 : vector<256x128xf32>
    %102 = arith.mulf %64, %101 : vector<256x128xf32>
    %103 = arith.truncf %102 : vector<256x128xf32> to vector<256x128xbf16>
    %cst_42 = arith.constant dense<0.000000e+00> : vector<8x128xf32>
    %104 = tpu.matmul %3, %103, %cst_42 {dimension_numbers = #tpu.dot_dimension_numbers<[1], [0], [0], [1], [0, 0, 1, 1], [], []>} : vector<8x256xbf16>, vector<256x128xbf16>, vector<8x128xf32> -> vector<8x128xf32>
    %105 = vector.extract_strided_slice %0 {offsets = [1, 0, 0], sizes = [1, 8, 128], strides = [1, 1, 1]} : vector<2x8x128xf32> to vector<1x8x128xf32>
    %106 = vector.shape_cast %105 : vector<1x8x128xf32> to vector<8x128xf32>
    %107 = arith.addf %106, %104 : vector<8x128xf32>
    %108 = vector.broadcast %5 : vector<8x1xf32> to vector<8x128xf32>
    %109 = arith.addf %107, %108 : vector<8x128xf32>
    %110 = tpu.concatenate %57, %109 in 0 : vector<8x128xf32>, vector<8x128xf32> -> vector<16x128xf32>
    %111 = arith.truncf %110 : vector<16x128xf32> to vector<16x128xbf16>
    %c0_43 = arith.constant 0 : index
    %c0_44 = arith.constant 0 : index
    %112 = vector.load %arg6[%c0_43, %c0_44] : memref<128x256xbf16, #tpu.memory_space<vmem>>, vector<128x256xbf16>
    %cst_45 = arith.constant dense<0.000000e+00> : vector<16x256xf32>
    %113 = tpu.matmul %111, %112, %cst_45 {dimension_numbers = #tpu.dot_dimension_numbers<[1], [0], [0], [1], [0, 0, 1, 1], [], []>} : vector<16x128xbf16>, vector<128x256xbf16>, vector<16x256xf32> -> vector<16x256xf32>
    %c0_46 = arith.constant 0 : index
    %c0_47 = arith.constant 0 : index
    %114 = vector.load %arg7[%c0_46, %c0_47] : memref<1x256xf32, #tpu.memory_space<vmem>>, vector<1x256xf32>
    %115 = vector.broadcast %114 : vector<1x256xf32> to vector<16x256xf32>
    %116 = arith.addf %113, %115 : vector<16x256xf32>
    %cst_48 = arith.constant 5.000000e-01 : f32
    %117 = vector.broadcast %cst_48 : f32 to vector<16x256xf32>
    %118 = arith.mulf %117, %116 : vector<16x256xf32>
    %cst_49 = arith.constant 0.707106769 : f32
    %119 = vector.broadcast %cst_49 : f32 to vector<16x256xf32>
    %120 = arith.mulf %116, %119 : vector<16x256xf32>
    %121 = math.absf %120 : vector<16x256xf32>
    %cst_50 = arith.constant 0.327591091 : f32
    %122 = vector.broadcast %cst_50 : f32 to vector<16x256xf32>
    %123 = arith.mulf %122, %121 : vector<16x256xf32>
    %cst_51 = arith.constant 1.000000e+00 : f32
    %124 = vector.broadcast %cst_51 : f32 to vector<16x256xf32>
    %125 = arith.addf %124, %123 : vector<16x256xf32>
    %cst_52 = arith.constant 1.000000e+00 : f32
    %126 = vector.broadcast %cst_52 : f32 to vector<16x256xf32>
    %127 = arith.divf %126, %125 : vector<16x256xf32>
    %cst_53 = arith.constant 1.06140542 : f32
    %128 = vector.broadcast %cst_53 : f32 to vector<16x256xf32>
    %129 = arith.mulf %128, %127 : vector<16x256xf32>
    %cst_54 = arith.constant -1.45315206 : f32
    %130 = vector.broadcast %cst_54 : f32 to vector<16x256xf32>
    %131 = arith.addf %129, %130 : vector<16x256xf32>
    %132 = arith.mulf %131, %127 : vector<16x256xf32>
    %cst_55 = arith.constant 1.42141378 : f32
    %133 = vector.broadcast %cst_55 : f32 to vector<16x256xf32>
    %134 = arith.addf %132, %133 : vector<16x256xf32>
    %135 = arith.mulf %134, %127 : vector<16x256xf32>
    %cst_56 = arith.constant -0.284496725 : f32
    %136 = vector.broadcast %cst_56 : f32 to vector<16x256xf32>
    %137 = arith.addf %135, %136 : vector<16x256xf32>
    %138 = arith.mulf %137, %127 : vector<16x256xf32>
    %cst_57 = arith.constant 0.254829586 : f32
    %139 = vector.broadcast %cst_57 : f32 to vector<16x256xf32>
    %140 = arith.addf %138, %139 : vector<16x256xf32>
    %141 = arith.mulf %140, %127 : vector<16x256xf32>
    %142 = arith.mulf %121, %121 : vector<16x256xf32>
    %cst_58 = arith.constant 0.000000e+00 : f32
    %143 = vector.broadcast %cst_58 : f32 to vector<16x256xf32>
    %144 = arith.subf %143, %142 : vector<16x256xf32>
    %145 = math.exp %144 : vector<16x256xf32>
    %146 = arith.mulf %141, %145 : vector<16x256xf32>
    %cst_59 = arith.constant 1.000000e+00 : f32
    %147 = vector.broadcast %cst_59 : f32 to vector<16x256xf32>
    %148 = arith.subf %147, %146 : vector<16x256xf32>
    %cst_60 = arith.constant 0.000000e+00 : f32
    %149 = vector.broadcast %cst_60 : f32 to vector<16x256xf32>
    %150 = arith.cmpf olt, %120, %149 : vector<16x256xf32>
    %cst_61 = arith.constant 0.000000e+00 : f32
    %151 = vector.broadcast %cst_61 : f32 to vector<16x256xf32>
    %152 = arith.subf %151, %148 : vector<16x256xf32>
    %153 = arith.select %150, %152, %148 : vector<16x256xi1>, vector<16x256xf32>
    %cst_62 = arith.constant 1.000000e+00 : f32
    %154 = vector.broadcast %cst_62 : f32 to vector<16x256xf32>
    %155 = arith.addf %154, %153 : vector<16x256xf32>
    %156 = arith.mulf %118, %155 : vector<16x256xf32>
    %157 = arith.truncf %156 : vector<16x256xf32> to vector<16x256xbf16>
    %c0_63 = arith.constant 0 : index
    %c0_64 = arith.constant 0 : index
    %158 = vector.load %arg8[%c0_63, %c0_64] : memref<256x128xbf16, #tpu.memory_space<vmem>>, vector<256x128xbf16>
    %cst_65 = arith.constant dense<0.000000e+00> : vector<16x128xf32>
    %159 = tpu.matmul %157, %158, %cst_65 {dimension_numbers = #tpu.dot_dimension_numbers<[1], [0], [0], [1], [0, 0, 1, 1], [], []>} : vector<16x256xbf16>, vector<256x128xbf16>, vector<16x128xf32> -> vector<16x128xf32>
    %160 = arith.addf %110, %159 : vector<16x128xf32>
    %c0_66 = arith.constant 0 : index
    %c0_67 = arith.constant 0 : index
    %161 = vector.load %arg9[%c0_66, %c0_67] : memref<1x128xf32, #tpu.memory_space<vmem>>, vector<1x128xf32>
    %162 = vector.broadcast %161 : vector<1x128xf32> to vector<16x128xf32>
    %163 = arith.addf %160, %162 : vector<16x128xf32>
    %164 = vector.shape_cast %163 : vector<16x128xf32> to vector<2x8x128xf32>
    %c0_68 = arith.constant 0 : index
    %c0_69 = arith.constant 0 : index
    %c0_70 = arith.constant 0 : index
    %165 = vector.load %arg10[%c0_68, %c0_69, %c0_70] : memref<2x8x128xf32, #tpu.memory_space<vmem>>, vector<2x8x128xf32>
    tpu.vector_store %arg10[%c0_68, %c0_69, %c0_70], %164 {strides = array<i32>} : memref<2x8x128xf32, #tpu.memory_space<vmem>>, vector<2x8x128xf32>,
    return
  }
  func.func @transform_0(%arg0: i32) -> (i32, i32, i32) {
    %c0_i32 = arith.constant 0 : i32
    %c0_i32_0 = arith.constant 0 : i32
    %c0_i32_1 = arith.constant 0 : i32
    return %arg0, %c0_i32, %c0_i32_0 : i32, i32, i32
  }
  func.func @transform_1(%arg0: i32) -> (i32, i32) {
    %c0_i32 = arith.constant 0 : i32
    %c0_i32_0 = arith.constant 0 : i32
    %c0_i32_1 = arith.constant 0 : i32
    return %c0_i32, %c0_i32_0 : i32, i32
  }
  func.func @transform_2(%arg0: i32) -> (i32, i32) {
    %c0_i32 = arith.constant 0 : i32
    %c0_i32_0 = arith.constant 0 : i32
    %c0_i32_1 = arith.constant 0 : i32
    return %c0_i32, %c0_i32_0 : i32, i32
  }
  func.func @transform_3(%arg0: i32) -> (i32, i32) {
    %c0_i32 = arith.constant 0 : i32
    %c0_i32_0 = arith.constant 0 : i32
    %c0_i32_1 = arith.constant 0 : i32
    return %c0_i32, %c0_i32_0 : i32, i32
  }
  func.func @transform_4(%arg0: i32) -> (i32, i32) {
    %c0_i32 = arith.constant 0 : i32
    %c0_i32_0 = arith.constant 0 : i32
    %c0_i32_1 = arith.constant 0 : i32
    return %c0_i32, %c0_i32_0 : i32, i32
  }
  func.func @transform_5(%arg0: i32) -> (i32, i32) {
    %c0_i32 = arith.constant 0 : i32
    %c0_i32_0 = arith.constant 0 : i32
    %c0_i32_1 = arith.constant 0 : i32
    return %c0_i32, %c0_i32_0 : i32, i32
  }
  func.func @transform_6(%arg0: i32) -> (i32, i32) {
    %c0_i32 = arith.constant 0 : i32
    %c0_i32_0 = arith.constant 0 : i32
    %c0_i32_1 = arith.constant 0 : i32
    return %c0_i32, %c0_i32_0 : i32, i32
  }
  func.func @transform_7(%arg0: i32) -> (i32, i32) {
    %c0_i32 = arith.constant 0 : i32
    %c0_i32_0 = arith.constant 0 : i32
    %c0_i32_1 = arith.constant 0 : i32
    return %c0_i32, %c0_i32_0 : i32, i32
  }
  func.func @transform_8(%arg0: i32) -> (i32, i32) {
    %c0_i32 = arith.constant 0 : i32
    %c0_i32_0 = arith.constant 0 : i32
    %c0_i32_1 = arith.constant 0 : i32
    return %c0_i32, %c0_i32_0 : i32, i32
  }
  func.func @transform_9(%arg0: i32) -> (i32, i32, i32) {
    %c0_i32 = arith.constant 0 : i32
    %c0_i32_0 = arith.constant 0 : i32
    %c0_i32_1 = arith.constant 0 : i32
    return %arg0, %c0_i32, %c0_i32_0 : i32, i32, i32
  }
}

</mosaic_0001>

<bundles_post_ra>
// kernel: tpu_custom_call.1
= control target key start
LH: loop header
LB: loop body
LE: loop exit
PB: predicated region body
PF: predicated region fallthrough
CT: control target
= control target key end

     0   :  { %v4301_v3 = vmov 0   ;;  %vm393_vm0 = vcmask 1043456   ;;  %vm8673_vm1 = vcmask 64512   ;;  %s8511_s0 = inlined_call_operand.vmem [shape: f32[2,8,128], index: 0, kind: input, shape index: {}]   ;;  %s8512_s1 = inlined_call_operand.vmem [shape: bf16[256,8], index: 1, kind: input, shape index: {}]   ;;  %s8513_s2 = inlined_call_operand.vmem [shape: f32[256,1], index: 2, kind: input, shape index: {}]   ;;  %s8514_s3 = inlined_call_operand.vmem [shape: bf16[8,256], index: 3, kind: input, shape index: {}]   ;;  %s8515_s4 = inlined_call_operand.vmem [shape: f32[8,1], index: 4, kind: input, shape index: {}]   ;;  %s8516_s5 = inlined_call_operand.vmem [shape: bf16[128,256], index: 5, kind: input, shape index: {}]   ;;  %s8517_s6 = inlined_call_operand.vmem [shape: f32[1,256], index: 6, kind: input, shape index: {}]   ;;  %s8518_s7 = inlined_call_operand.vmem [shape: bf16[256,128], index: 7, kind: input, shape index: {}]   ;;  %s8519_s8 = inlined_call_operand.vmem [shape: f32[1,128], index: 8, kind: input, shape index: {}]   ;;  %s8520_s9 = inlined_call_operand.hbm [shape: f32[2,8,128], index: 9, kind: output, shape index: {}]  }
   0x1   :  { %v101_v0 = vld [vmem:[%s8513_s2 + $0xf0] sm:$0xff]  ;;  %v99_v1 = vld [vmem:[%s8513_s2 + $0xe0] sm:$0xff]  ;;  %3995 = vset.pattern.permute.xlu2 %v4301_v3  ;;  %3994 = vset.pattern.permute.xlu1 %v4301_v3  ;;  %v35_v5 = vld [vmem:[%s8511_s0 + $0x8] sm:$0xff] }
   0x2   :  { %v97_v2 = vld [vmem:[%s8513_s2 + $0xd0] sm:$0xff]  ;;  %v34_v4 = vld [vmem:[%s8511_s0] sm:$0xff]  ;;  %3993 = vset.pattern.permute.xlu0 %v4301_v3  ;;  %246 = vperm.xlu1 %3994, %v99_v1   ;;  %v37_v7 = vpack.c.bf16 %v35_v5, %v35_v5  ;;  %v100_v13 = vld [vmem:[%s8513_s2 + $0xe8] sm:$0xff] }
   0x3   :  { %v36_v6 = vpack.c.bf16 %v34_v4, %v34_v4  ;;  %256 = vperm.xlu0 %3993, %v101_v0   ;;  %236 = vperm.xlu2 %3995, %v97_v2   ;;  %v3939_v10 = vld [vmem:[%s8512_s1] sm:$0xff]  ;;  %v102_v14 = vld [vmem:[%s8513_s2 + $0xf8] sm:$0xff] }
   0x4   :  { %v4370_v9 = vsel %vm393_vm0, %v37_v7, 0  ;;  %v4378_v11 = vld [vmem:[%s8512_s1 + $0x60] sm:$0xff]  ;;  %v98_v15 = vld [vmem:[%s8513_s2 + $0xd8] sm:$0xff] }
   0x5   :  { %v395_v8 = vsel %vm393_vm0, %v36_v6, 0  ;;  %8718 = vst [vmem:[#allocation5_spill] sm:$0xff] %v4370_v9  ;;  %v4383_v12 = vld [vmem:[%s8512_s1 + $0x20] sm:$0xff]  ;;  %3988 = vmatpush.bf16.msra.mxu3 %v4370_v9 }
   0x6   :  { %404 = vmatpush.bf16.msra.mxu0 %v395_v8  ;;  %3987 = vmatpush.bf16.msra.mxu1 %v395_v8 }
   0x8   :  { %3799 = vmatmul.msk.bf16.vlgmr.msra.gmra.mxu3 %vm8673_vm1, %v4383_v12 }
   0x9   :  { %3779 = vmatmul.msk.bf16.vlgmr.msra.gmra.mxu0 %vm8673_vm1, %v3939_v10  ;;  %3791 = vmatmul.msk.bf16.vlgmr.msra.gmra.mxu1 %vm8673_vm1, %v4378_v11 }
   0xa   :  { %14 = vsyncpa [#allocation3], 0  ;;  %251 = vperm.xlu1 %3994, %v100_v13   ;;  %v96_v16 = vld [vmem:[%s8513_s2 + $0xc8] sm:$0xff]  ;;  %v95_v17 = vld [vmem:[%s8513_s2 + $0xc0] sm:$0xff]  ;;  %s4302_s10 = smov [#allocation2]   ;;  %s3703_s13 = sshll.u32 %s8520_s9, 4  ;;  %s3704_s13 = int_to_ptr.hbm [resolvable:$true] %s3703_s13 }
   0xb   :  { %261 = vperm.xlu0 %3993, %v102_v14   ;;  %241 = vperm.xlu2 %3995, %v98_v15   ;;  %v93_v18 = vld [vmem:[%s8513_s2 + $0xb0] sm:$0xff]  ;;  %v3940_v19 = vld [vmem:[%s8512_s1 + $0x8] sm:$0xff]  ;;  %v91_v22 = vld [vmem:[%s8513_s2 + $0xa0] sm:$0xff]  ;;  %s3701_s11 = sshll.u32 %s4302_s10, 4  ;;  %s4304_s14 = smov 8   ;;  %s3702_s11 = int_to_ptr.vmem [resolvable:$true] %s3701_s11 }
   0xc   :  { %v4415_v20 = vld [vmem:[%s8512_s1 + $0x68] sm:$0xff]  ;;  %v94_v23 = vld [vmem:[%s8513_s2 + $0xb8] sm:$0xff]  ;;  %v89_v26 = vld [vmem:[%s8513_s2 + $0x90] sm:$0xff] }
   0xd   :  { %v4420_v21 = vld [vmem:[%s8512_s1 + $0x28] sm:$0xff]  ;;  %v90_v25 = vld [vmem:[%s8513_s2 + $0x98] sm:$0xff]  ;;  %v87_v27 = vld [vmem:[%s8513_s2 + $0x80] sm:$0xff] }
   0xe   :  { %v92_v24 = vld [vmem:[%s8513_s2 + $0xa8] sm:$0xff]  ;;  %v3941_v28 = vld [vmem:[%s8512_s1 + $0x10] sm:$0xff]  ;;  %v86_v33 = vld [vmem:[%s8513_s2 + $0x78] sm:$0xff] }
   0xf   :  { %v4451_v29 = vld [vmem:[%s8512_s1 + $0x70] sm:$0xff]  ;;  %v88_v32 = vld [vmem:[%s8513_s2 + $0x88] sm:$0xff]  ;;  %v83_v35 = vld [vmem:[%s8513_s2 + $0x60] sm:$0xff] }
  0x10   :  { %v3945_v30 = vld [vmem:[%s8512_s1 + $0x30] sm:$0xff]  ;;  %v84_v34 = vld [vmem:[%s8513_s2 + $0x68] sm:$0xff]  ;;  %v3942_v37 = vld [vmem:[%s8512_s1 + $0x18] sm:$0xff] }
  0x11   :  { %v85_v31 = vld [vmem:[%s8513_s2 + $0x70] sm:$0xff]  ;;  %v4484_v38 = vld [vmem:[%s8512_s1 + $0x78] sm:$0xff]  ;;  %v79_v40 = vld [vmem:[%s8513_s2 + $0x40] sm:$0xff] }
  0x12   :  { %231 = vperm.xlu1 %3994, %v96_v16   ;;  %v81_v36 = vld [vmem:[%s8513_s2 + $0x50] sm:$0xff]  ;;  %v3946_v39 = vld [vmem:[%s8512_s1 + $0x38] sm:$0xff]  ;;  %v80_v42 = vld [vmem:[%s8513_s2 + $0x48] sm:$0xff] }
  0x13   :  { %226 = vperm.xlu0 %3993, %v95_v17   ;;  %216 = vperm.xlu2 %3995, %v93_v18   ;;  %v82_v41 = vld [vmem:[%s8513_s2 + $0x58] sm:$0xff]  ;;  %v77_v44 = vld [vmem:[%s8513_s2 + $0x30] sm:$0xff]  ;;  %v75_v45 = vld [vmem:[%s8513_s2 + $0x20] sm:$0xff] }
  0x14   :  { %v78_v43 = vld [vmem:[%s8513_s2 + $0x38] sm:$0xff]  ;;  %v3947_v46 = vld [vmem:[%s8512_s1 + $0x40] sm:$0xff]  ;;  %v73_v47 = vld [vmem:[%s8513_s2 + $0x10] sm:$0xff] }
  0x15   :  { %v76_v48 = vld [vmem:[%s8513_s2 + $0x28] sm:$0xff]  ;;  %v74_v49 = vld [vmem:[%s8513_s2 + $0x18] sm:$0xff]  ;;  %v71_v51 = vld [vmem:[%s8513_s2] sm:$0xff] }
  0x16   :  { %v72_v50 = vld [vmem:[%s8513_s2 + $0x8] sm:$0xff]  ;;  %v3949_v55 = vld [vmem:[%s8512_s1 + $0x50] sm:$0xff]  ;;  %v3950_v58 = vld [vmem:[%s8512_s1 + $0x58] sm:$0xff] }
  0x17   :  { %v3948_v52 = vld [vmem:[%s8512_s1 + $0x48] sm:$0xff] }
  0x18   :  { %3800 = vmatmul.msk.bf16.gmra.mxu3 %vm8673_vm1, %v4420_v21 }
  0x19   :  { %3780 = vmatmul.msk.bf16.gmra.mxu0 %vm8673_vm1, %v3940_v19  ;;  %3792 = vmatmul.msk.bf16.gmra.mxu1 %vm8673_vm1, %v4415_v20 }
  0x1a   :  { %206 = vperm.xlu1 %3994, %v91_v22  }
  0x1b   :  { %221 = vperm.xlu0 %3993, %v94_v23   ;;  %211 = vperm.xlu2 %3995, %v92_v24  }
  0x22   :  { %201 = vperm.xlu1 %3994, %v90_v25  }
  0x23   :  { %196 = vperm.xlu0 %3993, %v89_v26   ;;  %186 = vperm.xlu2 %3995, %v87_v27  }
  0x28   :  { %3801 = vmatmul.msk.bf16.gmra.mxu3 %vm8673_vm1, %v3945_v30 }
  0x29   :  { %3781 = vmatmul.msk.bf16.gmra.mxu0 %vm8673_vm1, %v3941_v28  ;;  %3793 = vmatmul.msk.bf16.gmra.mxu1 %vm8673_vm1, %v4451_v29 }
  0x2a   :  { %176 = vperm.xlu1 %3994, %v85_v31  }
  0x2b   :  { %191 = vperm.xlu0 %3993, %v88_v32   ;;  %181 = vperm.xlu2 %3995, %v86_v33  }
  0x32   :  { %171 = vperm.xlu1 %3994, %v84_v34  }
  0x33   :  { %166 = vperm.xlu0 %3993, %v83_v35   ;;  %156 = vperm.xlu2 %3995, %v81_v36  }
  0x38   :  { %3802 = vmatmul.msk.bf16.gmra.mxu3 %vm8673_vm1, %v3946_v39 }
  0x39   :  { %3782 = vmatmul.msk.bf16.gmra.mxu0 %vm8673_vm1, %v3942_v37  ;;  %3794 = vmatmul.msk.bf16.gmra.mxu1 %vm8673_vm1, %v4484_v38 }
  0x3a   :  { %146 = vperm.xlu1 %3994, %v79_v40  }
  0x3b   :  { %161 = vperm.xlu0 %3993, %v82_v41   ;;  %151 = vperm.xlu2 %3995, %v80_v42  }
  0x42   :  { %141 = vperm.xlu1 %3994, %v78_v43  }
  0x43   :  { %136 = vperm.xlu0 %3993, %v77_v44   ;;  %126 = vperm.xlu2 %3995, %v75_v45  }
  0x48   :  { %3803 = vmatmul.msk.bf16.gmra.mxu3 %vm8673_vm1, %v3947_v46 }
  0x49   :  { %3783 = vmatmul.msk.bf16.gmra.mxu0 %vm8673_vm1, %v4383_v12 }
  0x4a   :  { %116 = vperm.xlu1 %3994, %v73_v47  }
  0x4b   :  { %131 = vperm.xlu0 %3993, %v76_v48   ;;  %121 = vperm.xlu2 %3995, %v74_v49  }
  0x52   :  { %111 = vperm.xlu1 %3994, %v72_v50  }
  0x53   :  { %106 = vperm.xlu0 %3993, %v71_v51  }
  0x58   :  { %3804 = vmatmul.msk.bf16.gmra.mxu3 %vm8673_vm1, %v3948_v52 }
  0x59   :  { %3784 = vmatmul.msk.bf16.gmra.mxu0 %vm8673_vm1, %v4420_v21 }
  0x5d   :  { %v4538_v53 = vpop.permute.xlu2 %236 }
  0x5e   :  { %8719 = vst [vmem:[#allocation6_spill] sm:$0xff] %v4538_v53 }
  0x65   :  { %v4540_v54 = vpop.permute.xlu2 %241 }
  0x66   :  { %8720 = vst [vmem:[#allocation7_spill] sm:$0xff] %v4540_v54 }
  0x68   :  { %3805 = vmatmul.msk.bf16.gmra.mxu3 %vm8673_vm1, %v3949_v55 }
  0x69   :  { %3785 = vmatmul.msk.bf16.gmra.mxu0 %vm8673_vm1, %v3945_v30 }
  0x6d   :  { %v4547_v56 = vpop.permute.xlu2 %216 }
  0x6e   :  { %8721 = vst [vmem:[#allocation8_spill] sm:$0xff] %v4547_v56 }
  0x74   :  { %v4589_v7 = vpop.permute.xlu1 %246 }
  0x75   :  { %v4549_v57 = vpop.permute.xlu2 %211  ;;  %v4575_v2 = vpop.permute.xlu0 %256  ;;  %8729 = vst [vmem:[#allocation16_spill] sm:$0xff] %v4589_v7 }
  0x76   :  { %8722 = vst [vmem:[#allocation9_spill] sm:$0xff] %v4549_v57 }
  0x77   :  { %8727 = vst [vmem:[#allocation14_spill] sm:$0xff] %v4575_v2 }
  0x78   :  { %3806 = vmatmul.msk.bf16.gmra.mxu3 %vm8673_vm1, %v3950_v58 }
  0x79   :  { %3786 = vmatmul.msk.bf16.gmra.mxu0 %vm8673_vm1, %v3946_v39 }
  0x7c   :  { %v4595_v13 = vpop.permute.xlu1 %251 }
  0x7d   :  { %v4556_v59 = vpop.permute.xlu2 %186  ;;  %v4583_v5 = vpop.permute.xlu0 %261  ;;  %8731 = vst [vmem:[#allocation18_spill] sm:$0xff] %v4595_v13 }
  0x7e   :  { %8723 = vst [vmem:[#allocation10_spill] sm:$0xff] %v4556_v59 }
  0x7f   :  { %8728 = vst [vmem:[#allocation15_spill] sm:$0xff] %v4583_v5 }
  0x84   :  { %v4607_v21 = vpop.permute.xlu1 %231 }
  0x85   :  { %v4558_v60 = vpop.permute.xlu2 %181  ;;  %8733 = vst [vmem:[#allocation20_spill] sm:$0xff] %v4607_v21 }
  0x86   :  { %8724 = vst [vmem:[#allocation11_spill] sm:$0xff] %v4558_v60  ;;  %v4591_v10 = vpop.f32.mrf.mxu0  ;;  %v466_v12 = vpop.f32.mrf.mxu1 }
  0x88   :  { %3807 = vmatmul.msk.bf16.gmra.mxu3 %vm8673_vm1, %v4378_v11  ;;  %v4593_v11 = vpop.permute.xlu0 %226 }
  0x89   :  { %3787 = vmatmul.msk.bf16.gmra.mxu0 %vm8673_vm1, %v3947_v46  ;;  %8730 = vst [vmem:[#allocation17_spill] sm:$0xff] %v4593_v11 }
  0x8b   :  { %v4563_v61 = vpop.f32.mrf.mxu3 }
  0x8c   :  { %v4635_v42 = vpop.permute.xlu1 %206 }
  0x8d   :  { %v4565_v62 = vpop.permute.xlu2 %156  ;;  %8738 = vst [vmem:[#allocation25_spill] sm:$0xff] %v4635_v42 }
  0x8e   :  { %8725 = vst [vmem:[#allocation12_spill] sm:$0xff] %v4565_v62  ;;  %v4598_v15 = vpop.f32.mrf.mxu0  ;;  %v468_v18 = vpop.f32.mrf.mxu1 }
  0x8f   :  { %v4610_v22 = vadd.f32 %v468_v18, %v4607_v21 }
  0x90   :  { %v4602_v17 = vpop.permute.xlu0 %221 }
  0x91   :  { %8732 = vst [vmem:[#allocation19_spill] sm:$0xff] %v4602_v17  ;;  %v4621_v28 = vmul.f32 0.70710677, %v4610_v22 }
  0x93   :  { %v1856_v63 = vpop.f32.mrf.mxu3  ;;  %8735 = vst [vmem:[#allocation22_spill] sm:$0xff] %v4621_v28  ;;  %v575_v36 = vand.u32 2147483647, %v4621_v28 }
  0x94   :  { %v4668_v18 = vpop.permute.xlu1 %201 }
  0x95   :  { %v4570_v0 = vpop.permute.xlu2 %151  ;;  %v607_v43 = vmul.f32 0.3275911, %v575_v36  ;;  %8744 = vst [vmem:[#allocation31_spill] sm:$0xff] %v4668_v18 }
  0x96   :  { %8726 = vst [vmem:[#allocation13_spill] sm:$0xff] %v4570_v0  ;;  %v4573_v1 = vadd.f32 %v1856_v63, %v4570_v0  ;;  %v4618_v27 = vpop.f32.mrf.mxu0  ;;  %v471_v35 = vpop.f32.mrf.mxu1 }
  0x97   :  { %v4645_v50 = vadd.f32 1.0, %v607_v43  ;;  %v4648_v51 = vadd.f32 %v471_v35, %v4538_v53 }
  0x98   :  { %3808 = vmatmul.msk.bf16.gmra.mxu3 %vm8673_vm1, %v4415_v20  ;;  %v4578_v3 = vmul.f32 0.70710677, %v4573_v1  ;;  %v4605_v20 = vadd.f32 %v466_v12, %v4593_v11  ;;  %v4623_v30 = vpop.permute.xlu0 %196 }
  0x99   :  { %3788 = vmatmul.msk.bf16.gmra.mxu0 %vm8673_vm1, %v3948_v52  ;;  %8736 = vst [vmem:[#allocation23_spill] sm:$0xff] %v4623_v30 }
  0x9a   :  { %v4581_v4 = vand.u32 2147483647, %v4578_v3  ;;  %v4616_v26 = vmul.f32 0.70710677, %v4605_v20  ;;  %8740 = vst [vmem:[#allocation27_spill] sm:$0xff] %v4645_v50  ;;  %vm3043_vm10 = vcmp.lt.f32.partialorder %v4578_v3, 0.0 }
  0x9b   :  { %v1859_v23 = vpop.f32.mrf.mxu3 }
  0x9c   :  { %v2019_v6 = vmul.f32 0.3275911, %v4581_v4  ;;  %v4613_v25 = vadd.f32 %v1859_v23, %v4565_v62  ;;  %8734 = vst [vmem:[#allocation21_spill] sm:$0xff] %v4616_v26  ;;  %v574_v34 = vand.u32 2147483647, %v4616_v26 }
  0x9d   :  { %v4633_v40 = vpop.permute.xlu2 %126 }
  0x9e   :  { %v2051_v8 = vadd.f32 1.0, %v2019_v6  ;;  %v4626_v33 = vmul.f32 0.70710677, %v4613_v25  ;;  %8737 = vst [vmem:[#allocation24_spill] sm:$0xff] %v4633_v40  ;;  %v606_v41 = vmul.f32 0.3275911, %v574_v34  ;;  %v413_v45 = vpop.f32.mrf.mxu0  ;;  %v473_v52 = vpop.f32.mrf.mxu1  ;;  %v1438_v12 = vmul.f32 %v574_v34, %v574_v34 }
  0x9f   :  { %v4655_v63 = vadd.f32 %v473_v52, %v4540_v54 }
  0xa0   :  { %3997 = vrcp.f32 %v2051_v8  ;;  %vm2214_vm2 = vweird.f32 %v2051_v8  ;;  %v2218_v32 = vand.u32 2147483647, %v2051_v8  ;;  %v4631_v39 = vand.u32 2147483647, %v4626_v33  ;;  %v4643_v49 = vpop.permute.xlu0 %191 }
  0xa1   :  { %v4640_v47 = vadd.f32 1.0, %v606_v41  ;;  %v1439_v41 = vmul.f32 %v575_v36, %v575_v36 }
  0xa2   :  { %vm2219_vm5 = vcmp.eq.f32.partialorder %v2218_v32, 8.507059e+37  ;;  %v2020_v46 = vmul.f32 0.3275911, %v4631_v39 }
  0xa3   :  { %8739 = vst [vmem:[#allocation26_spill] sm:$0xff] %v4640_v47  ;;  %3999 = vrcp.f32 %v4640_v47 }
  0xa4   :  { %4001 = vrcp.f32 %v4645_v50 }
  0xa6   :  { %v3998_v14 = vpop.eup %3997  ;;  %v416_v23 = vpop.f32.mrf.mxu0 }
  0xa7   :  { %v2210_v16 = vmul.f32 %v3998_v14, %v2051_v8  ;;  %vm2215_vm3 = vweird.f32 %v3998_v14 }
  0xa8   :  { %3809 = vmatmul.msk.bf16.gmra.mxu3 %vm8673_vm1, %v4451_v29  ;;  %v2220_v29 = vand.u32 2147483648, %v2051_v8  ;;  %vm2216_vm4 = vmor %vm2214_vm2, %vm2215_vm3  ;;  %v4658_v8 = vpop.permute.xlu2 %121  ;;  %v4680_v35 = vpop.permute.xlu0 %166 }
  0xa9   :  { %3789 = vmatmul.msk.bf16.gmra.mxu0 %vm8673_vm1, %v3949_v55  ;;  %v2211_v19 = vsub.f32 1.0, %v2210_v16  ;;  %v4650_v55 = vpop.f32.mrf.mxu3  ;;  %8741 = vst [vmem:[#allocation28_spill] sm:$0xff] %v4658_v8  ;;  %v4666_v16 = vmul.f32 0.70710677, %v4655_v63 }
  0xaa   :  { %v2221_v37 = vor.u32 1.1754944e-38, %v2220_v29  ;;  %v4674_v29 = vpop.eup %3999  ;;  %8746 = vst [vmem:[#allocation33_spill] sm:$0xff] %v4680_v35 }
  0xab   :  { %v2212_v24 = vmul.f32 %v3998_v14, %v2211_v19  ;;  %8743 = vst [vmem:[#allocation30_spill] sm:$0xff] %v4666_v16  ;;  %v4671_v19 = vadd.f32 %v413_v45, %v4658_v8  ;;  %v4678_v34 = vand.u32 2147483647, %v4666_v16 }
  0xac   :  { %8745 = vst [vmem:[#allocation32_spill] sm:$0xff] %v4674_v29 }
  0xad   :  { %v2213_v31 = vadd.f32 %v3998_v14, %v2212_v24  ;;  %v4688_v43 = vmul.f32 0.70710677, %v4671_v19  ;;  %v609_v9 = vmul.f32 0.3275911, %v4678_v34 }
  0xaf   :  { %8748 = vst [vmem:[#allocation35_spill] sm:$0xff] %v4688_v43 }
  0xb0   :  { %v4736_v17 = vpop.permute.xlu0 %161 }
  0xb1   :  { %v1864_v45 = vpop.f32.mrf.mxu3  ;;  %8756 = vst [vmem:[#allocation43_spill] sm:$0xff] %v4736_v17 }
  0xb8   :  { %3810 = vmatmul.msk.bf16.gmra.mxu3 %vm8673_vm1, %v4484_v38  ;;  %v2217_v38 = vsel %vm2216_vm4, %v3998_v14, %v2213_v31  ;;  %v4662_v14 = vmul.f32 0.70710677, %v4648_v51  ;;  %v1470_v31 = vsub.f32 0.0, %v1438_v12  ;;  %v1017_v12 = vand.u32 2147483648, %v4640_v47 }
  0xb9   :  { %3790 = vmatmul.msk.bf16.gmra.mxu0 %vm8673_vm1, %v3950_v58  ;;  %v4637_v44 = vsel %vm2219_vm5, %v2221_v37, %v2217_v38  ;;  %v4652_v58 = vadd.f32 1.0, %v2020_v46  ;;  %v4683_v37 = vadd.f32 %v416_v23, %v4633_v40  ;;  %v4685_v38 = vpop.eup %4001  ;;  %v2851_v40 = vmul.f32 %v4581_v4, %v4581_v4 }
  0xba   :  { %v2563_v48 = vmul.f32 1.0614054, %v4637_v44  ;;  %8742 = vst [vmem:[#allocation29_spill] sm:$0xff] %v4662_v14  ;;  %v576_v32 = vand.u32 2147483647, %v4662_v14  ;;  %v1022_v36 = vmul.f32 %v4685_v38, %v4645_v50  ;;  %v4717_v26 = vor.u32 1.1754944e-38, %v1017_v12 }
  0xbb   :  { %4003 = vrcp.f32 %v4652_v58  ;;  %8747 = vst [vmem:[#allocation34_spill] sm:$0xff] %v4685_v38  ;;  %v1526_v23 = vmul.f32 1.442695, %v1470_v31  ;;  %v4704_v54 = vmul.f32 0.70710677, %v4683_v37  ;;  %vm2229_vm6 = vweird.f32 %v4652_v58 }
  0xbc   :  { %v2595_v6 = vadd.f32 -1.4531521, %v2563_v48  ;;  %v1007_v48 = vmul.f32 %v4674_v29, %v4640_v47  ;;  %v608_v8 = vmul.f32 0.3275911, %v576_v32  ;;  %v553_v31 = vand.u32 2147483647, %v4688_v43 }
  0xbd   :  { %8749 = vst [vmem:[#allocation36_spill] sm:$0xff] %v4704_v54  ;;  %4005 = vpow2.f32 %v1526_v23  ;;  %v1023_v16 = vsub.f32 1.0, %v1022_v36  ;;  %v2883_v43 = vsub.f32 0.0, %v2851_v40  ;;  %v4729_v11 = vand.u32 2147483647, %v4704_v54 }
  0xbe   :  { %v2627_v24 = vmul.f32 %v2595_v6, %v4637_v44  ;;  %v4695_v6 = vadd.f32 %v1864_v45, %v4680_v35  ;;  %v1471_v45 = vsub.f32 0.0, %v1439_v41  ;;  %v1008_v21 = vsub.f32 1.0, %v1007_v48  ;;  %8751 = vst [vmem:[#allocation38_spill] sm:$0xff] %v4717_v26 }
  0xbf   :  { %v4722_v41 = vadd.f32 1.0, %v608_v8  ;;  %v4726_v48 = vadd.f32 1.0, %v609_v9  ;;  %v585_v26 = vmul.f32 0.3275911, %v553_v31  ;;  %v4740_v40 = vmul.f32 0.5, %v4573_v1 }
  0xc0   :  { %v2659_v52 = vadd.f32 1.4214138, %v2627_v24  ;;  %v4707_v24 = vmul.f32 0.5, %v4605_v20  ;;  %v4715_v4 = vmul.f32 0.70710677, %v4695_v6  ;;  %v4720_v20 = vmul.f32 0.5, %v4610_v22 }
  0xc1   :  { %v4690_v46 = vpop.eup %4003  ;;  %8753 = vst [vmem:[#allocation40_spill] sm:$0xff] %v4722_v41  ;;  %v1528_v14 = vmul.f32 1.442695, %v1471_v45  ;;  %v1009_v23 = vmul.f32 %v4674_v29, %v1008_v21  ;;  %4007 = vrcp.f32 %v4722_v41  ;;  %v1024_v21 = vmul.f32 %v4685_v38, %v1023_v16 }
  0xc2   :  { %8750 = vst [vmem:[#allocation37_spill] sm:$0xff] %v4707_v24  ;;  %v2225_v53 = vmul.f32 %v4690_v46, %v4652_v58  ;;  %v2691_v28 = vmul.f32 %v2659_v52, %v4637_v44  ;;  %v4724_v24 = vpop.permute.xlu1 %176  ;;  %v1032_v52 = vand.u32 2147483648, %v4645_v50  ;;  %v4734_v8 = vand.u32 2147483647, %v4715_v4 }
  0xc3   :  { %8752 = vst [vmem:[#allocation39_spill] sm:$0xff] %v4720_v20  ;;  %v1440_v20 = vmul.f32 %v576_v32, %v576_v32  ;;  %4009 = vrcp.f32 %v4726_v48  ;;  %v586_v32 = vmul.f32 0.3275911, %v4729_v11  ;;  %v4750_v36 = vpop.eup %4005  ;;  %v4755_v9 = vadd.f32 1.0, %v585_v26 }
  0xc4   :  { %8754 = vst [vmem:[#allocation41_spill] sm:$0xff] %v4724_v24  ;;  %v2226_v12 = vsub.f32 1.0, %v2225_v53  ;;  %v2723_v22 = vadd.f32 -0.28449672, %v2691_v28  ;;  %v4745_v53 = vadd.f32 %v4650_v55, %v4736_v17  ;;  %v2924_v28 = vmul.f32 1.442695, %v2883_v43 }
  0xc5   :  { %8755 = vst [vmem:[#allocation42_spill] sm:$0xff] %v4726_v48  ;;  %v4752_v45 = vor.u32 1.1754944e-38, %v1032_v52  ;;  %4011 = vpow2.f32 %v1528_v14  ;;  %v4758_v54 = vadd.f32 %v4674_v29, %v1009_v23  ;;  %v1472_v16 = vsub.f32 0.0, %v1440_v20  ;;  %v1866_v14 = vpop.f32.mrf.mxu3 }
  0xc6   :  { %8757 = vst [vmem:[#allocation44_spill] sm:$0xff] %v4750_v36  ;;  %v2227_v1 = vmul.f32 %v4690_v46, %v2226_v12  ;;  %v2755_v55 = vmul.f32 %v2723_v22, %v4637_v44  ;;  %v2022_v43 = vmul.f32 0.3275911, %v4734_v8  ;;  %vm2230_vm7 = vweird.f32 %v4690_v46 }
  0xc7   :  { %8758 = vst [vmem:[#allocation45_spill] sm:$0xff] %v4752_v45  ;;  %v1417_v36 = vmul.f32 %v553_v31, %v553_v31  ;;  %v4765_v52 = vmul.f32 0.70710677, %v4745_v53  ;;  %v4768_v26 = vadd.f32 %v4685_v38, %v1024_v21  ;;  %4013 = vpow2.f32 %v2924_v28  ;;  %v4773_v20 = vpop.eup %4007  ;;  %vm4790_vm8 = vmor %vm2229_vm6, %vm2230_vm7 }
  0xc8   :  { %8759 = vst [vmem:[#allocation46_spill] sm:$0xff] %v4755_v9  ;;  %v2235_v12 = vand.u32 2147483648, %v4652_v58  ;;  %v4771_v23 = vadd.f32 1.0, %v586_v32  ;;  %v2228_v22 = vadd.f32 %v4690_v46, %v2227_v1  ;;  %v2233_v45 = vand.u32 2147483647, %v4652_v58 }
  0xc9   :  { %8760 = vst [vmem:[#allocation47_spill] sm:$0xff] %v4758_v54  ;;  %v4780_v31 = vmul.f32 0.5, %v4671_v19  ;;  %4015 = vrcp.f32 %v4755_v9  ;;  %v4783_v21 = vpop.eup %4009  ;;  %v2787_v28 = vadd.f32 0.2548296, %v2755_v55  ;;  %v4795_v1 = vmul.f32 0.5, %v4683_v37 }
  0xca   :  { %8761 = vst [vmem:[#allocation48_spill] sm:$0xff] %v4768_v26  ;;  %v4777_v54 = vpop.permute.xlu1 %171  ;;  %v1047_v26 = vand.u32 2147483648, %v4722_v41  ;;  %v4797_v19 = vadd.f32 1.0, %v2022_v43  ;;  %v4802_v38 = vmul.f32 0.5, %v4648_v51  ;;  %v1530_v55 = vmul.f32 1.442695, %v1472_v16  ;;  %v476_v43 = vpop.f32.mrf.mxu1 }
  0xcb   :  { %8762 = vst [vmem:[#allocation49_spill] sm:$0xff] %v4771_v23  ;;  %v1449_v50 = vsub.f32 0.0, %v1417_v36  ;;  %v4805_v29 = vand.u32 2147483647, %v4765_v52  ;;  %v1037_v58 = vmul.f32 %v4773_v20, %v4722_v41  ;;  %v4810_v47 = vmul.f32 0.5, %v4613_v25 }
  0xcc   :  { %8763 = vst [vmem:[#allocation50_spill] sm:$0xff] %v4773_v20  ;;  %v2236_v37 = vor.u32 1.1754944e-38, %v2235_v12  ;;  %4017 = vrcp.f32 %v4771_v23  ;;  %v2232_v51 = vsel %vm4790_vm8, %v4690_v46, %v2228_v22  ;;  %vm2234_vm9 = vcmp.eq.f32.partialorder %v2233_v45, 8.507059e+37 }
  0xcd   :  { %8764 = vst [vmem:[#allocation51_spill] sm:$0xff] %v4777_v54  ;;  %v2852_v36 = vmul.f32 %v4631_v39, %v4631_v39  ;;  %v1052_v16 = vmul.f32 %v4783_v21, %v4726_v48  ;;  %v4822_v12 = vor.u32 1.1754944e-38, %v1047_v26  ;;  %4019 = vrcp.f32 %v4797_v19 }
  0xce   :  { %8765 = vst [vmem:[#allocation52_spill] sm:$0xff] %v4780_v31  ;;  %v4799_v31 = vpop.eup %4011  ;;  %4021 = vpow2.f32 %v1530_v55  ;;  %v702_v46 = vand.u32 2147483648, %v4755_v9  ;;  %v1484_v45 = vmul.f32 1.442695, %v1449_v50  ;;  %v2021_v39 = vmul.f32 0.3275911, %v4805_v29  ;;  %v1869_v55 = vpop.f32.mrf.mxu3 }
  0xcf   :  { %8766 = vst [vmem:[#allocation53_spill] sm:$0xff] %v4783_v21  ;;  %v1038_v22 = vsub.f32 1.0, %v1037_v58  ;;  %v4829_v32 = vsel %vm2234_vm9, %v2236_v37, %v2232_v51  ;;  %v2884_v26 = vsub.f32 0.0, %v2852_v36  ;;  %v4842_v37 = vadd.f32 %v1866_v14, %v4777_v54 }
  0xd0   :  { %8769 = vst [vmem:[#allocation54_spill] sm:$0xff] %v4795_v1  ;;  %v4014_v1 = vpop.eup %4013  ;;  %v4845_v51 = vadd.f32 %v1869_v55, %v4724_v24  ;;  %v4849_v36 = vor.u32 1.1754944e-38, %v702_v46  ;;  %4023 = vpow2.f32 %v1484_v45  ;;  %v1062_v14 = vand.u32 2147483648, %v4726_v48 }
  0xd1   :  { %8770 = vst [vmem:[#allocation55_spill] sm:$0xff] %v4799_v31  ;;  %v2819_v31 = vmul.f32 %v2787_v28, %v4637_v44  ;;  %v4833_v44 = vadd.f32 %v476_v43, %v4589_v7  ;;  %v1053_v28 = vsub.f32 1.0, %v1052_v16  ;;  %v2564_v43 = vmul.f32 1.0614054, %v4829_v32 }
  0xd2   :  { %8771 = vst [vmem:[#allocation56_spill] sm:$0xff] %v4802_v38  ;;  %v4825_v38 = vpop.eup %4015  ;;  %v4851_v16 = vadd.f32 1.0, %v2021_v39  ;;  %v4853_v56 = vpop.permute.xlu1 %146  ;;  %v2926_v45 = vmul.f32 1.442695, %v2884_v26  ;;  %v4874_v54 = vmul.f32 0.70710677, %v4842_v37  ;;  %vm2259_vm11 = vweird.f32 %v4797_v19 }
  0xd3   :  { %8772 = vst [vmem:[#allocation57_spill] sm:$0xff] %v4822_v12  ;;  %v717_v12 = vand.u32 2147483648, %v4771_v23  ;;  %v4837_v41 = vpop.eup %4017  ;;  %v2979_v50 = vmul.f32 %v4014_v1, %v2819_v31  ;;  %v692_v58 = vmul.f32 %v4825_v38, %v4755_v9  ;;  %v1039_v1 = vmul.f32 %v4773_v20, %v1038_v22  ;;  %v478_v24 = vpop.f32.mrf.mxu1 }
  0xd4   :  { %8773 = vst [vmem:[#allocation58_spill] sm:$0xff] %v4825_v38  ;;  %v4855_v31 = vpop.eup %4019  ;;  %v4860_v55 = vmul.f32 0.70710677, %v4833_v44  ;;  %v4864_v25 = vadd.f32 %v4563_v61, %v4853_v56  ;;  %v1054_v39 = vmul.f32 %v4783_v21, %v1053_v28  ;;  %v1418_v22 = vmul.f32 %v4729_v11, %v4729_v11  ;;  %v4882_v28 = vpop.f32.mrf.mxu0 }
  0xd5   :  { %8774 = vst [vmem:[#allocation59_spill] sm:$0xff] %v4837_v41  ;;  %v4866_v46 = vpop.eup %4021  ;;  %v3011_v9 = vsub.f32 1.0, %v2979_v50  ;;  %v693_v7 = vsub.f32 1.0, %v692_v58  ;;  %v4877_v61 = vmul.f32 0.70710677, %v4845_v51  ;;  %v2255_v26 = vmul.f32 %v4855_v31, %v4797_v19 }
  0xd6   :  { %8775 = vst [vmem:[#allocation60_spill] sm:$0xff] %v4849_v36  ;;  %v707_v36 = vmul.f32 %v4837_v41, %v4771_v23  ;;  %v2596_v57 = vadd.f32 -1.4531521, %v2564_v43  ;;  %4025 = vrcp.f32 %v4851_v16  ;;  %v4885_v23 = vadd.f32 %v478_v24, %v4595_v13 }
  0xd7   :  { %8776 = vst [vmem:[#allocation61_spill] sm:$0xff] %v4860_v55  ;;  %v1441_v11 = vmul.f32 %v4678_v34, %v4678_v34  ;;  %v578_v50 = vand.u32 2147483647, %v4860_v55  ;;  %v4891_v58 = vmul.f32 0.70710677, %v4864_v25  ;;  %v4899_v35 = vadd.f32 %v4773_v20, %v1039_v1 }
  0xd8   :  { %8777 = vst [vmem:[#allocation62_spill] sm:$0xff] %v4866_v46  ;;  %v4894_v43 = vand.u32 2147483647, %v4877_v61  ;;  %v4896_v46 = vpop.eup %4023  ;;  %v708_v24 = vsub.f32 1.0, %v707_v36  ;;  %v1450_v13 = vsub.f32 0.0, %v1418_v22  ;;  %v3075_v18 = vsub.f32 0.0, %v3011_v9 }
  0xd9   :  { %8778 = vst [vmem:[#allocation63_spill] sm:$0xff] %v4896_v46  ;;  %4027 = vpow2.f32 %v2926_v45  ;;  %v694_v34 = vmul.f32 %v4825_v38, %v693_v7  ;;  %v4904_v55 = vand.u32 2147483647, %v4874_v54  ;;  %v2628_v17 = vmul.f32 %v2596_v57, %v4829_v32 }
  0xda   :  { %8779 = vst [vmem:[#allocation64_spill] sm:$0xff] %v4899_v35  ;;  %v2256_v62 = vsub.f32 1.0, %v2255_v26  ;;  %v4908_v30 = vmul.f32 0.70710677, %v4885_v23  ;;  %v2024_v1 = vmul.f32 0.3275911, %v4894_v43  ;;  %v4912_v46 = vadd.f32 %v4783_v21, %v1054_v39 }
  0xdb   :  { %v1473_v36 = vsub.f32 0.0, %v1441_v11  ;;  %v610_v22 = vmul.f32 0.3275911, %v578_v50  ;;  %v4915_v45 = vand.u32 2147483647, %v4891_v58  ;;  %v4919_v42 = vor.u32 1.1754944e-38, %v1062_v14 }
  0xdc   :  { %8780 = vst [vmem:[#allocation65_spill] sm:$0xff] %v4908_v30  ;;  %v4917_v7 = vpop.eup %4025  ;;  %v709_v57 = vmul.f32 %v4837_v41, %v708_v24  ;;  %v4922_v26 = vor.u32 1.1754944e-38, %v717_v12  ;;  %v1486_v35 = vmul.f32 1.442695, %v1450_v13  ;;  %v3107_v48 = vsel %vm3043_vm10, %v3075_v18, %v3011_v9  ;;  %v4946_v24 = vpop.permute.xlu0 %136 }
  0xdd   :  { %8781 = vst [vmem:[#allocation66_spill] sm:$0xff] %v4912_v46  ;;  %v4927_v39 = vmul.f32 0.5, %v4655_v63  ;;  %v4930_v11 = vadd.f32 %v4825_v38, %v694_v34  ;;  %v2023_v46 = vmul.f32 0.3275911, %v4904_v55  ;;  %v2660_v21 = vadd.f32 1.4214138, %v2628_v17 }
  0xde   :  { %8782 = vst [vmem:[#allocation67_spill] sm:$0xff] %v4919_v42  ;;  %v2257_v14 = vmul.f32 %v4855_v31, %v2256_v62  ;;  %v4935_v42 = vand.u32 2147483647, %v4908_v30  ;;  %v4937_v12 = vadd.f32 1.0, %v2024_v1  ;;  %v1532_v3 = vmul.f32 1.442695, %v1473_v36  ;;  %v421_v62 = vpop.f32.mrf.mxu0 }
  0xdf   :  { %8783 = vst [vmem:[#allocation68_spill] sm:$0xff] %v4922_v26  ;;  %v4939_v13 = vpop.eup %4027  ;;  %v4941_v18 = vadd.f32 1.0, %v610_v22  ;;  %v2240_v63 = vmul.f32 %v4917_v7, %v4851_v16  ;;  %v2018_v9 = vmul.f32 0.3275911, %v4915_v45  ;;  %4029 = vpow2.f32 %v1486_v35 }
  0xe0   :  { %8784 = vst [vmem:[#allocation69_spill] sm:$0xff] %v4927_v39  ;;  %v1442_v17 = vmul.f32 %v578_v50, %v578_v50  ;;  %vm2260_vm12 = vweird.f32 %v4855_v31  ;;  %v3139_v34 = vadd.f32 1.0, %v3107_v48  ;;  %v2265_v1 = vand.u32 2147483648, %v4797_v19 }
  0xe1   :  { %8785 = vst [vmem:[#allocation70_spill] sm:$0xff] %v4930_v11  ;;  %v4951_v36 = vadd.f32 1.0, %v2023_v46  ;;  %4031 = vrcp.f32 %v4937_v12  ;;  %v2692_v22 = vmul.f32 %v2660_v21, %v4829_v32  ;;  %v2258_v11 = vadd.f32 %v4855_v31, %v2257_v14  ;;  %vm4959_vm13 = vmor %vm2259_vm11, %vm2260_vm12 }
  0xe2   :  { %8786 = vst [vmem:[#allocation71_spill] sm:$0xff] %v4941_v18  ;;  %v2263_v26 = vand.u32 2147483647, %v4797_v19  ;;  %v611_v35 = vmul.f32 0.3275911, %v4935_v42  ;;  %4033 = vrcp.f32 %v4941_v18  ;;  %v2241_v48 = vsub.f32 1.0, %v2240_v63 }
  0xe3   :  { %8787 = vst [vmem:[#allocation72_spill] sm:$0xff] %v4946_v24  ;;  %v4963_v38 = vadd.f32 1.0, %v2018_v9  ;;  %v422_v46 = vadd.f32 %v421_v62, %v4946_v24  ;;  %4035 = vpow2.f32 %v1532_v3  ;;  %v4967_v21 = vadd.f32 %v4837_v41, %v709_v57  ;;  %v481_v3 = vpop.f32.mrf.mxu1 }
  0xe4   :  { %v4970_v14 = vmul.f32 0.5, %v4833_v44  ;;  %v1474_v19 = vsub.f32 0.0, %v1442_v17  ;;  %v4973_v39 = vmul.f32 %v3139_v34, %v4740_v40  ;;  %v4976_v30 = vmul.f32 0.5, %v4695_v6  ;;  %v5008_v50 = vpop.permute.xlu0 %131 }
  0xe5   :  { %8790 = vst [vmem:[#allocation73_spill] sm:$0xff] %v4967_v21  ;;  %v2266_v20 = vor.u32 1.1754944e-38, %v2265_v1  ;;  %4037 = vrcp.f32 %v4951_v36  ;;  %v4979_v63 = vpop.eup %4029  ;;  %v2724_v9 = vadd.f32 -0.28449672, %v2692_v22  ;;  %v2262_v57 = vsel %vm4959_vm13, %v4855_v31, %v2258_v11 }
  0xe6   :  { %8791 = vst [vmem:[#allocation74_spill] sm:$0xff] %v4970_v14  ;;  %vm2264_vm14 = vcmp.eq.f32.partialorder %v2263_v26, 8.507059e+37  ;;  %v4984_v44 = vadd.f32 1.0, %v611_v35  ;;  %v2242_v40 = vmul.f32 %v4917_v7, %v2241_v48  ;;  %4039 = vrcp.f32 %v4963_v38 }
  0xe7   :  { %8792 = vst [vmem:[#allocation75_spill] sm:$0xff] %v4973_v39  ;;  %v4986_v17 = vpop.eup %4031  ;;  %v4990_v6 = vmul.f32 0.5, %v422_v46  ;;  %v4993_v62 = vadd.f32 %v481_v3, %v4575_v2  ;;  %v1077_v34 = vand.u32 2147483648, %v4941_v18  ;;  %v1534_v1 = vmul.f32 1.442695, %v1474_v19 }
  0xe8   :  { %8793 = vst [vmem:[#allocation76_spill] sm:$0xff] %v4979_v63  ;;  %v4996_v22 = vmul.f32 0.70710677, %v422_v46  ;;  %v2285_v31 = vmul.f32 %v4986_v17, %v4937_v12  ;;  %v5000_v26 = vpop.eup %4033  ;;  %v5002_v11 = vsel %vm2264_vm14, %v2266_v20, %v2262_v57  ;;  %v2854_v35 = vmul.f32 %v4734_v8, %v4734_v8 }
  0xe9   :  { %8794 = vst [vmem:[#allocation77_spill] sm:$0xff] %v4984_v44  ;;  %vm2244_vm15 = vweird.f32 %v4851_v16  ;;  %vm2245_vm0 = vweird.f32 %v4917_v7  ;;  %v5010_v48 = vpop.eup %4035  ;;  %v2756_v46 = vmul.f32 %v2724_v9, %v4829_v32  ;;  %v2250_v3 = vand.u32 2147483648, %v4851_v16 }
  0xea   :  { %8795 = vst [vmem:[#allocation78_spill] sm:$0xff] %v4990_v6  ;;  %4041 = vrcp.f32 %v4984_v44  ;;  %v2243_v8 = vadd.f32 %v4917_v7, %v2242_v40  ;;  %v2248_v57 = vand.u32 2147483647, %v4851_v16  ;;  %v5021_v24 = vmul.f32 0.70710677, %v4993_v62  ;;  %vm5028_vm2 = vmor %vm2244_vm15, %vm2245_vm0 }
  0xeb   :  { %8796 = vst [vmem:[#allocation79_spill] sm:$0xff] %v4996_v22  ;;  %v5016_v20 = vpop.eup %4037  ;;  %v2286_v39 = vsub.f32 1.0, %v2285_v31  ;;  %v1067_v6 = vmul.f32 %v5000_v26, %v4941_v18  ;;  %v2566_v9 = vmul.f32 1.0614054, %v5002_v11  ;;  %v1092_v63 = vand.u32 2147483648, %v4984_v44 }
  0xec   :  { %8797 = vst [vmem:[#allocation80_spill] sm:$0xff] %v5000_v26  ;;  %v5035_v40 = vadd.f32 %v4882_v28, %v5008_v50  ;;  %v5037_v21 = vpop.eup %4039  ;;  %v5039_v31 = vor.u32 1.1754944e-38, %v1077_v34  ;;  %4043 = vpow2.f32 %v1534_v1  ;;  %v2886_v41 = vsub.f32 0.0, %v2854_v35 }
  0xed   :  { %8798 = vst [vmem:[#allocation81_spill] sm:$0xff] %v5008_v50  ;;  %v556_v2 = vand.u32 2147483647, %v4996_v22  ;;  %v2251_v16 = vor.u32 1.1754944e-38, %v2250_v3  ;;  %v2270_v18 = vmul.f32 %v5016_v20, %v4951_v36  ;;  %v2247_v28 = vsel %vm5028_vm2, %v4917_v7, %v2243_v8 }
  0xee   :  { %8799 = vst [vmem:[#allocation82_spill] sm:$0xff] %v5010_v48  ;;  %v2788_v48 = vadd.f32 0.2548296, %v2756_v46  ;;  %vm2249_vm3 = vcmp.eq.f32.partialorder %v2248_v57, 8.507059e+37  ;;  %v5049_v50 = vand.u32 2147483647, %v5021_v24  ;;  %v2287_v34 = vmul.f32 %v4986_v17, %v2286_v39 }
  0xef   :  { %8800 = vst [vmem:[#allocation83_spill] sm:$0xff] %v5021_v24  ;;  %v1068_v35 = vsub.f32 1.0, %v1067_v6  ;;  %v2598_v46 = vadd.f32 -1.4531521, %v2566_v9  ;;  %v2195_v3 = vmul.f32 %v5037_v21, %v4963_v38  ;;  %v5056_v14 = vor.u32 1.1754944e-38, %v1092_v63 }
  0xf0   :  { %8803 = vst [vmem:[#allocation84_spill] sm:$0xff] %v5039_v31  ;;  %v5052_v1 = vpop.eup %4041  ;;  %v2930_v22 = vmul.f32 1.442695, %v2886_v41  ;;  %v588_v31 = vmul.f32 0.3275911, %v556_v2  ;;  %vm2289_vm4 = vweird.f32 %v4937_v12  ;;  %vm2290_vm5 = vweird.f32 %v4986_v17 }
  0xf1   :  { %8804 = vst [vmem:[#allocation85_spill] sm:$0xff] %v5056_v14  ;;  %v2820_v7 = vmul.f32 %v2788_v48, %v4829_v32  ;;  %v5061_v19 = vsel %vm2249_vm3, %v2251_v16, %v2247_v28  ;;  %v2271_v39 = vsub.f32 1.0, %v2270_v18  ;;  %v2295_v8 = vand.u32 2147483648, %v4937_v12  ;;  %vm5074_vm6 = vmor %vm2289_vm4, %vm2290_vm5 }
  0xf2   :  { %v5064_v6 = vpop.eup %4043  ;;  %v1082_v57 = vmul.f32 %v5052_v1, %v4984_v44  ;;  %v612_v63 = vmul.f32 0.3275911, %v5049_v50  ;;  %v2288_v41 = vadd.f32 %v4986_v17, %v2287_v34  ;;  %v2293_v9 = vand.u32 2147483647, %v4937_v12 }
  0xf3   :  { %8805 = vst [vmem:[#allocation86_spill] sm:$0xff] %v5064_v6  ;;  %v2630_v24 = vmul.f32 %v2598_v46, %v5002_v11  ;;  %v2196_v14 = vsub.f32 1.0, %v2195_v3  ;;  %v5072_v32 = vmul.f32 %v556_v2, %v556_v2  ;;  %v5079_v48 = vmul.f32 0.5, %v5035_v40 }
  0xf4   :  { %v1069_v16 = vmul.f32 %v5000_v26, %v1068_v35  ;;  %4045 = vpow2.f32 %v2930_v22  ;;  %v2565_v28 = vmul.f32 1.0614054, %v5061_v19  ;;  %v5083_v34 = vadd.f32 1.0, %v588_v31 }
  0xf5   :  { %8808 = vst [vmem:[#allocation87_spill] sm:$0xff] %v5079_v48  ;;  %v5086_v12 = vmul.f32 %v4939_v13, %v2820_v7  ;;  %v1443_v2 = vmul.f32 %v4935_v42, %v4935_v42  ;;  %v2272_v46 = vmul.f32 %v5016_v20, %v2271_v39  ;;  %v2296_v3 = vor.u32 1.1754944e-38, %v2295_v8  ;;  %v103_v7 = vld [vmem:[%s8515_s4] sm:$0xff] }
  0xf6   :  { %8809 = vst [vmem:[#allocation88_spill] sm:$0xff] %v5083_v34  ;;  %v1083_v6 = vsub.f32 1.0, %v1082_v57  ;;  %v5091_v44 = vadd.f32 1.0, %v612_v63  ;;  %v2292_v22 = vsel %vm5074_vm6, %v4986_v17, %v2288_v41  ;;  %vm2294_vm7 = vcmp.eq.f32.partialorder %v2293_v9, 8.507059e+37  ;;  %1818 = vperm.xlu2 %3995, %v103_v7  }
  0xf7   :  { %v2662_v35 = vadd.f32 1.4214138, %v2630_v24  ;;  %v2197_v31 = vmul.f32 %v5037_v21, %v2196_v14  ;;  %vm2274_vm8 = vweird.f32 %v4951_v36  ;;  %vm2275_vm9 = vweird.f32 %v5016_v20 }
  0xf8   :  { %vm3044_vm10 = vcmp.lt.f32.partialorder %v4626_v33, 0.0  ;;  %v2597_v42 = vadd.f32 -1.4531521, %v2565_v28  ;;  %vm2199_vm11 = vweird.f32 %v4963_v38  ;;  %v2280_v13 = vand.u32 2147483648, %v4951_v36  ;;  %vm5122_vm13 = vmor %vm2274_vm8, %vm2275_vm9 }
  0xf9   :  { %4047 = vrcp.f32 %v5083_v34  ;;  %vm2200_vm12 = vweird.f32 %v5037_v21  ;;  %v2273_v17 = vadd.f32 %v5016_v20, %v2272_v46  ;;  %v2278_v24 = vand.u32 2147483647, %v4951_v36 }
  0xfa   :  { %v5106_v14 = vsel %vm2294_vm7, %v2296_v3, %v2292_v22  ;;  %v5111_v39 = vpop.eup %4045  ;;  %v3012_v8 = vsub.f32 1.0, %v5086_v12  ;;  %v5115_v57 = vadd.f32 %v5000_v26, %v1069_v16  ;;  %v2205_v63 = vand.u32 2147483648, %v4963_v38  ;;  %vm5135_vm14 = vmor %vm2199_vm11, %vm2200_vm12  ;;  %v1871_v22 = vpop.f32.mrf.mxu3 }
  0xfb   :  { %v1475_v41 = vsub.f32 0.0, %v1443_v2  ;;  %v2694_v18 = vmul.f32 %v2662_v35, %v5002_v11  ;;  %v2198_v28 = vadd.f32 %v5037_v21, %v2197_v31  ;;  %v2203_v12 = vand.u32 2147483647, %v4963_v38  ;;  %v5144_v31 = vpop.permute.xlu1 %141 }
  0xfc   :  { %8810 = vst [vmem:[#allocation89_spill] sm:$0xff] %v5115_v57  ;;  %4049 = vrcp.f32 %v5091_v44  ;;  %v2629_v16 = vmul.f32 %v2597_v42, %v5061_v19  ;;  %v1084_v2 = vmul.f32 %v5052_v1, %v1083_v6  ;;  %v2281_v46 = vor.u32 1.1754944e-38, %v2280_v13 }
  0xfd   :  { %v2568_v3 = vmul.f32 1.0614054, %v5106_v14  ;;  %v2277_v35 = vsel %vm5122_vm13, %v5016_v20, %v2273_v17  ;;  %vm2279_vm15 = vcmp.eq.f32.partialorder %v2278_v24, 8.507059e+37  ;;  %8815 = vst [vmem:[#allocation90_spill] sm:$0xff] %v5144_v31  ;;  %v1452_v42 = vsub.f32 0.0, %v5072_v32 }
  0xfe   :  { %v5148_v38 = vadd.f32 %v1871_v22, %v4558_v60  ;;  %v2206_v48 = vor.u32 1.1754944e-38, %v2205_v63  ;;  %v1536_v6 = vmul.f32 1.442695, %v1475_v41  ;;  %v747_v57 = vand.u32 2147483648, %v5083_v34 }
  0xff   :  { %v5150_v7 = vpop.eup %4047  ;;  %v3076_v26 = vsub.f32 0.0, %v3012_v8  ;;  %v2726_v0 = vadd.f32 -0.28449672, %v2694_v18  ;;  %v2202_v20 = vsel %vm5135_vm14, %v5037_v21, %v2198_v28  ;;  %vm2204_vm0 = vcmp.eq.f32.partialorder %v2203_v12, 8.507059e+37 }
 0x100   :  { %8816 = vst [vmem:[#allocation91_spill] sm:$0xff] %v5150_v7  ;;  %v2661_v17 = vadd.f32 1.4214138, %v2629_v16  ;;  %v5158_v32 = vadd.f32 %v5052_v1, %v1084_v2  ;;  %v5160_v24 = vsel %vm2279_vm15, %v2281_v46, %v2277_v35  ;;  %v2600_v9 = vadd.f32 -1.4531521, %v2568_v3 }
 0x101   :  { %v737_v41 = vmul.f32 %v5150_v7, %v5083_v34  ;;  %v1490_v22 = vmul.f32 1.442695, %v1452_v42  ;;  %v1444_v18 = vmul.f32 %v5049_v50, %v5049_v50  ;;  %v5169_v36 = vmul.f32 0.70710677, %v5148_v38 }
 0x102   :  { %v5162_v63 = vpop.eup %4049  ;;  %v2853_v21 = vmul.f32 %v4805_v29, %v4805_v29  ;;  %v5173_v28 = vsel %vm2204_vm0, %v2206_v48, %v2202_v20  ;;  %4051 = vpow2.f32 %v1536_v6  ;;  %v5176_v12 = vmul.f32 0.70710677, %v5035_v40 }
 0x103   :  { %v3108_v16 = vsel %vm3044_vm10, %v3076_v26, %v3012_v8  ;;  %v2758_v2 = vmul.f32 %v2726_v0, %v5002_v11  ;;  %v2567_v46 = vmul.f32 1.0614054, %v5160_v24  ;;  %v5183_v50 = vand.u32 2147483647, %v5169_v36  ;;  %v5197_v13 = vpop.permute.xlu1 %116 }
 0x104   :  { %8817 = vst [vmem:[#allocation92_spill] sm:$0xff] %v5176_v12  ;;  %v2693_v3 = vmul.f32 %v2661_v17, %v5061_v19  ;;  %v5186_v35 = vor.u32 1.1754944e-38, %v747_v57  ;;  %v1097_v29 = vmul.f32 %v5162_v63, %v5091_v44  ;;  %v2632_v40 = vmul.f32 %v2600_v9, %v5106_v14 }
 0x105   :  { %v2562_v48 = vmul.f32 1.0614054, %v5173_v28  ;;  %v738_v33 = vsub.f32 1.0, %v737_v41  ;;  %v1476_v26 = vsub.f32 0.0, %v1444_v18  ;;  %v2025_v0 = vmul.f32 0.3275911, %v5183_v50 }
 0x106   :  { %8818 = vst [vmem:[#allocation93_spill] sm:$0xff] %v5186_v35  ;;  %v3140_v8 = vadd.f32 1.0, %v3108_v16  ;;  %v5194_v42 = vmul.f32 0.5, %v4745_v53  ;;  %v2885_v6 = vsub.f32 0.0, %v2853_v21  ;;  %v555_v20 = vand.u32 2147483647, %v5176_v12 }
 0x107   :  { %v2790_v57 = vadd.f32 0.2548296, %v2758_v2  ;;  %v2599_v17 = vadd.f32 -1.4531521, %v2567_v46  ;;  %4053 = vpow2.f32 %v1490_v22  ;;  %8819 = vst [vmem:[#allocation94_spill] sm:$0xff] %v5197_v13  ;;  %v5199_v35 = vadd.f32 1.0, %v2025_v0 }
 0x108   :  { %v5201_v9 = vpop.eup %4051  ;;  %v2725_v41 = vadd.f32 -0.28449672, %v2693_v3  ;;  %v1098_v18 = vsub.f32 1.0, %v1097_v29  ;;  %v1107_v34 = vand.u32 2147483648, %v5091_v44  ;;  %v2664_v16 = vadd.f32 1.4214138, %v2632_v40 }
 0x109   :  { %v2594_v60 = vadd.f32 -1.4531521, %v2562_v48  ;;  %v739_v53 = vmul.f32 %v5150_v7, %v738_v33  ;;  %v1538_v21 = vmul.f32 1.442695, %v1476_v26  ;;  %4055 = vrcp.f32 %v5199_v35 }
 0x10a   :  { %v5207_v2 = vmul.f32 %v3140_v8, %v4810_v47  ;;  %v2928_v22 = vmul.f32 1.442695, %v2885_v6  ;;  %v1419_v46 = vmul.f32 %v555_v20, %v555_v20  ;;  %v5211_v0 = vadd.f32 %v4618_v27, %v5197_v13 }
 0x10b   :  { %v2822_v3 = vmul.f32 %v2790_v57, %v5002_v11  ;;  %v2631_v29 = vmul.f32 %v2599_v17, %v5160_v24  ;;  %v2856_v40 = vmul.f32 %v4894_v43, %v4894_v43  ;;  %v587_v48 = vmul.f32 0.3275911, %v555_v20 }
 0x10c   :  { %8820 = vst [vmem:[#allocation95_spill] sm:$0xff] %v5207_v2  ;;  %v2757_v33 = vmul.f32 %v2725_v41, %v5061_v19  ;;  %v1099_v26 = vmul.f32 %v5162_v63, %v1098_v18  ;;  %v2696_v8 = vmul.f32 %v2664_v16, %v5106_v14  ;;  %v2626_v27 = vmul.f32 %v2594_v60, %v5173_v28 }
 0x10d   :  { %v5221_v6 = vpop.eup %4053  ;;  %v5225_v11 = vadd.f32 %v5150_v7, %v739_v53  ;;  %v5227_v57 = vor.u32 1.1754944e-38, %v1107_v34  ;;  %4057 = vpow2.f32 %v1538_v21  ;;  %v5230_v43 = vmul.f32 0.5, %v4885_v23 }
 0x10e   :  { %8821 = vst [vmem:[#allocation96_spill] sm:$0xff] %v5221_v6  ;;  %4059 = vpow2.f32 %v2928_v22  ;;  %v5233_v20 = vmul.f32 0.5, %v4993_v62  ;;  %v1451_v17 = vsub.f32 0.0, %v1419_v46  ;;  %v2982_v18 = vmul.f32 %v5111_v39, %v2822_v3 }
 0x10f   :  { %8822 = vst [vmem:[#allocation97_spill] sm:$0xff] %v5225_v11  ;;  %v4056_v41 = vpop.eup %4055  ;;  %v2663_v16 = vadd.f32 1.4214138, %v2631_v29  ;;  %v2888_v47 = vsub.f32 0.0, %v2856_v40  ;;  %v5236_v60 = vadd.f32 1.0, %v587_v48  ;;  %vm3046_vm2 = vcmp.lt.f32.partialorder %v4715_v4, 0.0 }
 0x110   :  { %v2789_v34 = vadd.f32 0.2548296, %v2757_v33  ;;  %v5240_v53 = vadd.f32 %v5162_v63, %v1099_v26  ;;  %v2728_v21 = vadd.f32 -0.28449672, %v2696_v8  ;;  %v2300_v23 = vmul.f32 %v4056_v41, %v5199_v35 }
 0x111   :  { %8823 = vst [vmem:[#allocation98_spill] sm:$0xff] %v5236_v60  ;;  %v2658_v22 = vadd.f32 1.4214138, %v2626_v27  ;;  %v2850_v62 = vmul.f32 %v4915_v45, %v4915_v45  ;;  %v2855_v39 = vmul.f32 %v4904_v55, %v4904_v55  ;;  %v2310_v46 = vand.u32 2147483648, %v5199_v35  ;;  %v1874_v45 = vpop.f32.mrf.mxu3 }
 0x112   :  { %v2301_v3 = vsub.f32 1.0, %v2300_v23  ;;  %vm2304_vm3 = vweird.f32 %v5199_v35  ;;  %vm2305_vm4 = vweird.f32 %v4056_v41  ;;  %v2308_v29 = vand.u32 2147483647, %v5199_v35 }
 0x113   :  { %v5250_v40 = vpop.eup %4057  ;;  %v3014_v48 = vsub.f32 1.0, %v2982_v18  ;;  %v2695_v33 = vmul.f32 %v2663_v16, %v5160_v24  ;;  %v2934_v26 = vmul.f32 1.442695, %v2888_v47  ;;  %4061 = vrcp.f32 %v5236_v60  ;;  %vm5263_vm5 = vmor %vm2304_vm3, %vm2305_vm4 }
 0x114   :  { %v4060_v8 = vpop.eup %4059  ;;  %v2821_v55 = vmul.f32 %v2789_v34, %v5061_v19  ;;  %v2760_v27 = vmul.f32 %v2728_v21, %v5106_v14  ;;  %v1488_v23 = vmul.f32 1.442695, %v1451_v17  ;;  %v2302_v13 = vmul.f32 %v4056_v41, %v2301_v3 }
 0x115   :  { %v2690_v2 = vmul.f32 %v2658_v22, %v5173_v28  ;;  %v2882_v12 = vsub.f32 0.0, %v2850_v62  ;;  %v5258_v6 = vmul.f32 0.70710677, %v5211_v0  ;;  %v2311_v18 = vor.u32 1.1754944e-38, %v2310_v46 }
 0x116   :  { %v2887_v16 = vsub.f32 0.0, %v2855_v39  ;;  %v2303_v19 = vadd.f32 %v4056_v41, %v2302_v13  ;;  %vm2309_vm6 = vcmp.eq.f32.partialorder %v2308_v29, 8.507059e+37  ;;  %v2857_v17 = vmul.f32 %v5183_v50, %v5183_v50 }
 0x117   :  { %8824 = vst [vmem:[#allocation99_spill] sm:$0xff] %v5258_v6  ;;  %v3078_v34 = vsub.f32 0.0, %v3014_v48  ;;  %v2727_v21 = vadd.f32 -0.28449672, %v2695_v33  ;;  %4063 = vpow2.f32 %v2934_v26  ;;  %v5270_v22 = vadd.f32 %v1874_v45, %v4556_v59 }
 0x118   :  { %v2981_v62 = vmul.f32 %v4060_v8, %v2821_v55  ;;  %v5273_v35 = vmul.f32 0.5, %v4864_v25  ;;  %v2792_v3 = vadd.f32 0.2548296, %v2760_v27  ;;  %v2307_v46 = vsel %vm5263_vm5, %v4056_v41, %v2303_v19  ;;  %v423_v8 = vpop.f32.mrf.mxu0 }
 0x119   :  { %v5277_v39 = vpop.eup %4061  ;;  %vm3045_vm7 = vcmp.lt.f32.partialorder %v4765_v52, 0.0  ;;  %v2722_v13 = vadd.f32 -0.28449672, %v2690_v2  ;;  %v2922_v50 = vmul.f32 1.442695, %v2882_v12  ;;  %v5281_v33 = vsel %vm2309_vm6, %v2311_v18, %v2307_v46 }
 0x11a   :  { %8827 = vst [vmem:[#allocation100_spill] sm:$0xff] %v5277_v39  ;;  %v552_v29 = vand.u32 2147483647, %v5258_v6  ;;  %v2932_v26 = vmul.f32 1.442695, %v2887_v16  ;;  %v732_v45 = vand.u32 2147483648, %v5236_v60  ;;  %v3110_v41 = vsel %vm3046_vm2, %v3078_v34, %v3014_v48 }
 0x11b   :  { %v2569_v25 = vmul.f32 1.0614054, %v5281_v33  ;;  %v2889_v55 = vsub.f32 0.0, %v2857_v17  ;;  %v2759_v27 = vmul.f32 %v2727_v21, %v5160_v24  ;;  %4065 = vpow2.f32 %v1488_v23  ;;  %v1876_v23 = vpop.f32.mrf.mxu3 }
 0x11c   :  { %v5289_v2 = vmul.f32 0.70710677, %v5270_v22  ;;  %v3013_v12 = vsub.f32 1.0, %v2981_v62  ;;  %v2824_v47 = vmul.f32 %v2792_v3, %v5106_v14  ;;  %v722_v18 = vmul.f32 %v5277_v39, %v5236_v60  ;;  %v8866_v60 = vld [vmem:[#allocation43_spill] sm:$0xff] }
 0x11d   :  { %v2601_v16 = vadd.f32 -1.4531521, %v2569_v25  ;;  %v4064_v19 = vpop.eup %4063  ;;  %v2754_v46 = vmul.f32 %v2722_v13, %v5173_v28  ;;  %v584_v17 = vmul.f32 0.3275911, %v552_v29  ;;  %v424_v4 = vadd.f32 %v423_v8, %v5144_v31 }
 0x11e   :  { %v5297_v48 = vand.u32 2147483647, %v5289_v2  ;;  %4067 = vpow2.f32 %v2932_v26  ;;  %v2936_v21 = vmul.f32 1.442695, %v2889_v55  ;;  %v5301_v14 = vadd.f32 %v1876_v23, %v4643_v49  ;;  %v483_v55 = vpop.f32.mrf.mxu1 }
 0x11f   :  { %v2633_v34 = vmul.f32 %v2601_v16, %v5281_v33  ;;  %v3142_v62 = vadd.f32 1.0, %v3110_v41  ;;  %4069 = vpow2.f32 %v2922_v50  ;;  %v2791_v3 = vadd.f32 0.2548296, %v2759_v27 }
 0x120   :  { %v2026_v25 = vmul.f32 0.3275911, %v5297_v48  ;;  %v3077_v13 = vsub.f32 0.0, %v3013_v12  ;;  %v2984_v6 = vmul.f32 %v4064_v19, %v2824_v47  ;;  %v723_v11 = vsub.f32 1.0, %v722_v18 }
 0x121   :  { %v2665_v8 = vadd.f32 1.4214138, %v2633_v34  ;;  %v5304_v31 = vpop.eup %4065  ;;  %v2786_v7 = vadd.f32 0.2548296, %v2754_v46  ;;  %v5306_v59 = vadd.f32 1.0, %v584_v17  ;;  %4071 = vpow2.f32 %v2936_v21 }
 0x122   :  { %8828 = vst [vmem:[#allocation101_spill] sm:$0xff] %v5304_v31  ;;  %v5308_v26 = vmul.f32 0.70710677, %v424_v4  ;;  %v5310_v16 = vadd.f32 1.0, %v2026_v25  ;;  %v5315_v27 = vmul.f32 0.70710677, %v5301_v14  ;;  %v5318_v47 = vmul.f32 %v3142_v62, %v4976_v30 }
 0x123   :  { %8829 = vst [vmem:[#allocation102_spill] sm:$0xff] %v5306_v59  ;;  %v2697_v50 = vmul.f32 %v2665_v8, %v5281_v33  ;;  %v2823_v18 = vmul.f32 %v2791_v3, %v5160_v24  ;;  %v5321_v19 = vor.u32 1.1754944e-38, %v732_v45  ;;  %v3109_v17 = vsel %vm3045_vm7, %v3077_v13, %v3013_v12  ;;  %v5333_v45 = vpop.f32.mrf.mxu0 }
 0x124   :  { %8830 = vst [vmem:[#allocation103_spill] sm:$0xff] %v5308_v26  ;;  %4073 = vrcp.f32 %v5310_v16  ;;  %v4068_v46 = vpop.eup %4067  ;;  %v3016_v23 = vsub.f32 1.0, %v2984_v6  ;;  %v5327_v34 = vadd.f32 %v483_v55, %v4583_v5  ;;  %v2818_v8 = vmul.f32 %v2786_v7, %v5173_v28 }
 0x125   :  { %8831 = vst [vmem:[#allocation104_spill] sm:$0xff] %v5318_v47  ;;  %v2729_v21 = vadd.f32 -0.28449672, %v2697_v50  ;;  %v4070_v25 = vpop.eup %4069  ;;  %v724_v30 = vmul.f32 %v5277_v39, %v723_v11  ;;  %4075 = vrcp.f32 %v5306_v59  ;;  %v557_v24 = vand.u32 2147483647, %v5308_v26  ;;  %v5372_v47 = vpop.permute.xlu1 %111 }
 0x126   :  { %8832 = vst [vmem:[#allocation105_spill] sm:$0xff] %v5321_v19  ;;  %v5336_v62 = vmul.f32 0.5, %v4842_v37  ;;  %v1416_v52 = vmul.f32 %v552_v29, %v552_v29  ;;  %v5340_v12 = vand.u32 2147483647, %v5315_v27  ;;  %v3141_v3 = vadd.f32 1.0, %v3109_v17 }
 0x127   :  { %v2761_v6 = vmul.f32 %v2729_v21, %v5281_v33  ;;  %v5342_v13 = vmul.f32 %v4068_v46, %v2823_v18  ;;  %v1928_v7 = vmul.f32 0.5, %v4845_v51  ;;  %vm3048_vm8 = vcmp.lt.f32.partialorder %v4877_v61, 0.0  ;;  %v4072_v28 = vpop.eup %4071  ;;  %8838 = vst [vmem:[#allocation111_spill] sm:$0xff] %v5372_v47  ;;  %v5390_v61 = vpop.permute.xlu0 %106 }
 0x128   :  { %v3080_v11 = vsub.f32 0.0, %v3016_v23  ;;  %v5347_v55 = vmul.f32 0.5, %v5211_v0  ;;  %v5350_v37 = vmul.f32 0.70710677, %v5327_v34  ;;  %v2978_v21 = vmul.f32 %v4070_v25, %v2818_v8  ;;  %8840 = vst [vmem:[#allocation113_spill] sm:$0xff] %v5390_v61 }
 0x129   :  { %v2793_v29 = vadd.f32 0.2548296, %v2761_v6  ;;  %v5355_v17 = vadd.f32 %v5277_v39, %v724_v30  ;;  %v589_v18 = vmul.f32 0.3275911, %v557_v24  ;;  %v2027_v51 = vmul.f32 0.3275911, %v5340_v12 }
 0x12a   :  { %8833 = vst [vmem:[#allocation106_spill] sm:$0xff] %v5347_v55  ;;  %v5352_v50 = vpop.eup %4073  ;;  %vm3047_vm9 = vcmp.lt.f32.partialorder %v4874_v54, 0.0  ;;  %v1448_v46 = vsub.f32 0.0, %v1416_v52  ;;  %v5359_v41 = vmul.f32 0.5, %v424_v4  ;;  %v5367_v25 = vmul.f32 %v3141_v3, %v5194_v42 }
 0x12b   :  { %8834 = vst [vmem:[#allocation107_spill] sm:$0xff] %v5355_v17  ;;  %v2825_v0 = vmul.f32 %v2793_v29, %v5281_v33  ;;  %v2315_v55 = vmul.f32 %v5352_v50, %v5310_v16  ;;  %v5364_v6 = vpop.eup %4075  ;;  %vm3042_vm10 = vcmp.lt.f32.partialorder %v4891_v58, 0.0  ;;  %v3015_v8 = vsub.f32 1.0, %v5342_v13 }
 0x12c   :  { %8835 = vst [vmem:[#allocation108_spill] sm:$0xff] %v5359_v41  ;;  %v5374_v4 = vadd.f32 1.0, %v2027_v51  ;;  %v3112_v33 = vsel %vm3048_vm8, %v3080_v11, %v3016_v23  ;;  %v5379_v52 = vand.u32 2147483647, %v5350_v37  ;;  %v3010_v42 = vsub.f32 1.0, %v2978_v21 }
 0x12d   :  { %8836 = vst [vmem:[#allocation109_spill] sm:$0xff] %v5364_v6  ;;  %v2985_v29 = vmul.f32 %v4072_v28, %v2825_v0  ;;  %v2316_v41 = vsub.f32 1.0, %v2315_v55  ;;  %v687_v3 = vand.u32 2147483648, %v5306_v59  ;;  %v1421_v13 = vmul.f32 %v557_v24, %v557_v24  ;;  %v428_v55 = vpop.f32.mrf.mxu0 }
 0x12e   :  { %8837 = vst [vmem:[#allocation110_spill] sm:$0xff] %v5367_v25  ;;  %v5382_v25 = vadd.f32 1.0, %v589_v18  ;;  %v677_v30 = vmul.f32 %v5364_v6, %v5306_v59  ;;  %v5388_v51 = vadd.f32 %v4598_v15, %v5372_v47  ;;  %v3079_v28 = vsub.f32 0.0, %v3015_v8 }
 0x12f   :  { %v3017_v31 = vsub.f32 1.0, %v2985_v29  ;;  %v2317_v23 = vmul.f32 %v5352_v50, %v2316_v41  ;;  %v3144_v11 = vadd.f32 1.0, %v3112_v33  ;;  %vm3049_vm11 = vcmp.lt.f32.partialorder %v5169_v36, 0.0 }
 0x130   :  { %8839 = vst [vmem:[#allocation112_spill] sm:$0xff] %v5382_v25  ;;  %4077 = vrcp.f32 %v5374_v4  ;;  %v613_v24 = vmul.f32 0.3275911, %v5379_v52  ;;  %vm2319_vm12 = vweird.f32 %v5310_v16  ;;  %vm2320_vm13 = vweird.f32 %v5352_v50 }
 0x131   :  { %v3081_v21 = vsub.f32 0.0, %v3017_v31  ;;  %v3074_v15 = vsub.f32 0.0, %v3010_v42  ;;  %v1929_v18 = vmul.f32 0.5, %v5148_v38  ;;  %v5401_v41 = vadd.f32 %v4591_v10, %v5390_v61  ;;  %vm5415_vm14 = vmor %vm2319_vm12, %vm2320_vm13 }
 0x132   :  { %v2325_v0 = vand.u32 2147483648, %v5310_v16  ;;  %v5405_v33 = vmul.f32 0.70710677, %v5388_v51  ;;  %v2318_v29 = vadd.f32 %v5352_v50, %v2317_v23  ;;  %v2323_v47 = vand.u32 2147483647, %v5310_v16 }
 0x133   :  { %v3113_v36 = vsel %vm3049_vm11, %v3081_v21, %v3017_v31  ;;  %v5409_v26 = vmul.f32 %v3144_v11, %v1928_v7  ;;  %v1482_v19 = vmul.f32 1.442695, %v1448_v46  ;;  %v5413_v38 = vadd.f32 %v5333_v45, %v4853_v56  ;;  %v1879_v11 = vpop.f32.mrf.mxu3 }
 0x134   :  { %8841 = vst [vmem:[#allocation114_spill] sm:$0xff] %v5405_v33  ;;  %v3145_v17 = vadd.f32 1.0, %v3113_v36  ;;  %v678_v31 = vsub.f32 1.0, %v677_v30  ;;  %4079 = vrcp.f32 %v5382_v25  ;;  %v1453_v21 = vsub.f32 0.0, %v1421_v13 }
 0x135   :  { %8842 = vst [vmem:[#allocation115_spill] sm:$0xff] %v5409_v26  ;;  %v5420_v61 = vadd.f32 1.0, %v613_v24  ;;  %v3111_v16 = vsel %vm3047_vm9, %v3079_v28, %v3015_v8  ;;  %v5429_v56 = vmul.f32 0.70710677, %v5401_v41  ;;  %v2326_v45 = vor.u32 1.1754944e-38, %v2325_v0  ;;  %v8848_v8 = vld [vmem:[#allocation13_spill] sm:$0xff] }
 0x136   :  { %v5422_v23 = vpop.eup %4077  ;;  %v5426_v7 = vmul.f32 %v3145_v17, %v1929_v18  ;;  %v3106_v46 = vsel %vm3042_vm10, %v3074_v15, %v3010_v42  ;;  %v551_v30 = vand.u32 2147483647, %v5405_v33  ;;  %v2322_v13 = vsel %vm5415_vm14, %v5352_v50, %v2318_v29  ;;  %v8849_v24 = vld [vmem:[#allocation23_spill] sm:$0xff] }
 0x137   :  { %8846 = vst [vmem:[#allocation117_spill] sm:$0xff] %v5429_v56  ;;  %vm2324_vm15 = vcmp.eq.f32.partialorder %v2323_v47, 8.507059e+37  ;;  %v5440_v17 = vmul.f32 0.70710677, %v5413_v38  ;;  %v5443_v28 = vadd.f32 %v428_v55, %v8848_v8  ;;  %v5446_v58 = vadd.f32 %v1879_v11, %v8849_v24  ;;  %v431_v55 = vpop.f32.mrf.mxu0 }
 0x138   :  { %8845 = vst [vmem:[#allocation116_spill] sm:$0xff] %v5426_v7  ;;  %v5448_v42 = vor.u32 1.1754944e-38, %v687_v3  ;;  %v762_v15 = vand.u32 2147483648, %v5382_v25  ;;  %4081 = vrcp.f32 %v5420_v61  ;;  %v2330_v47 = vmul.f32 %v5422_v23, %v5374_v4 }
 0x139   :  { %8847 = vst [vmem:[#allocation118_spill] sm:$0xff] %v5440_v17  ;;  %v3143_v50 = vadd.f32 1.0, %v3111_v16  ;;  %v1492_v18 = vmul.f32 1.442695, %v1453_v21  ;;  %v550_v0 = vand.u32 2147483647, %v5429_v56  ;;  %v5455_v36 = vsel %vm2324_vm15, %v2326_v45, %v2322_v13 }
 0x13a   :  { %8850 = vst [vmem:[#allocation13_spill] sm:$0xff] %v5448_v42  ;;  %v5457_v29 = vpop.eup %4079  ;;  %v3138_v10 = vadd.f32 1.0, %v3106_v46  ;;  %v679_v3 = vmul.f32 %v5364_v6, %v678_v31  ;;  %v1445_v11 = vmul.f32 %v5379_v52, %v5379_v52  ;;  %v583_v8 = vmul.f32 0.3275911, %v551_v30 }
 0x13b   :  { %8851 = vst [vmem:[#allocation119_spill] sm:$0xff] %v5457_v29  ;;  %4083 = vpow2.f32 %v1482_v19  ;;  %v5463_v54 = vand.u32 2147483647, %v5440_v17  ;;  %v5466_v21 = vmul.f32 0.70710677, %v5443_v28  ;;  %v5473_v46 = vmul.f32 0.5, %v5327_v34 }
 0x13c   :  { %v5469_v16 = vmul.f32 0.70710677, %v5446_v58  ;;  %v2570_v31 = vmul.f32 1.0614054, %v5455_v36  ;;  %v2331_v13 = vsub.f32 1.0, %v2330_v47  ;;  %v752_v19 = vmul.f32 %v5457_v29, %v5382_v25 }
 0x13d   :  { %8852 = vst [vmem:[#allocation120_spill] sm:$0xff] %v5466_v21  ;;  %v5478_v52 = vor.u32 1.1754944e-38, %v762_v15  ;;  %4085 = vpow2.f32 %v1492_v18  ;;  %v582_v26 = vmul.f32 0.3275911, %v550_v0  ;;  %v5483_v33 = vmul.f32 %v3143_v50, %v5336_v62 }
 0x13e   :  { %v5480_v7 = vpop.eup %4081  ;;  %v5486_v45 = vadd.f32 %v5364_v6, %v679_v3  ;;  %v1477_v34 = vsub.f32 0.0, %v1445_v11  ;;  %v5488_v56 = vadd.f32 1.0, %v583_v8  ;;  %v5491_v47 = vmul.f32 %v3138_v10, %v5273_v35 }
 0x13f   :  { %8853 = vst [vmem:[#allocation121_spill] sm:$0xff] %v5478_v52  ;;  %v590_v42 = vmul.f32 0.3275911, %v5463_v54  ;;  %v5495_v15 = vand.u32 2147483647, %v5466_v21  ;;  %v2332_v3 = vmul.f32 %v5422_v23, %v2331_v13  ;;  %v753_v35 = vsub.f32 1.0, %v752_v19  ;;  %v433_v62 = vpop.f32.mrf.mxu0 }
 0x140   :  { %8854 = vst [vmem:[#allocation122_spill] sm:$0xff] %v5483_v33  ;;  %v5498_v18 = vand.u32 2147483647, %v5469_v16  ;;  %v2602_v50 = vadd.f32 -1.4531521, %v2570_v31  ;;  %v8858_v33 = vld [vmem:[#allocation12_spill] sm:$0xff]  ;;  %v1112_v10 = vmul.f32 %v5480_v7, %v5420_v61  ;;  %4087 = vrcp.f32 %v5488_v56 }
 0x141   :  { %8855 = vst [vmem:[#allocation123_spill] sm:$0xff] %v5486_v45  ;;  %v5503_v11 = vadd.f32 %v431_v55, %v8858_v33  ;;  %v5505_v8 = vpop.eup %4083  ;;  %v5510_v45 = vadd.f32 1.0, %v582_v26  ;;  %v1415_v21 = vmul.f32 %v551_v30, %v551_v30  ;;  %vm2334_vm0 = vweird.f32 %v5374_v4 }
 0x142   :  { %8856 = vst [vmem:[#allocation124_spill] sm:$0xff] %v5488_v56  ;;  %vm2335_vm2 = vweird.f32 %v5422_v23  ;;  %v5517_v33 = vadd.f32 1.0, %v590_v42  ;;  %v591_v55 = vmul.f32 0.3275911, %v5495_v15  ;;  %v2340_v13 = vand.u32 2147483648, %v5374_v4 }
 0x143   :  { %8857 = vst [vmem:[#allocation125_spill] sm:$0xff] %v5491_v47  ;;  %v1122_v47 = vand.u32 2147483648, %v5420_v61  ;;  %v5515_v31 = vpop.eup %4085  ;;  %v2028_v19 = vmul.f32 0.3275911, %v5498_v18  ;;  %v2634_v26 = vmul.f32 %v2602_v50, %v5455_v36  ;;  %v2338_v30 = vand.u32 2147483647, %v5374_v4  ;;  %vm5535_vm3 = vmor %vm2334_vm0, %vm2335_vm2 }
 0x144   :  { %8859 = vst [vmem:[#allocation12_spill] sm:$0xff] %v5505_v8  ;;  %v2333_v8 = vadd.f32 %v5422_v23, %v2332_v3  ;;  %v5526_v17 = vmul.f32 0.70710677, %v5503_v11  ;;  %v1113_v52 = vsub.f32 1.0, %v1112_v10  ;;  %v1540_v42 = vmul.f32 1.442695, %v1477_v34 }
 0x145   :  { %8860 = vst [vmem:[#allocation126_spill] sm:$0xff] %v5510_v45  ;;  %4089 = vrcp.f32 %v5510_v45  ;;  %v754_v50 = vmul.f32 %v5457_v29, %v753_v35  ;;  %v1447_v3 = vsub.f32 0.0, %v1415_v21  ;;  %v1414_v6 = vmul.f32 %v550_v0, %v550_v0 }
 0x146   :  { %8861 = vst [vmem:[#allocation127_spill] sm:$0xff] %v5515_v31  ;;  %v5528_v31 = vor.u32 1.1754944e-38, %v1122_v47  ;;  %v5541_v39 = vadd.f32 %v433_v62, %v8866_v60  ;;  %4091 = vrcp.f32 %v5517_v33  ;;  %v5544_v34 = vadd.f32 1.0, %v591_v55  ;;  %v5548_v25 = vpop.eup %4087 }
 0x147   :  { %8862 = vst [vmem:[#allocation128_spill] sm:$0xff] %v5517_v33  ;;  %v2341_v47 = vor.u32 1.1754944e-38, %v2340_v13  ;;  %v5546_v10 = vadd.f32 1.0, %v2028_v19  ;;  %v2666_v4 = vadd.f32 1.4214138, %v2634_v26  ;;  %v2337_v5 = vsel %vm5535_vm3, %v5422_v23, %v2333_v8 }
 0x148   :  { %8863 = vst [vmem:[#allocation129_spill] sm:$0xff] %v5526_v17  ;;  %vm2339_vm4 = vcmp.eq.f32.partialorder %v2338_v30, 8.507059e+37  ;;  %v5554_v0 = vand.u32 2147483647, %v5526_v17  ;;  %v1114_v60 = vmul.f32 %v5480_v7, %v1113_v52  ;;  %4093 = vpow2.f32 %v1540_v42 }
 0x149   :  { %8867 = vst [vmem:[#allocation43_spill] sm:$0xff] %v5544_v34  ;;  %v5558_v21 = vmul.f32 0.5, %v5388_v51  ;;  %v5561_v62 = vmul.f32 0.5, %v5401_v41  ;;  %v672_v35 = vand.u32 2147483648, %v5488_v56  ;;  %v1480_v55 = vmul.f32 1.442695, %v1447_v3 }
 0x14a   :  { %8868 = vst [vmem:[#allocation130_spill] sm:$0xff] %v5548_v25  ;;  %v1446_v13 = vsub.f32 0.0, %v1414_v6  ;;  %v5565_v59 = vmul.f32 0.70710677, %v5541_v39  ;;  %v662_v8 = vmul.f32 %v5548_v25, %v5488_v56  ;;  %v2858_v52 = vmul.f32 %v5297_v48, %v5297_v48 }
 0x14b   :  { %8869 = vst [vmem:[#allocation131_spill] sm:$0xff] %v5558_v21  ;;  %v5567_v23 = vpop.eup %4089  ;;  %v5573_v51 = vsel %vm2339_vm4, %v2341_v47, %v2337_v5  ;;  %4095 = vrcp.f32 %v5546_v10  ;;  %v5577_v41 = vadd.f32 %v5457_v29, %v754_v50  ;;  %v2698_v6 = vmul.f32 %v2666_v4, %v5455_v36  ;;  %v1881_v50 = vpop.f32.mrf.mxu3 }
 0x14c   :  { %8870 = vst [vmem:[#allocation132_spill] sm:$0xff] %v5561_v62  ;;  %4097 = vrcp.f32 %v5544_v34  ;;  %v592_v19 = vmul.f32 0.3275911, %v5554_v0  ;;  %v5582_v26 = vpop.eup %4091  ;;  %v5585_v30 = vadd.f32 %v5480_v7, %v1114_v60  ;;  %v657_v5 = vand.u32 2147483648, %v5510_v45 }
 0x14d   :  { %8871 = vst [vmem:[#allocation133_spill] sm:$0xff] %v5565_v59  ;;  %v1422_v42 = vmul.f32 %v5463_v54, %v5463_v54  ;;  %v647_v3 = vmul.f32 %v5567_v23, %v5510_v45  ;;  %v1478_v47 = vmul.f32 1.442695, %v1446_v13  ;;  %v2571_v4 = vmul.f32 1.0614054, %v5573_v51 }
 0x14e   :  { %8872 = vst [vmem:[#allocation134_spill] sm:$0xff] %v5567_v23  ;;  %v5595_v21 = vand.u32 2147483647, %v5565_v59  ;;  %v5597_v62 = vpop.eup %4093  ;;  %v663_v60 = vsub.f32 1.0, %v662_v8  ;;  %4099 = vpow2.f32 %v1480_v55  ;;  %v2890_v48 = vsub.f32 0.0, %v2858_v52  ;;  %v8881_v59 = vld [vmem:[#allocation31_spill] sm:$0xff] }
 0x14f   :  { %8873 = vst [vmem:[#allocation135_spill] sm:$0xff] %v5577_v41  ;;  %v5599_v41 = vor.u32 1.1754944e-38, %v672_v35  ;;  %v5602_v56 = vmul.f32 0.5, %v5413_v38  ;;  %v2730_v54 = vadd.f32 -0.28449672, %v2698_v6  ;;  %v1423_v29 = vmul.f32 %v5495_v15, %v5495_v15 }
 0x150   :  { %8874 = vst [vmem:[#allocation136_spill] sm:$0xff] %v5582_v26  ;;  %v5606_v13 = vadd.f32 1.0, %v592_v19  ;;  %v5611_v24 = vor.u32 1.1754944e-38, %v657_v5  ;;  %v767_v35 = vmul.f32 %v5582_v26, %v5517_v33  ;;  %v1454_v55 = vsub.f32 0.0, %v1422_v42 }
 0x151   :  { %8875 = vst [vmem:[#allocation137_spill] sm:$0xff] %v5599_v41  ;;  %v5608_v17 = vpop.eup %4095  ;;  %v648_v38 = vsub.f32 1.0, %v647_v3  ;;  %4101 = vpow2.f32 %v1478_v47  ;;  %v2603_v52 = vadd.f32 -1.4531521, %v2571_v4  ;;  %v593_v6 = vmul.f32 0.3275911, %v5595_v21 }
 0x152   :  { %8876 = vst [vmem:[#allocation138_spill] sm:$0xff] %v5602_v56  ;;  %v5615_v8 = vpop.eup %4097  ;;  %v664_v15 = vmul.f32 %v5548_v25, %v663_v60  ;;  %v2938_v19 = vmul.f32 1.442695, %v2890_v48  ;;  %v5620_v41 = vmul.f32 0.5, %v5443_v28  ;;  %v5623_v5 = vadd.f32 %v1881_v50, %v8881_v59 }
 0x153   :  { %8877 = vst [vmem:[#allocation139_spill] sm:$0xff] %v5606_v13  ;;  %v1455_v56 = vsub.f32 0.0, %v1423_v29  ;;  %4103 = vrcp.f32 %v5606_v13  ;;  %v2345_v42 = vmul.f32 %v5608_v17, %v5546_v10  ;;  %v768_v47 = vsub.f32 1.0, %v767_v35 }
 0x154   :  { %8878 = vst [vmem:[#allocation140_spill] sm:$0xff] %v5611_v24  ;;  %v2762_v24 = vmul.f32 %v2730_v54, %v5455_v36  ;;  %v5629_v3 = vpop.eup %4099  ;;  %v1494_v4 = vmul.f32 1.442695, %v1454_v55  ;;  %v782_v48 = vmul.f32 %v5615_v8, %v5544_v34  ;;  %v5634_v28 = vmul.f32 0.5, %v5503_v11 }
 0x155   :  { %8879 = vst [vmem:[#allocation141_spill] sm:$0xff] %v5615_v8  ;;  %v649_v50 = vmul.f32 %v5567_v23, %v648_v38  ;;  %v777_v60 = vand.u32 2147483648, %v5517_v33  ;;  %v2635_v29 = vmul.f32 %v2603_v52, %v5573_v51  ;;  %v5639_v54 = vadd.f32 1.0, %v593_v6 }
 0x156   :  { %8880 = vst [vmem:[#allocation142_spill] sm:$0xff] %v5620_v41  ;;  %v5642_v41 = vadd.f32 %v5548_v25, %v664_v15  ;;  %4105 = vpow2.f32 %v2938_v19  ;;  %v5646_v55 = vmul.f32 0.70710677, %v5623_v5  ;;  %v2794_v45 = vadd.f32 0.2548296, %v2762_v24  ;;  %v8895_v25 = vld [vmem:[#allocation25_spill] sm:$0xff] }
 0x157   :  { %8882 = vst [vmem:[#allocation143_spill] sm:$0xff] %v5629_v3  ;;  %v1884_v3 = vpop.f32.mrf.mxu3  ;;  %v5648_v11 = vpop.eup %4101  ;;  %v792_v38 = vand.u32 2147483648, %v5544_v34  ;;  %v2346_v59 = vsub.f32 1.0, %v2345_v42  ;;  %v769_v52 = vmul.f32 %v5582_v26, %v768_v47  ;;  %4107 = vpow2.f32 %v1494_v4 }
 0x158   :  { %8883 = vst [vmem:[#allocation144_spill] sm:$0xff] %v5634_v28  ;;  %v1496_v28 = vmul.f32 1.442695, %v1455_v56  ;;  %v5653_v6 = vmul.f32 0.5, %v5270_v22  ;;  %v783_v15 = vsub.f32 1.0, %v782_v48  ;;  %v5658_v19 = vadd.f32 %v5567_v23, %v649_v50 }
 0x159   :  { %8884 = vst [vmem:[#allocation145_spill] sm:$0xff] %v5639_v54  ;;  %v5655_v35 = vpop.eup %4103  ;;  %4109 = vrcp.f32 %v5639_v54  ;;  %v1424_v24 = vmul.f32 %v5554_v0, %v5554_v0  ;;  %v5667_v42 = vmul.f32 0.5, %v5541_v39  ;;  %v1997_v22 = vand.u32 2147483647, %v5646_v55 }
 0x15a   :  { %8885 = vst [vmem:[#allocation146_spill] sm:$0xff] %v5642_v41  ;;  %v5660_v41 = vor.u32 1.1754944e-38, %v777_v60  ;;  %v2826_v47 = vmul.f32 %v2794_v45, %v5455_v36  ;;  %v5671_v4 = vor.u32 1.1754944e-38, %v792_v38  ;;  %4111 = vpow2.f32 %v1496_v28  ;;  %v436_v45 = vpop.f32.mrf.mxu0 }
 0x15b   :  { %8886 = vst [vmem:[#allocation147_spill] sm:$0xff] %v5648_v11  ;;  %v2667_v11 = vadd.f32 1.4214138, %v2635_v29  ;;  %v2347_v48 = vmul.f32 %v5608_v17, %v2346_v59  ;;  %v5675_v60 = vadd.f32 %v5582_v26, %v769_v52  ;;  %v784_v29 = vmul.f32 %v5615_v8, %v783_v15 }
 0x15c   :  { %8887 = vst [vmem:[#allocation148_spill] sm:$0xff] %v5655_v35  ;;  %v4106_v50 = vpop.eup %4105  ;;  %v2859_v0 = vmul.f32 %v5340_v12, %v5340_v12  ;;  %v797_v39 = vmul.f32 %v5655_v35, %v5606_v13  ;;  %vm2349_vm5 = vweird.f32 %v5546_v10  ;;  %vm2350_vm6 = vweird.f32 %v5608_v17 }
 0x15d   :  { %8888 = vst [vmem:[#allocation149_spill] sm:$0xff] %v5658_v19  ;;  %v2699_v56 = vmul.f32 %v2667_v11, %v5573_v51  ;;  %v1425_v36 = vmul.f32 %v5595_v21, %v5595_v21  ;;  %v5687_v59 = vpop.eup %4107  ;;  %v1456_v28 = vsub.f32 0.0, %v1424_v24  ;;  %v2353_v38 = vand.u32 2147483647, %v5546_v10  ;;  %vm5706_vm10 = vmor %vm2349_vm5, %vm2350_vm6 }
 0x15e   :  { %8889 = vst [vmem:[#allocation150_spill] sm:$0xff] %v5660_v41  ;;  %v2355_v12 = vand.u32 2147483648, %v5546_v10  ;;  %v2029_v52 = vmul.f32 0.3275911, %v1997_v22  ;;  %vm1101_vm7 = vweird.f32 %v5091_v44  ;;  %vm1102_vm8 = vweird.f32 %v5162_v63 }
 0x15f   :  { %8890 = vst [vmem:[#allocation151_spill] sm:$0xff] %v5667_v42  ;;  %v5691_v15 = vpop.eup %4109  ;;  %v2986_v11 = vmul.f32 %v4106_v50, %v2826_v47  ;;  %v2348_v21 = vadd.f32 %v5608_v17, %v2347_v48  ;;  %v5698_v23 = vadd.f32 %v1884_v3, %v8895_v25  ;;  %vm3050_vm9 = vcmp.lt.f32.partialorder %v5289_v2, 0.0  ;;  %v8898_v48 = vld [vmem:[#allocation33_spill] sm:$0xff]  ;;  %v1886_v3 = vpop.f32.mrf.mxu3  ;;  %vm5772_vm0 = vmor %vm1101_vm7, %vm1102_vm8 }
 0x160   :  { %8891 = vst [vmem:[#allocation152_spill] sm:$0xff] %v5671_v4  ;;  %v2891_v24 = vsub.f32 0.0, %v2859_v0  ;;  %v2860_v47 = vmul.f32 %v5498_v18, %v5498_v18  ;;  %v5713_v50 = vadd.f32 %v436_v45, %v8898_v48  ;;  %v5715_v19 = vpop.eup %4111  ;;  %v5718_v0 = vadd.f32 %v5615_v8, %v784_v29  ;;  %v8905_v8 = vld [vmem:[#allocation71_spill] sm:$0xff] }
 0x161   :  { %8892 = vst [vmem:[#allocation153_spill] sm:$0xff] %v5675_v60  ;;  %v2731_v4 = vadd.f32 -0.28449672, %v2699_v56  ;;  %v798_v41 = vsub.f32 1.0, %v797_v39  ;;  %v1457_v60 = vsub.f32 0.0, %v1425_v36  ;;  %vm1116_vm11 = vweird.f32 %v5420_v61  ;;  %v8903_v39 = vld [vmem:[#allocation9_spill] sm:$0xff] }
 0x162   :  { %8893 = vst [vmem:[#allocation154_spill] sm:$0xff] %v5687_v59  ;;  %v807_v59 = vand.u32 2147483648, %v5606_v13  ;;  %vm1117_vm12 = vweird.f32 %v5480_v7  ;;  %vm5722_vm13 = vcmp.eq.f32.partialorder %v2353_v38, 8.507059e+37  ;;  %v2356_v18 = vor.u32 1.1754944e-38, %v2355_v12 }
 0x163   :  { %8894 = vst [vmem:[#allocation155_spill] sm:$0xff] %v5691_v15  ;;  %v812_v45 = vmul.f32 %v5691_v15, %v5639_v54  ;;  %v5728_v48 = vadd.f32 1.0, %v2029_v52  ;;  %v2352_v56 = vsel %vm5706_vm10, %v5608_v17, %v2348_v21  ;;  %v5734_v29 = vmul.f32 0.70710677, %v5698_v23  ;;  %vm5804_vm5 = vmor %vm1116_vm11, %vm1117_vm12 }
 0x164   :  { %8899 = vst [vmem:[#allocation33_spill] sm:$0xff] %v5715_v19  ;;  %v3018_v19 = vsub.f32 1.0, %v2986_v11  ;;  %v5737_v36 = vadd.f32 %v1886_v3, %v8903_v39  ;;  %v5740_v38 = vmul.f32 0.5, %v5301_v14  ;;  %v2940_v12 = vmul.f32 1.442695, %v2891_v24  ;;  %v8906_v24 = vld [vmem:[#allocation80_spill] sm:$0xff] }
 0x165   :  { %8900 = vst [vmem:[#allocation156_spill] sm:$0xff] %v5718_v0  ;;  %v2892_v0 = vsub.f32 0.0, %v2860_v47  ;;  %v5743_v34 = vmul.f32 0.70710677, %v5713_v50  ;;  %v2763_v52 = vmul.f32 %v2731_v4, %v5573_v51  ;;  %v799_v11 = vmul.f32 %v5655_v35, %v798_v41  ;;  %v8964_v39 = vld [vmem:[#allocation26_spill] sm:$0xff] }
 0x166   :  { %v1498_v42 = vmul.f32 1.442695, %v1456_v28  ;;  %v1500_v17 = vmul.f32 1.442695, %v1457_v60  ;;  %v5749_v21 = vsel %vm5722_vm13, %v2356_v18, %v2352_v56  ;;  %v813_v3 = vsub.f32 1.0, %v812_v45 }
 0x167   :  { %8904 = vst [vmem:[#allocation157_spill] sm:$0xff] %v5743_v34  ;;  %4113 = vrcp.f32 %v5728_v48  ;;  %v2861_v14 = vmul.f32 %v1997_v22, %v1997_v22  ;;  %vm1071_vm14 = vweird.f32 %v8905_v8  ;;  %vm1072_vm15 = vweird.f32 %v8906_v24 }
 0x168   :  { %v3082_v47 = vsub.f32 0.0, %v3018_v19  ;;  %v5754_v33 = vor.u32 1.1754944e-38, %v807_v59  ;;  %v5757_v4 = vand.u32 2147483647, %v5734_v29  ;;  %v5760_v41 = vmul.f32 0.70710677, %v5737_v36 }
 0x169   :  { %4115 = vpow2.f32 %v2940_v12  ;;  %v2942_v60 = vmul.f32 1.442695, %v2892_v0  ;;  %v822_v28 = vand.u32 2147483648, %v5639_v54  ;;  %v562_v10 = vand.u32 2147483647, %v5743_v34 }
 0x16a   :  { %8907 = vst [vmem:[#allocation71_spill] sm:$0xff] %v5754_v33  ;;  %v2795_v22 = vadd.f32 0.2548296, %v2763_v52  ;;  %4117 = vpow2.f32 %v1498_v42  ;;  %v5765_v18 = vmul.f32 0.5, %v5446_v58  ;;  %v2572_v59 = vmul.f32 1.0614054, %v5749_v21 }
 0x16b   :  { %v5777_v0 = vadd.f32 %v5655_v35, %v799_v11  ;;  %v814_v56 = vmul.f32 %v5691_v15, %v813_v3  ;;  %v2893_v52 = vsub.f32 0.0, %v2861_v14  ;;  %v8911_v58 = vld [vmem:[#allocation77_spill] sm:$0xff]  ;;  %vm1087_vm3 = vweird.f32 %v5052_v1 }
 0x16c   :  { %vm1086_vm2 = vweird.f32 %v8911_v58  ;;  %v3114_v42 = vsel %vm3050_vm9, %v3082_v47, %v3018_v19  ;;  %4119 = vpow2.f32 %v1500_v17  ;;  %v2030_v34 = vmul.f32 0.3275911, %v5757_v4  ;;  %vm5861_vm9 = vmor %vm1071_vm14, %vm1072_vm15 }
 0x16d   :  { %8910 = vst [vmem:[#allocation80_spill] sm:$0xff] %v5777_v0  ;;  %v5787_v26 = vand.u32 2147483647, %v5760_v41  ;;  %v5789_v11 = vpop.eup %4113  ;;  %4121 = vpow2.f32 %v2942_v60  ;;  %v5791_v3 = vor.u32 1.1754944e-38, %v822_v28  ;;  %v2370_v14 = vand.u32 2147483648, %v5728_v48  ;;  %vm5890_vm12 = vmor %vm1086_vm2, %vm1087_vm3 }
 0x16e   :  { %v594_v12 = vmul.f32 0.3275911, %v562_v10  ;;  %v8913_v33 = vand.u32 2147483647, %v8905_v8  ;;  %v2827_v19 = vmul.f32 %v2795_v22, %v5573_v51  ;;  %v2604_v17 = vadd.f32 -1.4531521, %v2572_v59 }
 0x16f   :  { %8912 = vst [vmem:[#allocation77_spill] sm:$0xff] %v5791_v3  ;;  %v1104_v47 = vsel %vm5772_vm0, %v5162_v63, %v5240_v53  ;;  %v4116_v60 = vpop.eup %4115  ;;  %v3146_v28 = vadd.f32 1.0, %v3114_v42  ;;  %v5816_v3 = vadd.f32 %v5691_v15, %v814_v56  ;;  %v2944_v54 = vmul.f32 1.442695, %v2893_v52 }
 0x170   :  { %vm5796_vm4 = vcmp.eq.f32.partialorder %v8913_v33, 8.507059e+37  ;;  %v8918_v33 = vand.u32 2147483647, %v5091_v44  ;;  %v5819_v13 = vmul.f32 0.5, %v5713_v50  ;;  %v5821_v35 = vpop.eup %4117  ;;  %v8922_v51 = vand.u32 2147483647, %v8911_v58 }
 0x171   :  { %8919 = vst [vmem:[#allocation158_spill] sm:$0xff] %v5816_v3  ;;  %v5830_v44 = vmul.f32 0.5, %v5623_v5  ;;  %v2360_v63 = vmul.f32 %v5789_v11, %v5728_v48  ;;  %v5834_v53 = vadd.f32 1.0, %v2030_v34  ;;  %v2031_v59 = vmul.f32 0.3275911, %v5787_v26 }
 0x172   :  { %vm1106_vm6 = vcmp.eq.f32.partialorder %v8918_v33, 8.507059e+37  ;;  %8920 = vst [vmem:[#allocation159_spill] sm:$0xff] %v5819_v13  ;;  %vm5825_vm7 = vcmp.eq.f32.partialorder %v8922_v51, 8.507059e+37  ;;  %v2368_v50 = vand.u32 2147483647, %v5728_v48  ;;  %v5838_v45 = vadd.f32 1.0, %v594_v12  ;;  %v5847_v52 = vpop.eup %4119 }
 0x173   :  { %8921 = vst [vmem:[#allocation160_spill] sm:$0xff] %v5821_v35  ;;  %v5841_v56 = vsel %vm1106_vm6, %v5227_v57, %v1104_v47  ;;  %v1119_v5 = vsel %vm5804_vm5, %v5480_v7, %v5585_v30  ;;  %v5849_v42 = vmul.f32 %v4116_v60, %v2827_v19  ;;  %v2636_v34 = vmul.f32 %v2604_v17, %v5749_v21  ;;  %v5855_v51 = vpop.eup %4121  ;;  %v1889_v19 = vpop.f32.mrf.mxu3  ;;  %v8939_v57 = vld [vmem:[#allocation51_spill] sm:$0xff] }
 0x174   :  { %8925 = vst [vmem:[#allocation161_spill] sm:$0xff] %v5830_v44  ;;  %vm2364_vm8 = vweird.f32 %v5728_v48  ;;  %v5853_v33 = vor.u32 1.1754944e-38, %v2370_v14  ;;  %v1426_v12 = vmul.f32 %v562_v10, %v562_v10  ;;  %v5866_v7 = vmul.f32 %v3146_v28, %v5653_v6  ;;  %v438_v6 = vpop.f32.mrf.mxu0 }
 0x175   :  { %8926 = vst [vmem:[#allocation162_spill] sm:$0xff] %v5838_v45  ;;  %4123 = vpow2.f32 %v2944_v54  ;;  %v8931_v30 = vand.u32 2147483647, %v5420_v61  ;;  %v1156_v14 = vmul.f32 1.0614054, %v5841_v56  ;;  %vm3051_vm11 = vcmp.lt.f32.partialorder %v5315_v27, 0.0 }
 0x176   :  { %8927 = vst [vmem:[#allocation163_spill] sm:$0xff] %v5847_v52  ;;  %v2361_v10 = vsub.f32 1.0, %v2360_v63  ;;  %4125 = vrcp.f32 %v5834_v53  ;;  %v5873_v2 = vadd.f32 1.0, %v2031_v59  ;;  %v3019_v47 = vsub.f32 1.0, %v5849_v42  ;;  %v8932_v63 = vld [vmem:[#allocation89_spill] sm:$0xff]  ;;  %v8941_v54 = vld [vmem:[#allocation84_spill] sm:$0xff] }
 0x177   :  { %8930 = vst [vmem:[#allocation164_spill] sm:$0xff] %v5866_v7  ;;  %vm1121_vm10 = vcmp.eq.f32.partialorder %v8931_v30, 8.507059e+37  ;;  %4127 = vrcp.f32 %v5838_v45  ;;  %v1188_v17 = vadd.f32 -1.4531521, %v1156_v14  ;;  %v2668_v60 = vadd.f32 1.4214138, %v2636_v34 }
 0x178   :  { %v5876_v8 = vsel %vm1121_vm10, %v5528_v31, %v1119_v5  ;;  %v1458_v28 = vsub.f32 0.0, %v1426_v12  ;;  %v1074_v59 = vsel %vm5861_vm9, %v8906_v24, %v8932_v63  ;;  %vm2365_vm13 = vweird.f32 %v5789_v11  ;;  %v8935_v34 = vld [vmem:[#allocation8_spill] sm:$0xff]  ;;  %v8950_v27 = vld [vmem:[#allocation50_spill] sm:$0xff] }
 0x179   :  { %v1157_v61 = vmul.f32 1.0614054, %v5876_v8  ;;  %v1220_v42 = vmul.f32 %v1188_v17, %v5841_v56  ;;  %v5897_v12 = vadd.f32 %v1889_v19, %v8935_v34  ;;  %v2362_v30 = vmul.f32 %v5789_v11, %v2361_v10  ;;  %vm5946_vm15 = vmor %vm2364_vm8, %vm2365_vm13 }
 0x17a   :  { %vm5900_vm14 = vcmp.eq.f32.partialorder %v2368_v50, 8.507059e+37  ;;  %v837_v58 = vand.u32 2147483648, %v5838_v45  ;;  %v439_v14 = vadd.f32 %v438_v6, %v8939_v57  ;;  %4129 = vrcp.f32 %v5873_v2 }
 0x17b   :  { %v1189_v5 = vadd.f32 -1.4531521, %v1157_v61  ;;  %8936 = vst [vmem:[#allocation89_spill] sm:$0xff] %v5897_v12  ;;  %v5907_v63 = vpop.eup %4123  ;;  %v1252_v17 = vadd.f32 1.4214138, %v1220_v42  ;;  %v5916_v50 = vsel %vm5796_vm4, %v8941_v54, %v1074_v59  ;;  %v3083_v7 = vsub.f32 0.0, %v3019_v47 }
 0x17c   :  { %v5911_v19 = vmul.f32 0.70710677, %v5897_v12  ;;  %v5918_v10 = vpop.eup %4125  ;;  %v2700_v6 = vmul.f32 %v2668_v60, %v5749_v21  ;;  %v1502_v57 = vmul.f32 1.442695, %v1458_v28  ;;  %v8942_v54 = vld [vmem:[#allocation85_spill] sm:$0xff]  ;;  %v2363_v60 = vadd.f32 %v5789_v11, %v2362_v30 }
 0x17d   :  { %v1221_v61 = vmul.f32 %v1189_v5, %v5876_v8  ;;  %v1089_v5 = vsel %vm5890_vm12, %v5052_v1, %v5158_v32  ;;  %v5925_v42 = vpop.eup %4127  ;;  %v1284_v35 = vmul.f32 %v1252_v17, %v5841_v56  ;;  %v5937_v28 = vor.u32 1.1754944e-38, %v837_v58 }
 0x17e   :  { %8940 = vst [vmem:[#allocation51_spill] sm:$0xff] %v5911_v19  ;;  %v5929_v0 = vand.u32 2147483647, %v5911_v19  ;;  %v5934_v59 = vsel %vm5825_vm7, %v8942_v54, %v1089_v5  ;;  %v5939_v13 = vmul.f32 0.5, %v439_v14  ;;  %v1154_v1 = vmul.f32 1.0614054, %v5916_v50 }
 0x17f   :  { %v1253_v52 = vadd.f32 1.4214138, %v1221_v61  ;;  %8943 = vst [vmem:[#allocation84_spill] sm:$0xff] %v5937_v28  ;;  %v2375_v22 = vmul.f32 %v5918_v10, %v5834_v53  ;;  %v1316_v30 = vadd.f32 -0.28449672, %v1284_v35  ;;  %4131 = vpow2.f32 %v1502_v57  ;;  %v8949_v28 = vld [vmem:[#allocation40_spill] sm:$0xff] }
 0x180   :  { %8944 = vst [vmem:[#allocation85_spill] sm:$0xff] %v5939_v13  ;;  %v1155_v58 = vmul.f32 1.0614054, %v5934_v59  ;;  %v5954_v61 = vpop.eup %4129  ;;  %v5957_v17 = vmul.f32 0.5, %v5698_v23  ;;  %v2032_v48 = vmul.f32 0.3275911, %v5929_v0  ;;  %v3115_v54 = vsel %vm3051_vm11, %v3083_v7, %v3019_v47 }
 0x181   :  { %v1285_v31 = vmul.f32 %v1253_v52, %v5876_v8  ;;  %v1186_v5 = vadd.f32 -1.4531521, %v1154_v1  ;;  %v2732_v13 = vadd.f32 -0.28449672, %v2700_v6  ;;  %v1348_v15 = vmul.f32 %v1316_v30, %v5841_v56  ;;  %v8948_v52 = vld [vmem:[#allocation83_spill] sm:$0xff]  ;;  %v8951_v30 = vld [vmem:[#allocation42_spill] sm:$0xff] }
 0x182   :  { %8947 = vst [vmem:[#allocation165_spill] sm:$0xff] %v5957_v17  ;;  %vm1636_vm0 = vcmp.lt.f32.partialorder %v8948_v52, 0.0  ;;  %v2367_v35 = vsel %vm5946_vm15, %v5789_v11, %v2363_v60  ;;  %v5969_v23 = vmul.f32 %v5925_v42, %v5838_v45  ;;  %v5971_v57 = vmul.f32 0.70710677, %v439_v14  ;;  %v8952_v11 = vld [vmem:[#allocation53_spill] sm:$0xff]  ;;  %v8966_v19 = vld [vmem:[#allocation27_spill] sm:$0xff] }
 0x183   :  { %v1317_v3 = vadd.f32 -0.28449672, %v1285_v31  ;;  %v1187_v1 = vadd.f32 -1.4531521, %v1155_v58  ;;  %vm1041_vm2 = vweird.f32 %v8949_v28  ;;  %vm1042_vm3 = vweird.f32 %v8950_v27 }
 0x184   :  { %v2376_v7 = vsub.f32 1.0, %v2375_v22  ;;  %v1380_v6 = vadd.f32 0.2548296, %v1348_v15  ;;  %v1218_v31 = vmul.f32 %v1186_v5, %v5916_v50  ;;  %vm1056_vm4 = vweird.f32 %v8951_v30 }
 0x185   :  { %v1349_v47 = vmul.f32 %v1317_v3, %v5876_v8  ;;  %vm1057_vm5 = vweird.f32 %v8952_v11  ;;  %vm1637_vm6 = vcmp.lt.f32.partialorder %v5350_v37, 0.0  ;;  %v5980_v60 = vadd.f32 1.0, %v3115_v54  ;;  %v5994_v5 = vpop.eup %4131 }
 0x186   :  { %vm2379_vm7 = vweird.f32 %v5834_v53  ;;  %v2390_v14 = vmul.f32 %v5954_v61, %v5873_v2  ;;  %v5985_v32 = vadd.f32 1.0, %v2032_v48  ;;  %v2764_v3 = vmul.f32 %v2732_v13, %v5749_v21  ;;  %8953 = vst [vmem:[#allocation83_spill] sm:$0xff] %v5994_v5  ;;  %vm6063_vm15 = vmor %vm1056_vm4, %vm1057_vm5 }
 0x187   :  { %v5991_v15 = vsel %vm5900_vm14, %v5853_v33, %v2367_v35  ;;  %v1381_v22 = vadd.f32 0.2548296, %v1349_v47  ;;  %v1412_v58 = vmul.f32 %v1380_v6, %v5841_v56  ;;  %v2383_v54 = vand.u32 2147483647, %v5834_v53 }
 0x188   :  { %v2385_v34 = vand.u32 2147483648, %v5834_v53  ;;  %v6000_v48 = vmul.f32 %v5757_v4, %v5757_v4  ;;  %v1219_v13 = vmul.f32 %v1187_v1, %v5934_v59  ;;  %v2377_v45 = vmul.f32 %v5918_v10, %v2376_v7 }
 0x189   :  { %v1413_v33 = vmul.f32 %v1381_v22, %v5876_v8  ;;  %v1572_v24 = vmul.f32 %v5250_v40, %v1412_v58  ;;  %v1250_v35 = vadd.f32 1.4214138, %v1218_v31  ;;  %v2573_v56 = vmul.f32 1.0614054, %v5991_v15 }
 0x18a   :  { %v2391_v47 = vsub.f32 1.0, %v2390_v14  ;;  %4133 = vrcp.f32 %v5985_v32  ;;  %v1251_v6 = vadd.f32 1.4214138, %v1219_v13  ;;  %v8954_v5 = vand.u32 2147483647, %v8949_v28 }
 0x18b   :  { %vm2380_vm9 = vweird.f32 %v5918_v10  ;;  %v1573_v1 = vmul.f32 %v5597_v62, %v1413_v33  ;;  %v1604_v8 = vsub.f32 1.0, %v1572_v24  ;;  %v1282_v40 = vmul.f32 %v1250_v35, %v5916_v50 }
 0x18c   :  { %vm6010_vm8 = vcmp.eq.f32.partialorder %v8954_v5, 8.507059e+37  ;;  %v8957_v7 = vand.u32 2147483647, %v8951_v30  ;;  %v2796_v14 = vadd.f32 0.2548296, %v2764_v3  ;;  %v828_v22 = vsub.f32 1.0, %v5969_v23  ;;  %vm6032_vm12 = vmor %vm2379_vm7, %vm2380_vm9 }
 0x18d   :  { %vm6024_vm11 = vcmp.eq.f32.partialorder %v2383_v54, 8.507059e+37  ;;  %v1283_v5 = vmul.f32 %v1251_v6, %v5934_v59  ;;  %v2378_v62 = vadd.f32 %v5918_v10, %v2377_v45  ;;  %v1605_v13 = vsub.f32 1.0, %v1573_v1  ;;  %v8965_v6 = vld [vmem:[#allocation32_spill] sm:$0xff]  ;;  %vm6051_vm9 = vmor %vm1041_vm2, %vm1042_vm3 }
 0x18e   :  { %vm6019_vm10 = vcmp.eq.f32.partialorder %v8957_v7, 8.507059e+37  ;;  %v1668_v33 = vsub.f32 0.0, %v1604_v8  ;;  %v1314_v24 = vadd.f32 -0.28449672, %v1282_v40  ;;  %v2386_v3 = vor.u32 1.1754944e-38, %v2385_v34  ;;  %v8967_v34 = vld [vmem:[#allocation34_spill] sm:$0xff] }
 0x18f   :  { %v2894_v23 = vsub.f32 0.0, %v6000_v48  ;;  %v2392_v54 = vmul.f32 %v5954_v61, %v2391_v47  ;;  %v1315_v7 = vadd.f32 -0.28449672, %v1283_v5  ;;  %vm1012_vm14 = vweird.f32 %v8965_v6 }
 0x190   :  { %v2605_v45 = vadd.f32 -1.4531521, %v2573_v56  ;;  %v1669_v1 = vsub.f32 0.0, %v1605_v13  ;;  %v1700_v40 = vsel %vm1636_vm0, %v1668_v33, %v1604_v8  ;;  %v1346_v53 = vmul.f32 %v1314_v24, %v5916_v50  ;;  %v6043_v25 = vpop.eup %4133  ;;  %v8970_v56 = vld [vmem:[#allocation61_spill] sm:$0xff] }
 0x191   :  { %vm1027_vm7 = vweird.f32 %v8967_v34  ;;  %vm1634_vm1 = vcmp.lt.f32.partialorder %v8970_v56, 0.0  ;;  %vm2394_vm0 = vweird.f32 %v5873_v2  ;;  %vm2395_vm13 = vweird.f32 %v5954_v61  ;;  %v8987_v8 = vld [vmem:[#allocation57_spill] sm:$0xff] }
 0x192   :  { %v1732_v52 = vadd.f32 1.0, %v1700_v40  ;;  %v1347_v47 = vmul.f32 %v1315_v7, %v5934_v59  ;;  %v2382_v28 = vsel %vm6032_vm12, %v5918_v10, %v2378_v62  ;;  %v2398_v5 = vand.u32 2147483647, %v5873_v2  ;;  %v8973_v40 = vld [vmem:[#allocation65_spill] sm:$0xff]  ;;  %vm6077_vm3 = vmor %vm2394_vm0, %vm2395_vm13 }
 0x193   :  { %v1701_v33 = vsel %vm1637_vm6, %v1669_v1, %v1605_v13  ;;  %v1378_v24 = vadd.f32 0.2548296, %v1346_v53  ;;  %vm1635_vm2 = vcmp.lt.f32.partialorder %v8973_v40, 0.0  ;;  %v2393_v7 = vadd.f32 %v5954_v61, %v2392_v54  ;;  %v8976_v13 = vld [vmem:[#allocation64_spill] sm:$0xff]  ;;  %v8977_v1 = vld [vmem:[#allocation66_spill] sm:$0xff] }
 0x194   :  { %v2400_v30 = vand.u32 2147483648, %v5873_v2  ;;  %v1733_v17 = vadd.f32 1.0, %v1701_v33  ;;  %v1764_v12 = vmul.f32 %v1732_v52, %v5233_v20  ;;  %v2405_v10 = vmul.f32 %v6043_v25, %v5985_v32 }
 0x195   :  { %v1379_v62 = vadd.f32 0.2548296, %v1347_v47  ;;  %v1410_v37 = vmul.f32 %v1378_v24, %v5916_v50  ;;  %v1044_v35 = vsel %vm6051_vm9, %v8950_v27, %v8976_v13  ;;  %v2637_v2 = vmul.f32 %v2605_v45, %v5991_v15  ;;  %v8980_v45 = vld [vmem:[#allocation86_spill] sm:$0xff] }
 0x196   :  { %v6090_v54 = vand.u32 2147483647, %v5971_v57  ;;  %v1765_v20 = vmul.f32 %v1733_v17, %v5473_v46  ;;  %v1059_v53 = vsel %vm6063_vm15, %v8952_v11, %v8977_v1  ;;  %v6099_v50 = vsel %vm6024_vm11, %v2386_v3, %v2382_v28 }
 0x197   :  { %vm6101_vm4 = vcmp.eq.f32.partialorder %v2398_v5, 8.507059e+37  ;;  %v1411_v27 = vmul.f32 %v1379_v62, %v5934_v59  ;;  %v1570_v48 = vmul.f32 %v8980_v45, %v1410_v37  ;;  %v8981_v47 = vand.u32 2147483647, %v8964_v39  ;;  %v8988_v62 = vld [vmem:[#allocation67_spill] sm:$0xff] }
 0x198   :  { %v8984_v17 = vand.u32 2147483647, %v8966_v19  ;;  %v2397_v58 = vsel %vm6077_vm3, %v5954_v61, %v2393_v7  ;;  %v2401_v3 = vor.u32 1.1754944e-38, %v2400_v30  ;;  %v1781_v59 = vpack.c.bf16 %v1765_v20, %v1764_v12 }
 0x199   :  { %vm6109_vm5 = vcmp.eq.f32.partialorder %v8981_v47, 8.507059e+37  ;;  %v6125_v28 = vsel %vm6010_vm8, %v8987_v8, %v1044_v35  ;;  %v2406_v5 = vsub.f32 1.0, %v2405_v10  ;;  %v1571_v33 = vmul.f32 %v5201_v9, %v1411_v27  ;;  %v8995_v27 = vld [vmem:[#allocation19_spill] sm:$0xff]  ;;  %v8998_v8 = vld [vmem:[#allocation48_spill] sm:$0xff] }
 0x19a   :  { %vm6115_vm6 = vcmp.eq.f32.partialorder %v8984_v17, 8.507059e+37  ;;  %v1602_v24 = vsub.f32 1.0, %v1570_v48  ;;  %v6131_v37 = vsel %vm6019_vm10, %v8988_v62, %v1059_v53  ;;  %v2828_v13 = vmul.f32 %v2796_v14, %v5749_v21  ;;  %1802 = vmatpush.bf16.msra.mxu2 %v1781_v59  ;;  %v8996_v47 = vld [vmem:[#allocation47_spill] sm:$0xff] }
 0x19b   :  { %v6135_v44 = vmul.f32 %v5925_v42, %v828_v22  ;;  %v2946_v12 = vmul.f32 1.442695, %v2894_v23  ;;  %v6138_v61 = vmul.f32 0.3275911, %v6090_v54  ;;  %v2669_v4 = vadd.f32 1.4214138, %v2637_v2  ;;  %v1891_v23 = vpop.f32.mrf.mxu3 }
 0x19c   :  { %v2574_v7 = vmul.f32 1.0614054, %v6099_v50  ;;  %v1603_v9 = vsub.f32 1.0, %v1571_v33  ;;  %v1666_v30 = vsub.f32 0.0, %v1602_v24  ;;  %vm8989_vm8 = vweird.f32 %v8964_v39 }
 0x19d   :  { %vm6145_vm10 = vmor %vm8989_vm8, %vm1012_vm14  ;;  %v6151_v21 = vsel %vm6101_vm4, %v2401_v3, %v2397_v58  ;;  %vm2409_vm11 = vweird.f32 %v5985_v32  ;;  %v1152_v14 = vmul.f32 1.0614054, %v6125_v28  ;;  %v1153_v22 = vmul.f32 1.0614054, %v6131_v37  ;;  %v8997_v58 = vld [vmem:[#allocation74_spill] sm:$0xff] }
 0x19e   :  { %vm8992_vm12 = vweird.f32 %v8966_v19  ;;  %v2407_v10 = vmul.f32 %v6043_v25, %v2406_v5  ;;  %v2413_v35 = vand.u32 2147483647, %v5985_v32  ;;  %v1667_v2 = vsub.f32 0.0, %v1603_v9 }
 0x19f   :  { %vm6160_vm13 = vmor %vm8992_vm12, %vm1027_vm7  ;;  %v1698_v20 = vsel %vm1634_vm1, %v1666_v30, %v1602_v24  ;;  %v2415_v1 = vand.u32 2147483648, %v5985_v32  ;;  %v1184_v52 = vadd.f32 -1.4531521, %v1152_v14  ;;  %v6170_v45 = vadd.f32 %v1891_v23, %v8995_v27  ;;  %v9003_v14 = vld [vmem:[#allocation38_spill] sm:$0xff]  ;;  %v9004_v32 = vld [vmem:[#allocation45_spill] sm:$0xff] }
 0x1a0   :  { %v1730_v53 = vadd.f32 1.0, %v1698_v20  ;;  %vm2410_vm14 = vweird.f32 %v6043_v25  ;;  %v1699_v19 = vsel %vm1635_vm2, %v1667_v2, %v1603_v9  ;;  %v1185_v48 = vadd.f32 -1.4531521, %v1153_v22 }
 0x1a1   :  { %v1014_v17 = vsel %vm6145_vm10, %v8965_v6, %v8996_v47  ;;  %v1731_v56 = vadd.f32 1.0, %v1699_v19  ;;  %v1216_v59 = vmul.f32 %v1184_v52, %v6125_v28  ;;  %v1029_v5 = vsel %vm6160_vm13, %v8967_v34, %v8998_v8  ;;  %vm6191_vm1 = vmor %vm2409_vm11, %vm2410_vm14  ;;  %v441_v47 = vpop.f32.mrf.mxu0 }
 0x1a2   :  { %v1762_v3 = vmul.f32 %v1730_v53, %v8997_v58  ;;  %v2701_v33 = vmul.f32 %v2669_v4, %v5991_v15  ;;  %v2606_v40 = vadd.f32 -1.4531521, %v2574_v7  ;;  %v2408_v24 = vadd.f32 %v6043_v25, %v2407_v10 }
 0x1a3   :  { %v1217_v62 = vmul.f32 %v1185_v48, %v6131_v37  ;;  %v2575_v9 = vmul.f32 1.0614054, %v6151_v21  ;;  %v1763_v30 = vmul.f32 %v1731_v56, %v5230_v43  ;;  %v1248_v31 = vadd.f32 1.4214138, %v1216_v59 }
 0x1a4   :  { %v6197_v34 = vmul.f32 0.70710677, %v6170_v45  ;;  %vm6199_vm15 = vcmp.eq.f32.partialorder %v2413_v35, 8.507059e+37  ;;  %v6206_v22 = vsel %vm6109_vm5, %v9003_v14, %v1014_v17  ;;  %v6211_v23 = vsel %vm6115_vm6, %v9004_v32, %v1029_v5 }
 0x1a5   :  { %v1249_v7 = vadd.f32 1.4214138, %v1217_v62  ;;  %v2416_v43 = vor.u32 1.1754944e-38, %v2415_v1  ;;  %v1780_v39 = vpack.c.bf16 %v1763_v30, %v1762_v3  ;;  %v1280_v10 = vmul.f32 %v1248_v31, %v6125_v28 }
 0x1a6   :  { %v6215_v35 = vand.u32 2147483647, %v6197_v34  ;;  %v2412_v2 = vsel %vm6191_vm1, %v6043_v25, %v2408_v24  ;;  %v1150_v20 = vmul.f32 1.0614054, %v6206_v22  ;;  %v1151_v53 = vmul.f32 1.0614054, %v6211_v23 }
 0x1a7   :  { %v1281_v46 = vmul.f32 %v1249_v7, %v6131_v37  ;;  %v6224_v11 = vmul.f32 %v5855_v51, %v2828_v13  ;;  %v2733_v1 = vadd.f32 -0.28449672, %v2701_v33  ;;  %1803 = vmatpush.bf16.msra.mxu2 %v1780_v39  ;;  %v1312_v52 = vadd.f32 -0.28449672, %v1280_v10  ;;  %v9005_v13 = vld [vmem:[#allocation29_spill] sm:$0xff] }
 0x1a8   :  { %v2033_v19 = vmul.f32 0.3275911, %v6215_v35  ;;  %v2638_v48 = vmul.f32 %v2606_v40, %v6099_v50  ;;  %v1182_v56 = vadd.f32 -1.4531521, %v1150_v20  ;;  %v1183_v25 = vadd.f32 -1.4531521, %v1151_v53 }
 0x1a9   :  { %v1313_v17 = vadd.f32 -0.28449672, %v1281_v46  ;;  %4135 = vpow2.f32 %v2946_v12  ;;  %v6230_v58 = vsel %vm6199_vm15, %v2416_v43, %v2412_v2  ;;  %v1344_v3 = vmul.f32 %v1312_v52, %v6125_v28  ;;  %v9006_v40 = vld [vmem:[#allocation30_spill] sm:$0xff]  ;;  %v9007_v24 = vld [vmem:[#allocation41_spill] sm:$0xff] }
 0x1aa   :  { %v6233_v51 = vadd.f32 1.0, %v2033_v19  ;;  %vm1632_vm7 = vcmp.lt.f32.partialorder %v9005_v13, 0.0  ;;  %v2607_v59 = vadd.f32 -1.4531521, %v2575_v9  ;;  %v1214_v5 = vmul.f32 %v1182_v56, %v6206_v22 }
 0x1ab   :  { %v1345_v8 = vmul.f32 %v1313_v17, %v6131_v37  ;;  %v1215_v33 = vmul.f32 %v1183_v25, %v6211_v23  ;;  %vm1633_vm9 = vcmp.lt.f32.partialorder %v9006_v40, 0.0  ;;  %v6242_v12 = vmul.f32 %v6090_v54, %v6090_v54 }
 0x1ac   :  { %v6245_v62 = vadd.f32 %v441_v47, %v9007_v24  ;;  %v1376_v6 = vadd.f32 0.2548296, %v1344_v3  ;;  %4137 = vrcp.f32 %v6233_v51  ;;  %v2765_v9 = vmul.f32 %v2733_v1, %v5991_v15  ;;  %v9009_v47 = vld [vmem:[#allocation82_spill] sm:$0xff] }
 0x1ad   :  { %v2670_v30 = vadd.f32 1.4214138, %v2638_v48  ;;  %v2576_v31 = vmul.f32 1.0614054, %v6230_v58  ;;  %v1377_v4 = vadd.f32 0.2548296, %v1345_v8  ;;  %v2639_v39 = vmul.f32 %v2607_v59, %v6151_v21 }
 0x1ae   :  { %v6251_v7 = vadd.f32 1.0, %v6138_v61  ;;  %v1408_v14 = vmul.f32 %v1376_v6, %v6125_v28  ;;  %v1246_v32 = vadd.f32 1.4214138, %v1214_v5  ;;  %v1247_v54 = vadd.f32 1.4214138, %v1215_v33  ;;  %v9008_v61 = vld [vmem:[#allocation62_spill] sm:$0xff] }
 0x1af   :  { %v2863_v10 = vmul.f32 %v5787_v26, %v5787_v26  ;;  %v1409_v2 = vmul.f32 %v1377_v4, %v6131_v37  ;;  %v6259_v46 = vpop.eup %4135  ;;  %v6262_v20 = vmul.f32 0.70710677, %v6245_v62  ;;  %v2797_v52 = vadd.f32 0.2548296, %v2765_v9 }
 0x1b0   :  { %v1568_v53 = vmul.f32 %v9008_v61, %v1408_v14  ;;  %v1278_v28 = vmul.f32 %v1246_v32, %v6206_v22  ;;  %v1279_v1 = vmul.f32 %v1247_v54, %v6211_v23  ;;  %v2702_v19 = vmul.f32 %v2670_v30, %v6099_v50  ;;  %v9010_v30 = vld [vmem:[#allocation21_spill] sm:$0xff] }
 0x1b1   :  { %v2608_v48 = vadd.f32 -1.4531521, %v2576_v31  ;;  %v1569_v17 = vmul.f32 %v9009_v47, %v1409_v2  ;;  %4139 = vrcp.f32 %v6251_v7  ;;  %v2671_v3 = vadd.f32 1.4214138, %v2639_v39  ;;  %v9011_v31 = vld [vmem:[#allocation22_spill] sm:$0xff]  ;;  %v443_v39 = vpop.f32.mrf.mxu0 }
 0x1b2   :  { %v6269_v26 = vpop.eup %4137  ;;  %v1600_v37 = vsub.f32 1.0, %v1568_v53  ;;  %v1310_v56 = vadd.f32 -0.28449672, %v1278_v28  ;;  %v1311_v25 = vadd.f32 -0.28449672, %v1279_v1  ;;  %v2895_v59 = vsub.f32 0.0, %v2863_v10 }
 0x1b3   :  { %v1601_v8 = vsub.f32 1.0, %v1569_v17  ;;  %v2420_v5 = vmul.f32 %v6269_v26, %v6233_v51  ;;  %v6275_v33 = vand.u32 2147483647, %v6262_v20  ;;  %vm1630_vm0 = vcmp.lt.f32.partialorder %v9010_v30, 0.0 }
 0x1b4   :  { %v1664_v24 = vsub.f32 0.0, %v1600_v37  ;;  %v1342_v6 = vmul.f32 %v1310_v56, %v6206_v22  ;;  %v1343_v9 = vmul.f32 %v1311_v25, %v6211_v23  ;;  %vm1631_vm2 = vcmp.lt.f32.partialorder %v9011_v31, 0.0  ;;  %v1894_v56 = vpop.f32.mrf.mxu3  ;;  %v9023_v31 = vld [vmem:[#allocation39_spill] sm:$0xff] }
 0x1b5   :  { %v2829_v4 = vmul.f32 %v2797_v52, %v5991_v15  ;;  %v2734_v14 = vadd.f32 -0.28449672, %v2702_v19  ;;  %v2640_v32 = vmul.f32 %v2608_v48, %v6230_v58  ;;  %v1665_v54 = vsub.f32 0.0, %v1601_v8 }
 0x1b6   :  { %v1696_v10 = vsel %vm1632_vm7, %v1664_v24, %v1600_v37  ;;  %v2421_v2 = vsub.f32 1.0, %v2420_v5  ;;  %v1374_v61 = vadd.f32 0.2548296, %v1342_v6  ;;  %v1375_v53 = vadd.f32 0.2548296, %v1343_v9  ;;  %v9012_v5 = vld [vmem:[#allocation11_spill] sm:$0xff] }
 0x1b7   :  { %v2703_v28 = vmul.f32 %v2671_v3, %v6151_v21  ;;  %v2948_v1 = vmul.f32 1.442695, %v2895_v59  ;;  %v1697_v47 = vsel %vm1633_vm9, %v1665_v54, %v1601_v8  ;;  %v1728_v17 = vadd.f32 1.0, %v1696_v10  ;;  %v6288_v15 = vpop.eup %4139  ;;  %v9013_v59 = vld [vmem:[#allocation56_spill] sm:$0xff]  ;;  %v9014_v8 = vld [vmem:[#allocation69_spill] sm:$0xff]  ;;  %v9016_v10 = vld [vmem:[#allocation55_spill] sm:$0xff] }
 0x1b8   :  { %v596_v52 = vmul.f32 0.3275911, %v6275_v33  ;;  %v1729_v19 = vadd.f32 1.0, %v1697_v47  ;;  %v1406_v48 = vmul.f32 %v1374_v61, %v6206_v22  ;;  %v1407_v13 = vmul.f32 %v1375_v53, %v6211_v23  ;;  %v9015_v9 = vld [vmem:[#allocation44_spill] sm:$0xff]  ;;  %v9017_v23 = vld [vmem:[#allocation17_spill] sm:$0xff] }
 0x1b9   :  { %v2766_v37 = vmul.f32 %v2734_v14, %v6099_v50  ;;  %v2672_v25 = vadd.f32 1.4214138, %v2640_v32  ;;  %v6295_v3 = vadd.f32 %v443_v39, %v9012_v5  ;;  %v1760_v40 = vmul.f32 %v1728_v17, %v9013_v59 }
 0x1ba   :  { %v1761_v24 = vmul.f32 %v1729_v19, %v9014_v8  ;;  %v2422_v6 = vmul.f32 %v6269_v26, %v2421_v2  ;;  %v1566_v54 = vmul.f32 %v9015_v9, %v1406_v48  ;;  %v1567_v47 = vmul.f32 %v9016_v10, %v1407_v13 }
 0x1bb   :  { %v2735_v43 = vadd.f32 -0.28449672, %v2703_v28  ;;  %v2864_v22 = vmul.f32 %v5929_v0, %v5929_v0  ;;  %vm2424_vm3 = vweird.f32 %v6233_v51  ;;  %v6306_v14 = vadd.f32 %v1894_v56, %v9017_v23 }
 0x1bc   :  { %v1779_v32 = vpack.c.bf16 %v1761_v24, %v1760_v40  ;;  %vm2425_vm4 = vweird.f32 %v6269_v26  ;;  %v1598_v39 = vsub.f32 1.0, %v1566_v54  ;;  %v1599_v61 = vsub.f32 1.0, %v1567_v47  ;;  %v1896_v24 = vpop.f32.mrf.mxu3  ;;  %v9022_v54 = vld [vmem:[#allocation37_spill] sm:$0xff] }
 0x1bd   :  { %9018 = vst [vmem:[#allocation40_spill] sm:$0xff] %v6306_v14  ;;  %v2798_v53 = vadd.f32 0.2548296, %v2766_v37  ;;  %v2704_v2 = vmul.f32 %v2672_v25, %v6230_v58  ;;  %v6311_v17 = vmul.f32 0.70710677, %v6295_v3  ;;  %v2430_v28 = vand.u32 2147483648, %v6233_v51  ;;  %vm6325_vm6 = vmor %vm2424_vm3, %vm2425_vm4 }
 0x1be   :  { %1804 = vmatpush.bf16.msra.mxu2 %v1779_v32  ;;  %v2423_v0 = vadd.f32 %v6269_v26, %v2422_v6  ;;  %v2428_v19 = vand.u32 2147483647, %v6233_v51  ;;  %v1662_v56 = vsub.f32 0.0, %v1598_v39  ;;  %v1663_v48 = vsub.f32 0.0, %v1599_v61  ;;  %v9025_v32 = vld [vmem:[#allocation20_spill] sm:$0xff] }
 0x1bf   :  { %vm3052_vm5 = vcmp.lt.f32.partialorder %v5469_v16, 0.0  ;;  %v6318_v13 = vmul.f32 %v5907_v63, %v2829_v4  ;;  %v2767_v37 = vmul.f32 %v2735_v43, %v6151_v21  ;;  %4141 = vpow2.f32 %v2948_v1 }
 0x1c0   :  { %v6330_v5 = vmul.f32 0.70710677, %v6306_v14  ;;  %v6332_v59 = vadd.f32 1.0, %v596_v52  ;;  %v2896_v40 = vsub.f32 0.0, %v2864_v22  ;;  %v1694_v63 = vsel %vm1630_vm0, %v1662_v56, %v1598_v39  ;;  %v446_v56 = vpop.f32.mrf.mxu0 }
 0x1c1   :  { %v1695_v43 = vsel %vm1631_vm2, %v1663_v48, %v1599_v61  ;;  %v2736_v4 = vadd.f32 -0.28449672, %v2704_v2  ;;  %v2431_v1 = vor.u32 1.1754944e-38, %v2430_v28  ;;  %v1726_v8 = vadd.f32 1.0, %v1694_v63 }
 0x1c2   :  { %9021 = vst [vmem:[#allocation50_spill] sm:$0xff] %v6330_v5  ;;  %v1727_v51 = vadd.f32 1.0, %v1695_v43  ;;  %v2830_v6 = vmul.f32 %v2798_v53, %v6099_v50  ;;  %v6340_v9 = vand.u32 2147483647, %v6311_v17  ;;  %v2427_v52 = vsel %vm6325_vm6, %v6269_v26, %v2423_v0 }
 0x1c3   :  { %vm2429_vm8 = vcmp.eq.f32.partialorder %v2428_v19, 8.507059e+37  ;;  %v2799_v30 = vadd.f32 0.2548296, %v2767_v37  ;;  %v1758_v10 = vmul.f32 %v1726_v8, %v9022_v54  ;;  %v6348_v22 = vand.u32 2147483647, %v6330_v5 }
 0x1c4   :  { %v1759_v47 = vmul.f32 %v1727_v51, %v9023_v31  ;;  %v6352_v23 = vmul.f32 %v5980_v60, %v5740_v38  ;;  %vm3053_vm10 = vcmp.lt.f32.partialorder %v5646_v55, 0.0  ;;  %v6357_v50 = vadd.f32 %v5925_v42, %v6135_v44 }
 0x1c5   :  { %v2950_v26 = vmul.f32 1.442695, %v2896_v40  ;;  %v6360_v39 = vadd.f32 %v1896_v24, %v9025_v32  ;;  %v4142_v61 = vpop.eup %4141  ;;  %4143 = vrcp.f32 %v6332_v59  ;;  %v2768_v53 = vmul.f32 %v2736_v4, %v6230_v58 }
 0x1c6   :  { %9024 = vst [vmem:[#allocation42_spill] sm:$0xff] %v6352_v23  ;;  %v6364_v2 = vsel %vm2429_vm8, %v2431_v1, %v2427_v52  ;;  %v1778_v28 = vpack.c.bf16 %v1759_v47, %v1758_v10  ;;  %v9027_v38 = vsub.f32 1.0, %v6224_v11  ;;  %v842_v0 = vmul.f32 %v6288_v15, %v6251_v7  ;;  %v9029_v1 = vld [vmem:[#allocation10_spill] sm:$0xff]  ;;  %v9049_v23 = vld [vmem:[#allocation23_spill] sm:$0xff] }
 0x1c7   :  { %9026 = vst [vmem:[#allocation53_spill] sm:$0xff] %v6360_v39  ;;  %v1459_v44 = vsub.f32 0.0, %v6242_v12  ;;  %v597_v19 = vmul.f32 0.3275911, %v6340_v9  ;;  %v3021_v48 = vsub.f32 1.0, %v6318_v13  ;;  %v2990_v37 = vmul.f32 %v6259_v46, %v2830_v6 }
 0x1c8   :  { %v3084_v60 = vsub.f32 0.0, %v9027_v38  ;;  %v2831_v25 = vmul.f32 %v2799_v30, %v6151_v21  ;;  %1805 = vmatpush.bf16.msra.mxu2 %v1778_v28  ;;  %v2034_v40 = vmul.f32 0.3275911, %v6348_v22  ;;  %v852_v63 = vand.u32 2147483648, %v6251_v7 }
 0x1c9   :  { %4145 = vpow2.f32 %v2950_v26  ;;  %v2577_v43 = vmul.f32 1.0614054, %v6364_v2  ;;  %v6379_v4 = vmul.f32 0.70710677, %v6360_v39  ;;  %vm3054_vm11 = vcmp.lt.f32.partialorder %v5734_v29, 0.0 }
 0x1ca   :  { %v2800_v13 = vadd.f32 0.2548296, %v2768_v53  ;;  %v6384_v46 = vadd.f32 %v446_v56, %v9029_v1  ;;  %v9030_v21 = vmov %v9027_v38  ;;  %v843_v51 = vsub.f32 1.0, %v842_v0 }
 0x1cb   :  { %9028 = vst [vmem:[#allocation26_spill] sm:$0xff] %v6379_v4  ;;  %v3116_v8 = vsel %vm3052_vm5, %v3084_v60, %v9030_v21  ;;  %v1504_v24 = vmul.f32 1.442695, %v1459_v44  ;;  %v6390_v6 = vadd.f32 1.0, %v597_v19  ;;  %v6392_v52 = vpop.eup %4143  ;;  %v3085_v30 = vsub.f32 0.0, %v3021_v48  ;;  %v1899_v44 = vpop.f32.mrf.mxu3 }
 0x1cc   :  { %v3022_v54 = vsub.f32 1.0, %v2990_v37  ;;  %v2991_v10 = vmul.f32 %v4142_v61, %v2831_v25  ;;  %v6394_v31 = vadd.f32 1.0, %v2034_v40  ;;  %v6396_v47 = vor.u32 1.1754944e-38, %v852_v63  ;;  %v448_v25 = vpop.f32.mrf.mxu0 }
 0x1cd   :  { %v1428_v26 = vmul.f32 %v6275_v33, %v6275_v33  ;;  %v2609_v11 = vadd.f32 -1.4531521, %v2577_v43  ;;  %v6401_v16 = vand.u32 2147483647, %v6379_v4  ;;  %v3148_v32 = vadd.f32 1.0, %v3116_v8 }
 0x1ce   :  { %v6404_v53 = vmul.f32 0.5, %v5737_v36  ;;  %v2832_v28 = vmul.f32 %v2800_v13, %v6230_v58  ;;  %v6408_v38 = vmul.f32 0.70710677, %v6384_v46  ;;  %v844_v60 = vmul.f32 %v6288_v15, %v843_v51 }
 0x1cf   :  { %v4146_v61 = vpop.eup %4145  ;;  %v857_v0 = vmul.f32 %v6392_v52, %v6332_v59  ;;  %4147 = vrcp.f32 %v6390_v6  ;;  %v2035_v33 = vmul.f32 0.3275911, %v6401_v16  ;;  %v3117_v36 = vsel %vm3053_vm10, %v3085_v30, %v3021_v48 }
 0x1d0   :  { %9031 = vst [vmem:[#allocation32_spill] sm:$0xff] %v6408_v38  ;;  %v3086_v19 = vsub.f32 0.0, %v3022_v54  ;;  %v3023_v56 = vsub.f32 1.0, %v2991_v10  ;;  %4149 = vrcp.f32 %v6394_v31  ;;  %v1460_v58 = vsub.f32 0.0, %v1428_v26  ;;  %v9033_v26 = vld [vmem:[#allocation6_spill] sm:$0xff] }
 0x1d1   :  { %4151 = vpow2.f32 %v1504_v24  ;;  %v2641_v37 = vmul.f32 %v2609_v11, %v6364_v2  ;;  %v6419_v40 = vadd.f32 1.0, %v2035_v33  ;;  %v6422_v63 = vmul.f32 %v3148_v32, %v5765_v18 }
 0x1d2   :  { %v6425_v43 = vmul.f32 0.5, %v6245_v62  ;;  %v2992_v13 = vmul.f32 %v4146_v61, %v2832_v28  ;;  %v6428_v55 = vand.u32 2147483647, %v6408_v38  ;;  %v3149_v48 = vadd.f32 1.0, %v3117_v36 }
 0x1d3   :  { %9032 = vst [vmem:[#allocation27_spill] sm:$0xff] %v6422_v63  ;;  %vm3055_vm12 = vcmp.lt.f32.partialorder %v5760_v41, 0.0  ;;  %v858_v1 = vsub.f32 1.0, %v857_v0  ;;  %v867_v21 = vand.u32 2147483648, %v6332_v59  ;;  %v3118_v8 = vsel %vm3054_vm11, %v3086_v19, %v3022_v54 }
 0x1d4   :  { %v6435_v51 = vadd.f32 %v6288_v15, %v844_v60  ;;  %v3087_v18 = vsub.f32 0.0, %v3023_v56  ;;  %v1429_v62 = vmul.f32 %v6340_v9, %v6340_v9  ;;  %v1506_v30 = vmul.f32 1.442695, %v1460_v58  ;;  %v9036_v60 = vld [vmem:[#allocation161_spill] sm:$0xff]  ;;  %v451_v12 = vpop.f32.mrf.mxu0 }
 0x1d5   :  { %v6439_v24 = vpop.eup %4147  ;;  %v2673_v10 = vadd.f32 1.4214138, %v2641_v37  ;;  %4153 = vrcp.f32 %v6419_v40  ;;  %v6443_v11 = vadd.f32 %v1899_v44, %v9033_v26  ;;  %v3024_v54 = vsub.f32 1.0, %v2992_v13 }
 0x1d6   :  { %v6445_v32 = vpop.eup %4149  ;;  %v598_v28 = vmul.f32 0.3275911, %v6428_v55  ;;  %v6450_v61 = vadd.f32 %v448_v25, %v4643_v49  ;;  %v6455_v0 = vmul.f32 %v3149_v48, %v9036_v60  ;;  %v3150_v33 = vadd.f32 1.0, %v3118_v8  ;;  %v9044_v60 = vld [vmem:[#allocation51_spill] sm:$0xff] }
 0x1d7   :  { %9034 = vst [vmem:[#allocation34_spill] sm:$0xff] %v6443_v11  ;;  %v6452_v9 = vpop.eup %4151  ;;  %v859_v36 = vmul.f32 %v6392_v52, %v858_v1  ;;  %v6458_v44 = vor.u32 1.1754944e-38, %v867_v21  ;;  %v3119_v19 = vsel %vm3055_vm12, %v3087_v18, %v3023_v56  ;;  %v872_v58 = vmul.f32 %v6439_v24, %v6390_v6  ;;  %v1901_v1 = vpop.f32.mrf.mxu3  ;;  %v9039_v21 = vld [vmem:[#allocation89_spill] sm:$0xff] }
 0x1d8   :  { %9035 = vst [vmem:[#allocation61_spill] sm:$0xff] %v6450_v61  ;;  %v1461_v37 = vsub.f32 0.0, %v1429_v62  ;;  %v2865_v49 = vmul.f32 %v6215_v35, %v6215_v35  ;;  %4155 = vpow2.f32 %v1506_v30  ;;  %v2705_v25 = vmul.f32 %v2673_v10, %v6364_v2  ;;  %v9042_v35 = vld [vmem:[#allocation165_spill] sm:$0xff] }
 0x1d9   :  { %9037 = vst [vmem:[#allocation65_spill] sm:$0xff] %v6455_v0  ;;  %v2435_v13 = vmul.f32 %v6445_v32, %v6394_v31  ;;  %v6470_v48 = vmul.f32 0.70710677, %v6443_v11  ;;  %v1936_v41 = vmul.f32 0.5, %v9039_v21  ;;  %v3088_v56 = vsub.f32 0.0, %v3024_v54 }
 0x1da   :  { %v6473_v8 = vadd.f32 1.0, %v598_v28  ;;  %v6476_v18 = vmul.f32 0.70710677, %v6450_v61  ;;  %v6481_v30 = vmul.f32 %v3150_v33, %v9042_v35  ;;  %v3151_v10 = vadd.f32 1.0, %v3119_v19  ;;  %v9045_v28 = vld [vmem:[#allocation7_spill] sm:$0xff] }
 0x1db   :  { %9038 = vst [vmem:[#allocation64_spill] sm:$0xff] %v6470_v48  ;;  %v6478_v62 = vpop.eup %4153  ;;  %v6484_v26 = vadd.f32 %v6392_v52, %v859_v36  ;;  %vm3056_vm13 = vcmp.lt.f32.partialorder %v9044_v60, 0.0  ;;  %v873_v29 = vsub.f32 1.0, %v872_v58  ;;  %v1508_v21 = vmul.f32 1.442695, %v1461_v37 }
 0x1dc   :  { %9040 = vst [vmem:[#allocation66_spill] sm:$0xff] %v6473_v8  ;;  %v2897_v14 = vsub.f32 0.0, %v2865_v49  ;;  %v6488_v39 = vadd.f32 %v1901_v1, %v9045_v28  ;;  %v6491_v11 = vmul.f32 0.5, %v6295_v3  ;;  %v2737_v5 = vadd.f32 -0.28449672, %v2705_v25 }
 0x1dd   :  { %9041 = vst [vmem:[#allocation86_spill] sm:$0xff] %v6476_v18  ;;  %v2436_v4 = vsub.f32 1.0, %v2435_v13  ;;  %v6494_v33 = vand.u32 2147483647, %v6470_v48  ;;  %v3120_v19 = vsel %vm3056_vm13, %v3088_v56, %v3024_v54  ;;  %4157 = vrcp.f32 %v6473_v8 }
 0x1de   :  { %9043 = vst [vmem:[#allocation57_spill] sm:$0xff] %v6481_v30  ;;  %v6498_v36 = vand.u32 2147483647, %v6476_v18  ;;  %v2450_v58 = vmul.f32 %v6478_v62, %v6419_v40  ;;  %v6502_v37 = vpop.eup %4155  ;;  %v6505_v49 = vmul.f32 %v3151_v10, %v6404_v53  ;;  %v882_v25 = vand.u32 2147483648, %v6390_v6 }
 0x1df   :  { %9046 = vst [vmem:[#allocation67_spill] sm:$0xff] %v6488_v39  ;;  %v2036_v13 = vmul.f32 0.3275911, %v6494_v33  ;;  %v874_v54 = vmul.f32 %v6439_v24, %v873_v29  ;;  %4159 = vpow2.f32 %v1508_v21  ;;  %v2952_v1 = vmul.f32 1.442695, %v2897_v14 }
 0x1e0   :  { %9047 = vst [vmem:[#allocation19_spill] sm:$0xff] %v6505_v49  ;;  %v6512_v56 = vmul.f32 0.70710677, %v6488_v39  ;;  %v3152_v35 = vadd.f32 1.0, %v3120_v19  ;;  %v2769_v60 = vmul.f32 %v2737_v5, %v6364_v2  ;;  %v2437_v28 = vmul.f32 %v6445_v32, %v2436_v4 }
 0x1e1   :  { %v6516_v53 = vadd.f32 1.0, %v2036_v13  ;;  %v1430_v10 = vmul.f32 %v6428_v55, %v6428_v55  ;;  %v599_v3 = vmul.f32 0.3275911, %v6498_v36  ;;  %v2451_v48 = vsub.f32 1.0, %v2450_v58  ;;  %v453_v13 = vpop.f32.mrf.mxu0 }
 0x1e2   :  { %9048 = vst [vmem:[#allocation47_spill] sm:$0xff] %v6512_v56  ;;  %v6522_v29 = vadd.f32 %v451_v12, %v9049_v23  ;;  %vm2439_vm14 = vweird.f32 %v6394_v31  ;;  %vm2440_vm1 = vweird.f32 %v6445_v32  ;;  %v2445_v14 = vand.u32 2147483648, %v6394_v31 }
 0x1e3   :  { %4161 = vrcp.f32 %v6516_v53  ;;  %v6528_v5 = vpop.eup %4157  ;;  %v6530_v4 = vor.u32 1.1754944e-38, %v882_v25  ;;  %v6533_v55 = vmul.f32 0.5, %v6170_v45  ;;  %v6536_v21 = vand.u32 2147483647, %v6512_v56  ;;  %vm6551_vm15 = vmor %vm2439_vm14, %vm2440_vm1 }
 0x1e4   :  { %4163 = vpow2.f32 %v2952_v1  ;;  %v6539_v23 = vadd.f32 %v6439_v24, %v874_v54  ;;  %v2801_v12 = vadd.f32 0.2548296, %v2769_v60  ;;  %v2438_v19 = vadd.f32 %v6445_v32, %v2437_v28 }
 0x1e5   :  { %v2443_v58 = vand.u32 2147483647, %v6394_v31  ;;  %v6543_v39 = vpop.eup %4159  ;;  %v6545_v25 = vmul.f32 %v3152_v35, %v1936_v41  ;;  %v1462_v0 = vsub.f32 0.0, %v1430_v10  ;;  %v6555_v54 = vadd.f32 1.0, %v599_v3  ;;  %v9054_v31 = vld [vmem:[#allocation31_spill] sm:$0xff] }
 0x1e6   :  { %v2452_v1 = vmul.f32 %v6478_v62, %v2451_v48  ;;  %v887_v60 = vmul.f32 %v6528_v5, %v6473_v8  ;;  %v2446_v41 = vor.u32 1.1754944e-38, %v2445_v14  ;;  %v6562_v35 = vmul.f32 0.70710677, %v6522_v29 }
 0x1e7   :  { %9050 = vst [vmem:[#allocation74_spill] sm:$0xff] %v6545_v25  ;;  %vm2454_vm7 = vweird.f32 %v6419_v40  ;;  %vm2455_vm9 = vweird.f32 %v6478_v62  ;;  %v6567_v10 = vadd.f32 %v453_v13, %v9054_v31  ;;  %v2037_v3 = vmul.f32 0.3275911, %v6536_v21  ;;  %v9065_v25 = vld [vmem:[#allocation25_spill] sm:$0xff] }
 0x1e8   :  { %9053 = vst [vmem:[#allocation48_spill] sm:$0xff] %v6562_v35  ;;  %v2833_v48 = vmul.f32 %v2801_v12, %v6364_v2  ;;  %v2442_v14 = vsel %vm6551_vm15, %v6445_v32, %v2438_v19  ;;  %vm2444_vm0 = vcmp.eq.f32.partialorder %v2443_v58, 8.507059e+37  ;;  %v2460_v28 = vand.u32 2147483648, %v6419_v40  ;;  %vm6589_vm2 = vmor %vm2454_vm7, %vm2455_vm9 }
 0x1e9   :  { %9055 = vst [vmem:[#allocation38_spill] sm:$0xff] %v6567_v10  ;;  %v6570_v56 = vpop.eup %4161  ;;  %4165 = vrcp.f32 %v6555_v54  ;;  %v2453_v18 = vadd.f32 %v6478_v62, %v2452_v1  ;;  %v2458_v13 = vand.u32 2147483647, %v6419_v40  ;;  %v897_v61 = vand.u32 2147483648, %v6473_v8 }
 0x1ea   :  { %v4164_v63 = vpop.eup %4163  ;;  %v2465_v31 = vmul.f32 %v6570_v56, %v6516_v53  ;;  %v1510_v2 = vmul.f32 1.442695, %v1462_v0  ;;  %v2866_v12 = vmul.f32 %v6348_v22, %v6348_v22  ;;  %v6593_v19 = vadd.f32 1.0, %v2037_v3 }
 0x1eb   :  { %v6595_v58 = vsel %vm2444_vm0, %v2446_v41, %v2442_v14  ;;  %v6598_v45 = vand.u32 2147483647, %v6562_v35  ;;  %v6601_v0 = vmul.f32 0.70710677, %v6567_v10  ;;  %v2993_v22 = vmul.f32 %v4164_v63, %v2833_v48 }
 0x1ec   :  { %9058 = vst [vmem:[#allocation45_spill] sm:$0xff] %v6595_v58  ;;  %v2466_v1 = vsub.f32 1.0, %v2465_v31  ;;  %v888_v49 = vsub.f32 1.0, %v887_v60  ;;  %v1431_v40 = vmul.f32 %v6498_v36, %v6498_v36  ;;  %v2461_v30 = vor.u32 1.1754944e-38, %v2460_v28  ;;  %v456_v28 = vpop.f32.mrf.mxu0 }
 0x1ed   :  { %9059 = vst [vmem:[#allocation29_spill] sm:$0xff] %v6601_v0  ;;  %v2457_v3 = vsel %vm6589_vm2, %v6478_v62, %v2453_v18  ;;  %vm2459_vm3 = vcmp.eq.f32.partialorder %v2458_v13, 8.507059e+37  ;;  %4167 = vrcp.f32 %v6593_v19  ;;  %v2578_v14 = vmul.f32 1.0614054, %v6595_v58 }
 0x1ee   :  { %v2467_v41 = vmul.f32 %v6570_v56, %v2466_v1  ;;  %v2898_v31 = vsub.f32 0.0, %v2866_v12  ;;  %vm2469_vm4 = vweird.f32 %v6516_v53  ;;  %vm2470_vm5 = vweird.f32 %v6570_v56 }
 0x1ef   :  { %v6613_v63 = vpop.eup %4165  ;;  %v6616_v36 = vmul.f32 0.5, %v6384_v46  ;;  %v600_v60 = vmul.f32 0.3275911, %v6598_v45  ;;  %v2475_v18 = vand.u32 2147483648, %v6516_v53  ;;  %v6621_v62 = vand.u32 2147483647, %v6601_v0  ;;  %vm6635_vm8 = vmor %vm2469_vm4, %vm2470_vm5 }
 0x1f0   :  { %vm3057_vm6 = vcmp.lt.f32.partialorder %v6197_v34, 0.0  ;;  %v6624_v48 = vor.u32 1.1754944e-38, %v897_v61  ;;  %v6626_v13 = vsel %vm2459_vm3, %v2461_v30, %v2457_v3  ;;  %v2468_v12 = vadd.f32 %v6570_v56, %v2467_v41  ;;  %v1904_v61 = vpop.f32.mrf.mxu3  ;;  %v9066_v0 = vld [vmem:[#allocation16_spill] sm:$0xff] }
 0x1f1   :  { %9060 = vst [vmem:[#allocation30_spill] sm:$0xff] %v6616_v36  ;;  %v2473_v32 = vand.u32 2147483647, %v6516_v53  ;;  %v3025_v46 = vsub.f32 1.0, %v2993_v22  ;;  %v889_v1 = vmul.f32 %v6528_v5, %v888_v49  ;;  %4169 = vpow2.f32 %v1510_v2 }
 0x1f2   :  { %9061 = vst [vmem:[#allocation41_spill] sm:$0xff] %v6624_v48  ;;  %v1463_v36 = vsub.f32 0.0, %v1431_v40  ;;  %v2610_v30 = vadd.f32 -1.4531521, %v2578_v14  ;;  %v2954_v3 = vmul.f32 1.442695, %v2898_v31  ;;  %v902_v41 = vmul.f32 %v6613_v63, %v6555_v54 }
 0x1f3   :  { %9062 = vst [vmem:[#allocation62_spill] sm:$0xff] %v6626_v13  ;;  %v6642_v22 = vadd.f32 %v456_v28, %v9065_v25  ;;  %v6644_v49 = vpop.eup %4167  ;;  %v2579_v2 = vmul.f32 1.0614054, %v6626_v13  ;;  %v6647_v40 = vadd.f32 1.0, %v600_v60  ;;  %v2476_v53 = vor.u32 1.1754944e-38, %v2475_v18 }
 0x1f4   :  { %v601_v10 = vmul.f32 0.3275911, %v6621_v62  ;;  %v2472_v14 = vsel %vm6635_vm8, %v6570_v56, %v2468_v12  ;;  %vm2474_vm10 = vcmp.eq.f32.partialorder %v2473_v32, 8.507059e+37  ;;  %v2480_v31 = vmul.f32 %v6644_v49, %v6593_v19 }
 0x1f5   :  { %v6656_v25 = vadd.f32 %v1904_v61, %v9066_v0  ;;  %v3089_v28 = vsub.f32 0.0, %v3025_v46  ;;  %v912_v60 = vand.u32 2147483648, %v6555_v54  ;;  %v2867_v18 = vmul.f32 %v6401_v16, %v6401_v16 }
 0x1f6   :  { %v2642_v48 = vmul.f32 %v2610_v30, %v6595_v58  ;;  %v1512_v8 = vmul.f32 1.442695, %v1463_v36  ;;  %v2481_v38 = vsub.f32 1.0, %v2480_v31  ;;  %4171 = vpow2.f32 %v2954_v3 }
 0x1f7   :  { %9067 = vst [vmem:[#allocation82_spill] sm:$0xff] %v6656_v25  ;;  %v6664_v56 = vmul.f32 0.70710677, %v6656_v25  ;;  %v6666_v12 = vpop.eup %4169  ;;  %v903_v0 = vsub.f32 1.0, %v902_v41  ;;  %v2611_v32 = vadd.f32 -1.4531521, %v2579_v2  ;;  %v6668_v61 = vsel %vm2474_vm10, %v2476_v53, %v2472_v14 }
 0x1f8   :  { %9069 = vst [vmem:[#allocation22_spill] sm:$0xff] %v6666_v12  ;;  %v6671_v35 = vadd.f32 %v6528_v5, %v889_v1  ;;  %4173 = vrcp.f32 %v6647_v40  ;;  %v6674_v16 = vadd.f32 1.0, %v601_v10  ;;  %v6677_v36 = vmul.f32 0.70710677, %v6642_v22 }
 0x1f9   :  { %9068 = vst [vmem:[#allocation21_spill] sm:$0xff] %v6664_v56  ;;  %v3121_v30 = vsel %vm3057_vm6, %v3089_v28, %v3025_v46  ;;  %v2899_v31 = vsub.f32 0.0, %v2867_v18  ;;  %v2482_v3 = vmul.f32 %v6644_v49, %v2481_v38  ;;  %v6683_v41 = vand.u32 2147483647, %v6664_v56 }
 0x1fa   :  { %9070 = vst [vmem:[#allocation11_spill] sm:$0xff] %v6668_v61  ;;  %v2674_v2 = vadd.f32 1.4214138, %v2642_v48  ;;  %v6685_v53 = vor.u32 1.1754944e-38, %v912_v60  ;;  %4175 = vpow2.f32 %v1512_v8  ;;  %v2580_v1 = vmul.f32 1.0614054, %v6668_v61 }
 0x1fb   :  { %9071 = vst [vmem:[#allocation56_spill] sm:$0xff] %v6671_v35  ;;  %v904_v10 = vmul.f32 %v6613_v63, %v903_v0  ;;  %v2643_v14 = vmul.f32 %v2611_v32, %v6626_v13  ;;  %v6691_v25 = vmul.f32 0.5, %v6522_v29  ;;  %v2038_v34 = vmul.f32 0.3275911, %v6683_v41  ;;  %v1906_v29 = vpop.f32.mrf.mxu3 }
 0x1fc   :  { %9072 = vst [vmem:[#allocation69_spill] sm:$0xff] %v6677_v36  ;;  %v3153_v46 = vadd.f32 1.0, %v3121_v30  ;;  %v1432_v28 = vmul.f32 %v6598_v45, %v6598_v45  ;;  %4177 = vrcp.f32 %v6674_v16  ;;  %v570_v48 = vand.u32 2147483647, %v6677_v36  ;;  %v6698_v8 = vpop.eup %4171 }
 0x1fd   :  { %9073 = vst [vmem:[#allocation44_spill] sm:$0xff] %v6685_v53  ;;  %v2956_v60 = vmul.f32 1.442695, %v2899_v31  ;;  %v2483_v18 = vadd.f32 %v6644_v49, %v2482_v3  ;;  %vm2484_vm11 = vweird.f32 %v6593_v19  ;;  %vm2485_vm12 = vweird.f32 %v6644_v49 }
 0x1fe   :  { %9074 = vst [vmem:[#allocation55_spill] sm:$0xff] %v6691_v25  ;;  %v6703_v38 = vpop.eup %4173  ;;  %v2706_v0 = vmul.f32 %v2674_v2, %v6595_v58  ;;  %v2612_v32 = vadd.f32 -1.4531521, %v2580_v1  ;;  %v2868_v45 = vmul.f32 %v6494_v33, %v6494_v33  ;;  %v2490_v30 = vand.u32 2147483648, %v6593_v19  ;;  %vm6722_vm13 = vmor %vm2484_vm11, %vm2485_vm12 }
 0x1ff   :  { %9075 = vst [vmem:[#allocation17_spill] sm:$0xff] %v6698_v8  ;;  %v6710_v56 = vadd.f32 %v6613_v63, %v904_v10  ;;  %v2675_v31 = vadd.f32 1.4214138, %v2643_v14  ;;  %v2488_v3 = vand.u32 2147483647, %v6593_v19  ;;  %v6713_v8 = vadd.f32 1.0, %v2038_v34 }
 0x200   :  { %v6715_v25 = vpop.eup %4175  ;;  %v6718_v12 = vmul.f32 %v3153_v46, %v6533_v55  ;;  %v1464_v2 = vsub.f32 0.0, %v1432_v28  ;;  %v602_v1 = vmul.f32 0.3275911, %v570_v48  ;;  %v9081_v10 = vld [vmem:[#allocation18_spill] sm:$0xff]  ;;  %4179 = vpow2.f32 %v2956_v60 }
 0x201   :  { %9076 = vst [vmem:[#allocation37_spill] sm:$0xff] %v6710_v56  ;;  %v6727_v53 = vadd.f32 %v1906_v29, %v9081_v10  ;;  %v917_v14 = vmul.f32 %v6703_v38, %v6647_v40  ;;  %v927_v34 = vand.u32 2147483648, %v6647_v40  ;;  %v2487_v55 = vsel %vm6722_vm13, %v6644_v49, %v2483_v18 }
 0x202   :  { %9077 = vst [vmem:[#allocation39_spill] sm:$0xff] %v6715_v25  ;;  %v6735_v46 = vpop.eup %4177  ;;  %vm862_vm14 = vweird.f32 %v6392_v52  ;;  %v2738_v19 = vadd.f32 -0.28449672, %v2706_v0  ;;  %v2644_v28 = vmul.f32 %v2612_v32, %v6668_v61  ;;  %v2491_v29 = vor.u32 1.1754944e-38, %v2490_v30 }
 0x203   :  { %9078 = vst [vmem:[#allocation20_spill] sm:$0xff] %v6718_v12  ;;  %v2900_v12 = vsub.f32 0.0, %v2868_v45  ;;  %v2707_v60 = vmul.f32 %v2675_v31, %v6626_v13  ;;  %v1433_v10 = vmul.f32 %v6621_v62, %v6621_v62  ;;  %vm2489_vm1 = vcmp.eq.f32.partialorder %v2488_v3, 8.507059e+37  ;;  %v458_v31 = vpop.f32.mrf.mxu0 }
 0x204   :  { %9082 = vst [vmem:[#allocation10_spill] sm:$0xff] %v6727_v53  ;;  %4181 = vrcp.f32 %v6713_v8  ;;  %vm861_vm15 = vweird.f32 %v6332_v59  ;;  %v6745_v18 = vsel %vm2489_vm1, %v2491_v29, %v2487_v55  ;;  %v6747_v33 = vadd.f32 1.0, %v602_v1 }
 0x205   :  { %v6750_v0 = vmul.f32 0.70710677, %v6727_v53  ;;  %v918_v32 = vsub.f32 1.0, %v917_v14  ;;  %v1514_v45 = vmul.f32 1.442695, %v1464_v2  ;;  %v932_v30 = vmul.f32 %v6735_v46, %v6674_v16  ;;  %vm6806_vm3 = vmor %vm861_vm15, %vm862_vm14 }
 0x206   :  { %v2869_v62 = vmul.f32 %v6536_v21, %v6536_v21  ;;  %vm877_vm7 = vweird.f32 %v6439_v24  ;;  %v2770_v3 = vmul.f32 %v2738_v19, %v6595_v58  ;;  %v2676_v55 = vadd.f32 1.4214138, %v2644_v28  ;;  %v6761_v49 = vpop.eup %4179  ;;  %v9088_v19 = vld [vmem:[#allocation9_spill] sm:$0xff] }
 0x207   :  { %9083 = vst [vmem:[#allocation6_spill] sm:$0xff] %v6750_v0  ;;  %v2958_v29 = vmul.f32 1.442695, %v2900_v12  ;;  %v6759_v1 = vand.u32 2147483647, %v6750_v0  ;;  %v6763_v2 = vor.u32 1.1754944e-38, %v927_v34  ;;  %vm876_vm0 = vweird.f32 %v6390_v6 }
 0x208   :  { %9084 = vst [vmem:[#allocation161_spill] sm:$0xff] %v6761_v49  ;;  %v2739_v14 = vadd.f32 -0.28449672, %v2707_v60  ;;  %v1465_v53 = vsub.f32 0.0, %v1433_v10  ;;  %v2581_v25 = vmul.f32 1.0614054, %v6745_v18  ;;  %4183 = vrcp.f32 %v6747_v33  ;;  %vm878_vm4 = vmor %vm876_vm0, %vm877_vm7 }
 0x209   :  { %v9085_v21 = vand.u32 2147483647, %v6332_v59  ;;  %v1434_v12 = vmul.f32 %v570_v48, %v570_v48  ;;  %v6775_v28 = vadd.f32 %v458_v31, %v9088_v19  ;;  %v2039_v34 = vmul.f32 0.3275911, %v6759_v1 }
 0x20a   :  { %v6778_v60 = vpop.eup %4181  ;;  %v919_v10 = vmul.f32 %v6703_v38, %v918_v32  ;;  %4185 = vpow2.f32 %v1514_v45  ;;  %v933_v0 = vsub.f32 1.0, %v932_v30  ;;  %v9089_v49 = vand.u32 2147483647, %v6390_v6 }
 0x20b   :  { %vm6768_vm9 = vcmp.eq.f32.partialorder %v9085_v21, 8.507059e+37  ;;  %v2901_v21 = vsub.f32 0.0, %v2869_v62  ;;  %v6787_v56 = vadd.f32 0.2548296, %v2770_v3  ;;  %v2708_v48 = vmul.f32 %v2676_v55, %v6668_v61 }
 0x20c   :  { %vm6783_vm2 = vcmp.eq.f32.partialorder %v9089_v49, 8.507059e+37  ;;  %4187 = vpow2.f32 %v2958_v29  ;;  %v6791_v31 = vmul.f32 0.5, %v6642_v22  ;;  %v2771_v19 = vmul.f32 %v2739_v14, %v6626_v13 }
 0x20d   :  { %9092 = vst [vmem:[#allocation89_spill] sm:$0xff] %v6787_v56  ;;  %v942_v32 = vand.u32 2147483648, %v6674_v16  ;;  %v2613_v45 = vadd.f32 -1.4531521, %v2581_v25  ;;  %v6795_v30 = vadd.f32 1.0, %v2039_v34  ;;  %v1466_v49 = vsub.f32 0.0, %v1434_v12 }
 0x20e   :  { %9093 = vst [vmem:[#allocation165_spill] sm:$0xff] %v6791_v31  ;;  %v1516_v62 = vmul.f32 1.442695, %v1465_v53  ;;  %v2495_v35 = vmul.f32 %v6778_v60, %v6713_v8  ;;  %v6800_v3 = vmul.f32 0.70710677, %v6775_v28  ;;  %v6811_v25 = vadd.f32 %v6703_v38, %v919_v10  ;;  %v6815_v14 = vpop.eup %4183 }
 0x20f   :  { %v934_v53 = vmul.f32 %v6735_v46, %v933_v0  ;;  %v2960_v29 = vmul.f32 1.442695, %v2901_v21  ;;  %v2740_v12 = vadd.f32 -0.28449672, %v2708_v48  ;;  %v2870_v34 = vmul.f32 %v6683_v41, %v6683_v41 }
 0x210   :  { %9094 = vst [vmem:[#allocation51_spill] sm:$0xff] %v6800_v3  ;;  %4189 = vrcp.f32 %v6795_v30  ;;  %v864_v59 = vsel %vm6806_vm3, %v6392_v52, %v6484_v26  ;;  %v6824_v10 = vpop.eup %4185  ;;  %v6826_v56 = vadd.f32 0.2548296, %v2771_v19  ;;  %v6828_v0 = vor.u32 1.1754944e-38, %v942_v32 }
 0x211   :  { %9097 = vst [vmem:[#allocation7_spill] sm:$0xff] %v6824_v10  ;;  %v2645_v21 = vmul.f32 %v2613_v45, %v6745_v18  ;;  %v957_v48 = vand.u32 2147483648, %v6747_v33  ;;  %4191 = vpow2.f32 %v1516_v62  ;;  %v1518_v41 = vmul.f32 1.442695, %v1466_v49 }
 0x212   :  { %9098 = vst [vmem:[#allocation23_spill] sm:$0xff] %v6826_v56  ;;  %v6832_v55 = vpop.eup %4187  ;;  %v2496_v13 = vsub.f32 1.0, %v2495_v35  ;;  %v571_v31 = vand.u32 2147483647, %v6800_v3  ;;  %v6840_v52 = vadd.f32 %v6735_v46, %v934_v53  ;;  %4193 = vpow2.f32 %v2960_v29  ;;  %v9101_v53 = vld [vmem:[#allocation162_spill] sm:$0xff] }
 0x213   :  { %9099 = vst [vmem:[#allocation31_spill] sm:$0xff] %v6828_v0  ;;  %v947_v26 = vmul.f32 %v6815_v14, %v6747_v33  ;;  %v6847_v19 = vsel %vm6768_vm9, %v6458_v44, %v864_v59  ;;  %vm832_vm5 = vweird.f32 %v5925_v42  ;;  %v2772_v35 = vmul.f32 %v2740_v12, %v6668_v61  ;;  %v9193_v3 = vld [vmem:[#allocation98_spill] sm:$0xff]  ;;  %v9256_v0 = vld [vmem:[#allocation36_spill] sm:$0xff] }
 0x214   :  { %9100 = vst [vmem:[#allocation25_spill] sm:$0xff] %v6832_v55  ;;  %v2902_v6 = vsub.f32 0.0, %v2870_v34  ;;  %v879_v45 = vsel %vm878_vm4, %v6439_v24, %v6539_v23  ;;  %v2677_v62 = vadd.f32 1.4214138, %v2645_v21  ;;  %v6854_v49 = vor.u32 1.1754944e-38, %v957_v48  ;;  %v461_v55 = vpop.f32.mrf.mxu0 }
 0x215   :  { %v6859_v22 = vsel %vm6783_vm2, %v6530_v4, %v879_v45  ;;  %v1140_v44 = vmul.f32 1.0614054, %v6847_v19  ;;  %vm831_vm6 = vweird.f32 %v9101_v53  ;;  %vm847_vm8 = vweird.f32 %v6288_v15 }
 0x216   :  { %v6862_v36 = vpop.eup %4189  ;;  %4195 = vpow2.f32 %v1518_v41  ;;  %v2497_v29 = vmul.f32 %v6778_v60, %v2496_v13  ;;  %v603_v24 = vmul.f32 0.3275911, %v571_v31  ;;  %v1141_v23 = vmul.f32 1.0614054, %v6859_v22  ;;  %vm6939_vm7 = vmor %vm831_vm6, %vm832_vm5 }
 0x217   :  { %v948_v12 = vsub.f32 1.0, %v947_v26  ;;  %v2503_v34 = vand.u32 2147483647, %v6713_v8  ;;  %v2505_v4 = vand.u32 2147483648, %v6713_v8  ;;  %v2510_v58 = vmul.f32 %v6862_v36, %v6795_v30  ;;  %v6872_v59 = vpop.eup %4191 }
 0x218   :  { %9102 = vst [vmem:[#allocation16_spill] sm:$0xff] %v6872_v59  ;;  %vm846_vm10 = vweird.f32 %v6251_v7  ;;  %v6875_v21 = vadd.f32 0.2548296, %v2772_v35  ;;  %vm2499_vm11 = vweird.f32 %v6713_v8  ;;  %v2962_v13 = vmul.f32 1.442695, %v2902_v6  ;;  %v6878_v41 = vpop.eup %4193  ;;  %v1909_v59 = vpop.f32.mrf.mxu3 }
 0x219   :  { %v1172_v48 = vadd.f32 -1.4531521, %v1140_v44  ;;  %9104 = vst [vmem:[#allocation9_spill] sm:$0xff] %v6878_v41  ;;  %v2709_v26 = vmul.f32 %v2677_v62, %v6745_v18  ;;  %vm2500_vm12 = vweird.f32 %v6778_v60  ;;  %v6882_v45 = vmul.f32 %v571_v31, %v571_v31  ;;  %vm6960_vm0 = vmor %vm846_vm10, %vm847_vm8 }
 0x21a   :  { %9103 = vst [vmem:[#allocation18_spill] sm:$0xff] %v6875_v21  ;;  %v2511_v32 = vsub.f32 1.0, %v2510_v58  ;;  %v9105_v61 = vand.u32 2147483647, %v9101_v53  ;;  %v2498_v35 = vadd.f32 %v6778_v60, %v2497_v29  ;;  %v6891_v6 = vadd.f32 1.0, %v603_v24  ;;  %vm6921_vm15 = vmor %vm2499_vm11, %vm2500_vm12 }
 0x21b   :  { %v1173_v44 = vadd.f32 -1.4531521, %v1141_v23  ;;  %v1204_v41 = vmul.f32 %v1172_v48, %v6847_v19  ;;  %v6895_v62 = vmul.f32 %v6815_v14, %v948_v12  ;;  %vm6897_vm14 = vcmp.eq.f32.partialorder %v2503_v34, 8.507059e+37  ;;  %v9115_v12 = vld [vmem:[#allocation8_spill] sm:$0xff] }
 0x21c   :  { %vm6886_vm13 = vcmp.eq.f32.partialorder %v9105_v61, 8.507059e+37  ;;  %v6902_v58 = vmul.f32 0.5, %v6775_v28  ;;  %v2512_v61 = vmul.f32 %v6862_v36, %v2511_v32  ;;  %v6905_v21 = vpop.eup %4195  ;;  %v9112_v29 = vand.u32 2147483647, %v6251_v7 }
 0x21d   :  { %9111 = vst [vmem:[#allocation166_spill] sm:$0xff] %v6905_v21  ;;  %v2506_v23 = vor.u32 1.1754944e-38, %v2505_v4  ;;  %4197 = vpow2.f32 %v2962_v13  ;;  %v6914_v34 = vadd.f32 %v461_v55, %v9115_v12  ;;  %v1205_v48 = vmul.f32 %v1173_v44, %v6859_v22  ;;  %v9118_v4 = vld [vmem:[#allocation14_spill] sm:$0xff] }
 0x21e   :  { %9110 = vst [vmem:[#allocation162_spill] sm:$0xff] %v6902_v58  ;;  %vm6909_vm1 = vcmp.eq.f32.partialorder %v9112_v29, 8.507059e+37  ;;  %v2741_v28 = vadd.f32 -0.28449672, %v2709_v26  ;;  %v1467_v29 = vsub.f32 0.0, %v6882_v45  ;;  %v6927_v13 = vadd.f32 %v1909_v59, %v9118_v4 }
 0x21f   :  { %v1236_v58 = vadd.f32 1.4214138, %v1204_v41  ;;  %v2502_v55 = vsel %vm6921_vm15, %v6778_v60, %v2498_v35  ;;  %4199 = vrcp.f32 %v6891_v6  ;;  %v2871_v26 = vmul.f32 %v6759_v1, %v6759_v1 }
 0x220   :  { %9119 = vst [vmem:[#allocation8_spill] sm:$0xff] %v6927_v13  ;;  %v1237_v8 = vadd.f32 1.4214138, %v1205_v48  ;;  %v2513_v59 = vadd.f32 %v6862_v36, %v2512_v61  ;;  %vm2515_vm9 = vweird.f32 %v6862_v36  ;;  %v2518_v60 = vand.u32 2147483647, %v6795_v30 }
 0x221   :  { %v1268_v41 = vmul.f32 %v1236_v58, %v6847_v19  ;;  %v2520_v35 = vand.u32 2147483648, %v6795_v30  ;;  %v6950_v44 = vmul.f32 0.70710677, %v6927_v13  ;;  %v834_v53 = vsel %vm6939_vm7, %v5925_v42, %v6357_v50  ;;  %v9126_v42 = vld [vmem:[#allocation148_spill] sm:$0xff] }
 0x222   :  { %v1269_v1 = vmul.f32 %v1237_v8, %v6859_v22  ;;  %v2773_v58 = vmul.f32 %v2741_v28, %v6745_v18  ;;  %v6967_v12 = vsel %vm6897_vm14, %v2506_v23, %v2502_v55  ;;  %vm2514_vm2 = vweird.f32 %v6795_v30  ;;  %v9129_v8 = vld [vmem:[#allocation84_spill] sm:$0xff] }
 0x223   :  { %9122 = vst [vmem:[#allocation14_spill] sm:$0xff] %v6950_v44  ;;  %v1300_v48 = vadd.f32 -0.28449672, %v1268_v41  ;;  %v6970_v32 = vpop.eup %4197  ;;  %vm802_vm3 = vweird.f32 %v9126_v42  ;;  %v972_v50 = vand.u32 2147483648, %v6891_v6  ;;  %vm6976_vm4 = vmor %vm2514_vm2, %vm2515_vm9  ;;  %v2903_v28 = vsub.f32 0.0, %v2871_v26  ;;  %v9130_v41 = vld [vmem:[#allocation139_spill] sm:$0xff] }
 0x224   :  { %9125 = vst [vmem:[#allocation167_spill] sm:$0xff] %v6970_v32  ;;  %v1301_v4 = vadd.f32 -0.28449672, %v1269_v1  ;;  %v849_v30 = vsel %vm6960_vm0, %v6288_v15, %v6435_v51  ;;  %v2517_v31 = vsel %vm6976_vm4, %v6862_v36, %v2513_v59  ;;  %v6989_v55 = vand.u32 2147483647, %v6950_v44 }
 0x225   :  { %v1332_v23 = vmul.f32 %v1300_v48, %v6847_v19  ;;  %v6994_v45 = vsel %vm6886_vm13, %v9129_v8, %v834_v53  ;;  %v6996_v26 = vpop.eup %4199  ;;  %vm801_vm5 = vweird.f32 %v9130_v41  ;;  %v2582_v15 = vmul.f32 1.0614054, %v6967_v12 }
 0x226   :  { %vm2519_vm6 = vcmp.eq.f32.partialorder %v2518_v60, 8.507059e+37  ;;  %v2521_v51 = vor.u32 1.1754944e-38, %v2520_v35  ;;  %v1333_v36 = vmul.f32 %v1301_v4, %v6859_v22  ;;  %v7002_v59 = vmul.f32 0.70710677, %v6914_v34  ;;  %v9135_v60 = vld [vmem:[#allocation155_spill] sm:$0xff] }
 0x227   :  { %v1364_v1 = vadd.f32 0.2548296, %v1332_v23  ;;  %v2040_v61 = vmul.f32 0.3275911, %v6989_v55  ;;  %v7008_v56 = vsel %vm6909_vm1, %v6396_v47, %v849_v30  ;;  %v9132_v53 = vand.u32 2147483647, %v9130_v41  ;;  %vm803_vm1 = vmor %vm801_vm5, %vm802_vm3 }
 0x228   :  { %9131 = vst [vmem:[#allocation148_spill] sm:$0xff] %v7002_v59  ;;  %vm817_vm10 = vweird.f32 %v9135_v60  ;;  %vm1620_vm11 = vcmp.lt.f32.partialorder %v6262_v20, 0.0  ;;  %v1520_v35 = vmul.f32 1.442695, %v1467_v29  ;;  %v7018_v7 = vsel %vm2519_vm6, %v2521_v51, %v2517_v31 }
 0x229   :  { %vm7012_vm8 = vcmp.eq.f32.partialorder %v9132_v53, 8.507059e+37  ;;  %v1365_v4 = vadd.f32 0.2548296, %v1333_v36  ;;  %v1138_v23 = vmul.f32 1.0614054, %v6994_v45  ;;  %vm1621_vm12 = vcmp.lt.f32.partialorder %v6311_v17, 0.0 }
 0x22a   :  { %v2805_v47 = vadd.f32 0.2548296, %v2773_v58  ;;  %v962_v24 = vmul.f32 %v6996_v26, %v6891_v6  ;;  %v1396_v30 = vmul.f32 %v1364_v1, %v6847_v19  ;;  %v7025_v8 = vadd.f32 1.0, %v2040_v61  ;;  %v9136_v53 = vld [vmem:[#allocation145_spill] sm:$0xff] }
 0x22b   :  { %vm816_vm13 = vweird.f32 %v9136_v53  ;;  %v2614_v13 = vadd.f32 -1.4531521, %v2582_v15  ;;  %v2964_v44 = vmul.f32 1.442695, %v2903_v28  ;;  %v1397_v29 = vmul.f32 %v1365_v4, %v6859_v22 }
 0x22c   :  { %v1139_v31 = vmul.f32 1.0614054, %v7008_v56  ;;  %v2583_v51 = vmul.f32 1.0614054, %v7018_v7  ;;  %v572_v36 = vand.u32 2147483647, %v7002_v59  ;;  %v1556_v58 = vmul.f32 %v6502_v37, %v1396_v30  ;;  %vm7082_vm15 = vmor %vm816_vm13, %vm817_vm10 }
 0x22d   :  { %4201 = vrcp.f32 %v7025_v8  ;;  %v7036_v19 = vadd.f32 %v6815_v14, %v6895_v62  ;;  %v1557_v28 = vmul.f32 %v6543_v39, %v1397_v29  ;;  %v1170_v15 = vadd.f32 -1.4531521, %v1138_v23 }
 0x22e   :  { %v9137_v22 = vand.u32 2147483647, %v9136_v53  ;;  %v963_v4 = vsub.f32 1.0, %v962_v24  ;;  %v7046_v32 = vor.u32 1.1754944e-38, %v972_v50  ;;  %4203 = vpow2.f32 %v1520_v35 }
 0x22f   :  { %v1588_v37 = vsub.f32 1.0, %v1556_v58  ;;  %v7049_v30 = vmul.f32 %v2805_v47, %v6745_v18  ;;  %v2646_v62 = vmul.f32 %v2614_v13, %v6967_v12  ;;  %v1589_v1 = vsub.f32 1.0, %v1557_v28  ;;  %v9141_v18 = vld [vmem:[#allocation80_spill] sm:$0xff] }
 0x230   :  { %vm7042_vm14 = vcmp.eq.f32.partialorder %v9137_v22, 8.507059e+37  ;;  %v1171_v10 = vadd.f32 -1.4531521, %v1139_v31  ;;  %v2615_v39 = vadd.f32 -1.4531521, %v2583_v51  ;;  %4205 = vpow2.f32 %v2964_v44  ;;  %v9142_v44 = vld [vmem:[#allocation71_spill] sm:$0xff] }
 0x231   :  { %9140 = vst [vmem:[#allocation84_spill] sm:$0xff] %v7049_v30  ;;  %v604_v23 = vmul.f32 0.3275911, %v572_v36  ;;  %v1652_v24 = vsub.f32 0.0, %v1588_v37  ;;  %v1653_v50 = vsub.f32 0.0, %v1589_v1  ;;  %v1202_v35 = vmul.f32 %v1170_v15, %v6994_v45 }
 0x232   :  { %v1203_v29 = vmul.f32 %v1171_v10, %v7008_v56  ;;  %v804_v47 = vsel %vm803_vm1, %v9126_v42, %v9141_v18  ;;  %v964_v31 = vmul.f32 %v6996_v26, %v963_v4  ;;  %v7063_v58 = vmul.f32 %v572_v36, %v572_v36 }
 0x233   :  { %v7060_v13 = vpop.eup %4201  ;;  %v1684_v41 = vsel %vm1620_vm11, %v1652_v24, %v1588_v37  ;;  %v7070_v51 = vsel %vm7012_vm8, %v9142_v44, %v804_v47  ;;  %v2678_v28 = vadd.f32 1.4214138, %v2646_v62  ;;  %v1685_v10 = vsel %vm1621_vm12, %v1653_v50, %v1589_v1  ;;  %v9146_v62 = vld [vmem:[#allocation158_spill] sm:$0xff]  ;;  %v9149_v44 = vld [vmem:[#allocation77_spill] sm:$0xff] }
 0x234   :  { %v1716_v15 = vadd.f32 1.0, %v1684_v41  ;;  %v2525_v42 = vmul.f32 %v7060_v13, %v7025_v8  ;;  %v7076_v22 = vpop.eup %4203  ;;  %v7086_v48 = vadd.f32 1.0, %v604_v23  ;;  %v1717_v36 = vadd.f32 1.0, %v1685_v10 }
 0x235   :  { %9143 = vst [vmem:[#allocation139_spill] sm:$0xff] %v7076_v22  ;;  %v1234_v4 = vadd.f32 1.4214138, %v1202_v35  ;;  %v1235_v17 = vadd.f32 1.4214138, %v1203_v29  ;;  %v2647_v1 = vmul.f32 %v2615_v39, %v7018_v7  ;;  %v819_v24 = vsel %vm7082_vm15, %v9135_v60, %v9146_v62  ;;  %v9148_v29 = vld [vmem:[#allocation136_spill] sm:$0xff] }
 0x236   :  { %v2526_v37 = vsub.f32 1.0, %v2525_v42  ;;  %v1136_v50 = vmul.f32 1.0614054, %v7070_v51  ;;  %v7094_v53 = vpop.eup %4205  ;;  %v1748_v18 = vmul.f32 %v1716_v15, %v6425_v43  ;;  %v1749_v23 = vmul.f32 %v1717_v36, %v6491_v11  ;;  %v9150_v42 = vld [vmem:[#allocation128_spill] sm:$0xff] }
 0x237   :  { %9147 = vst [vmem:[#allocation155_spill] sm:$0xff] %v7094_v53  ;;  %v1266_v47 = vmul.f32 %v1234_v4, %v6994_v45  ;;  %v1267_v35 = vmul.f32 %v1235_v17, %v7008_v56  ;;  %vm772_vm7 = vweird.f32 %v9148_v29  ;;  %v2710_v39 = vmul.f32 %v2678_v28, %v6967_v12 }
 0x238   :  { %v2527_v41 = vmul.f32 %v7060_v13, %v2526_v37  ;;  %v7106_v60 = vsel %vm7042_vm14, %v9149_v44, %v819_v24  ;;  %v1168_v10 = vadd.f32 -1.4531521, %v1136_v50  ;;  %4207 = vrcp.f32 %v7086_v48  ;;  %v9152_v50 = vld [vmem:[#allocation141_spill] sm:$0xff] }
 0x239   :  { %v1773_v43 = vpack.c.bf16 %v1749_v23, %v1748_v18  ;;  %v1298_v11 = vadd.f32 -0.28449672, %v1266_v47  ;;  %v1299_v15 = vadd.f32 -0.28449672, %v1267_v35  ;;  %vm771_vm9 = vweird.f32 %v9150_v42  ;;  %v9155_v44 = vld [vmem:[#allocation157_spill] sm:$0xff] }
 0x23a   :  { %v2679_v20 = vadd.f32 1.4214138, %v2647_v1  ;;  %v2528_v36 = vadd.f32 %v7060_v13, %v2527_v41  ;;  %vm2530_vm0 = vweird.f32 %v7060_v13  ;;  %v1137_v28 = vmul.f32 1.0614054, %v7106_v60  ;;  %v463_v41 = vpop.f32.mrf.mxu0  ;;  %vm7167_vm12 = vmor %vm771_vm9, %vm772_vm7 }
 0x23b   :  { %v7114_v4 = vmul.f32 0.5, %v6914_v34  ;;  %1789 = vmatpush.bf16.msrb.mxu1 %v1773_v43  ;;  %v1330_v61 = vmul.f32 %v1298_v11, %v6994_v45  ;;  %v1331_v17 = vmul.f32 %v1299_v15, %v7008_v56  ;;  %v1200_v37 = vmul.f32 %v1168_v10, %v7070_v51 }
 0x23c   :  { %vm2529_vm2 = vweird.f32 %v7025_v8  ;;  %v2533_v1 = vand.u32 2147483647, %v7025_v8  ;;  %v2535_v62 = vand.u32 2147483648, %v7025_v8  ;;  %v1169_v24 = vadd.f32 -1.4531521, %v1137_v28  ;;  %v9159_v28 = vld [vmem:[#allocation43_spill] sm:$0xff] }
 0x23d   :  { %9151 = vst [vmem:[#allocation145_spill] sm:$0xff] %v7114_v4  ;;  %vm787_vm3 = vweird.f32 %v9152_v50  ;;  %v7124_v18 = vadd.f32 %v6996_v26, %v964_v31  ;;  %v1468_v34 = vsub.f32 0.0, %v7063_v58  ;;  %vm7127_vm4 = vmor %vm2529_vm2, %vm2530_vm0  ;;  %v1362_v47 = vadd.f32 0.2548296, %v1330_v61 }
 0x23e   :  { %v1363_v35 = vadd.f32 0.2548296, %v1331_v17  ;;  %vm1618_vm5 = vcmp.lt.f32.partialorder %v9155_v44, 0.0  ;;  %vm1619_vm6 = vcmp.lt.f32.partialorder %v5971_v57, 0.0  ;;  %v2742_v8 = vadd.f32 -0.28449672, %v2710_v39  ;;  %v7138_v58 = vpop.eup %4207 }
 0x23f   :  { %v2711_v10 = vmul.f32 %v2679_v20, %v7018_v7  ;;  %v2532_v31 = vsel %vm7127_vm4, %v7060_v13, %v2528_v36  ;;  %v9156_v11 = vand.u32 2147483647, %v9150_v42  ;;  %vm786_vm10 = vweird.f32 %v9159_v28 }
 0x240   :  { %v1394_v39 = vmul.f32 %v1362_v47, %v6994_v45  ;;  %v1395_v20 = vmul.f32 %v1363_v35, %v7008_v56  ;;  %v1201_v61 = vmul.f32 %v1169_v24, %v7106_v60  ;;  %v1232_v17 = vadd.f32 1.4214138, %v1200_v37  ;;  %vm7203_vm1 = vmor %vm786_vm10, %vm787_vm3 }
 0x241   :  { %vm7142_vm8 = vcmp.eq.f32.partialorder %v9156_v11, 8.507059e+37  ;;  %v987_v23 = vand.u32 2147483648, %v7086_v48  ;;  %vm2534_vm11 = vcmp.eq.f32.partialorder %v2533_v1, 8.507059e+37  ;;  %v2536_v13 = vor.u32 1.1754944e-38, %v2535_v62  ;;  %v9160_v11 = vld [vmem:[#allocation83_spill] sm:$0xff]  ;;  %v1911_v1 = vpop.f32.mrf.mxu3 }
 0x242   :  { %v7152_v36 = vadd.f32 %v463_v41, %v8995_v27  ;;  %v1554_v43 = vmul.f32 %v9160_v11, %v1394_v39  ;;  %v1555_v30 = vmul.f32 %v6452_v9, %v1395_v20  ;;  %v1233_v53 = vadd.f32 1.4214138, %v1201_v61  ;;  %v9166_v39 = vld [vmem:[#allocation153_spill] sm:$0xff] }
 0x243   :  { %v1264_v4 = vmul.f32 %v1232_v17, %v7070_v51  ;;  %v2743_v45 = vadd.f32 -0.28449672, %v2711_v10  ;;  %v977_v56 = vmul.f32 %v7138_v58, %v7086_v48  ;;  %v7159_v24 = vsel %vm2534_vm11, %v2536_v13, %v2532_v31 }
 0x244   :  { %v2872_v37 = vmul.f32 %v6989_v55, %v6989_v55  ;;  %v9163_v9 = vand.u32 2147483647, %v9159_v28  ;;  %v1586_v47 = vsub.f32 1.0, %v1554_v43  ;;  %v1587_v35 = vsub.f32 1.0, %v1555_v30  ;;  %v9168_v43 = vld [vmem:[#allocation15_spill] sm:$0xff] }
 0x245   :  { %v1265_v41 = vmul.f32 %v1233_v53, %v7106_v60  ;;  %v1296_v55 = vadd.f32 -0.28449672, %v1264_v4  ;;  %v2774_v10 = vmul.f32 %v2742_v8, %v6967_v12  ;;  %v7179_v31 = vor.u32 1.1754944e-38, %v987_v23 }
 0x246   :  { %vm7173_vm13 = vcmp.eq.f32.partialorder %v9163_v9, 8.507059e+37  ;;  %v1522_v42 = vmul.f32 1.442695, %v1468_v34  ;;  %v774_v20 = vsel %vm7167_vm12, %v9148_v29, %v9166_v39  ;;  %v1650_v61 = vsub.f32 0.0, %v1586_v47  ;;  %v9170_v34 = vld [vmem:[#allocation91_spill] sm:$0xff] }
 0x247   :  { %v1651_v17 = vsub.f32 0.0, %v1587_v35  ;;  %v7186_v13 = vmul.f32 0.70710677, %v7152_v36  ;;  %v7189_v30 = vadd.f32 %v1911_v1, %v9168_v43  ;;  %v978_v53 = vsub.f32 1.0, %v977_v56  ;;  %v9178_v43 = vld [vmem:[#allocation159_spill] sm:$0xff] }
 0x248   :  { %v2584_v4 = vmul.f32 1.0614054, %v7159_v24  ;;  %v1297_v8 = vadd.f32 -0.28449672, %v1265_v41  ;;  %v1328_v23 = vmul.f32 %v1296_v55, %v7070_v51  ;;  %vm742_vm14 = vweird.f32 %v9170_v34  ;;  %v9181_v56 = vld [vmem:[#allocation119_spill] sm:$0xff] }
 0x249   :  { %9167 = vst [vmem:[#allocation80_spill] sm:$0xff] %v7186_v13  ;;  %v2775_v11 = vmul.f32 %v2743_v45, %v7018_v7  ;;  %v2904_v27 = vsub.f32 0.0, %v2872_v37  ;;  %v1682_v29 = vsel %vm1618_vm5, %v1650_v61, %v1586_v47  ;;  %v1683_v9 = vsel %vm1619_vm6, %v1651_v17, %v1587_v35  ;;  %v9173_v45 = vld [vmem:[#allocation150_spill] sm:$0xff]  ;;  %v9174_v37 = vld [vmem:[#allocation88_spill] sm:$0xff]  ;;  %v9177_v61 = vld [vmem:[#allocation129_spill] sm:$0xff] }
 0x24a   :  { %9169 = vst [vmem:[#allocation71_spill] sm:$0xff] %v7189_v30  ;;  %v1714_v1 = vadd.f32 1.0, %v1682_v29  ;;  %v1715_v41 = vadd.f32 1.0, %v1683_v9  ;;  %v1329_v55 = vmul.f32 %v1297_v8, %v7106_v60  ;;  %v7211_v44 = vsel %vm7142_vm8, %v9173_v45, %v774_v20  ;;  %v9176_v35 = vld [vmem:[#allocation156_spill] sm:$0xff]  ;;  %v9179_v20 = vld [vmem:[#allocation85_spill] sm:$0xff] }
 0x24b   :  { %vm741_vm15 = vweird.f32 %v9174_v37  ;;  %v573_v57 = vand.u32 2147483647, %v7186_v13  ;;  %v1360_v47 = vadd.f32 0.2548296, %v1328_v23  ;;  %v7216_v28 = vmul.f32 0.70710677, %v7189_v30 }
 0x24c   :  { %v789_v39 = vsel %vm7203_vm1, %v9152_v50, %v9176_v35  ;;  %vm1616_vm7 = vcmp.lt.f32.partialorder %v9177_v61, 0.0  ;;  %v2616_v17 = vadd.f32 -1.4531521, %v2584_v4  ;;  %v1746_v15 = vmul.f32 %v1714_v1, %v9178_v43  ;;  %v9180_v9 = vld [vmem:[#allocation133_spill] sm:$0xff]  ;;  %v9182_v1 = vld [vmem:[#allocation152_spill] sm:$0xff]  ;;  %vm7278_vm11 = vmor %vm741_vm15, %vm742_vm14 }
 0x24d   :  { %9175 = vst [vmem:[#allocation158_spill] sm:$0xff] %v7216_v28  ;;  %v1747_v8 = vmul.f32 %v1715_v41, %v9179_v20  ;;  %v1361_v29 = vadd.f32 0.2548296, %v1329_v55  ;;  %vm1617_vm9 = vcmp.lt.f32.partialorder %v9180_v9, 0.0  ;;  %v2806_v45 = vadd.f32 0.2548296, %v2774_v10 }
 0x24e   :  { %v979_v23 = vmul.f32 %v7138_v58, %v978_v53  ;;  %v1392_v30 = vmul.f32 %v1360_v47, %v7070_v51  ;;  %v7229_v22 = vand.u32 2147483647, %v7216_v28  ;;  %vm757_vm0 = vweird.f32 %v9181_v56  ;;  %v9186_v55 = vld [vmem:[#allocation160_spill] sm:$0xff]  ;;  %v9189_v20 = vld [vmem:[#allocation163_spill] sm:$0xff]  ;;  %v9191_v28 = vld [vmem:[#allocation49_spill] sm:$0xff] }
 0x24f   :  { %v2966_v50 = vmul.f32 1.442695, %v2904_v27  ;;  %v1772_v35 = vpack.c.bf16 %v1747_v8, %v1746_v15  ;;  %v1393_v4 = vmul.f32 %v1361_v29, %v7106_v60  ;;  %v7236_v41 = vsel %vm7173_vm13, %v9182_v1, %v789_v39  ;;  %v9187_v15 = vld [vmem:[#allocation59_spill] sm:$0xff]  ;;  %v9188_v60 = vld [vmem:[#allocation112_spill] sm:$0xff] }
 0x250   :  { %v9183_v10 = vand.u32 2147483647, %v9174_v37  ;;  %v605_v51 = vmul.f32 0.3275911, %v573_v57  ;;  %v1552_v47 = vmul.f32 %v9186_v55, %v1392_v30  ;;  %v2041_v43 = vmul.f32 0.3275911, %v7229_v22 }
 0x251   :  { %v1134_v27 = vmul.f32 1.0614054, %v7211_v44  ;;  %vm712_vm3 = vweird.f32 %v9187_v15  ;;  %vm756_vm4 = vweird.f32 %v9188_v60  ;;  %v2807_v62 = vadd.f32 0.2548296, %v2775_v11  ;;  %1790 = vmatpush.bf16.msrb.mxu1 %v1772_v35  ;;  %v9190_v1 = vld [vmem:[#allocation100_spill] sm:$0xff] }
 0x252   :  { %vm7240_vm2 = vcmp.eq.f32.partialorder %v9183_v10, 8.507059e+37  ;;  %v2648_v39 = vmul.f32 %v2616_v17, %v7159_v24  ;;  %v1553_v8 = vmul.f32 %v9189_v20, %v1393_v4  ;;  %v1135_v29 = vmul.f32 1.0614054, %v7236_v41  ;;  %vm7324_vm1 = vmor %vm756_vm4, %vm757_vm0 }
 0x253   :  { %vm727_vm5 = vweird.f32 %v9190_v1  ;;  %4209 = vpow2.f32 %v1522_v42  ;;  %v1584_v30 = vsub.f32 1.0, %v1552_v47  ;;  %v7253_v10 = vadd.f32 1.0, %v2041_v43 }
 0x254   :  { %v1166_v55 = vadd.f32 -1.4531521, %v1134_v27  ;;  %vm711_vm6 = vweird.f32 %v9191_v28  ;;  %v7257_v21 = vmul.f32 %v2806_v45, %v6967_v12  ;;  %v7259_v11 = vmul.f32 %v573_v57, %v573_v57 }
 0x255   :  { %v1585_v17 = vsub.f32 1.0, %v1553_v8  ;;  %v1167_v35 = vadd.f32 -1.4531521, %v1135_v29  ;;  %vm726_vm8 = vweird.f32 %v9193_v3  ;;  %v9194_v4 = vand.u32 2147483647, %v9188_v60  ;;  %v9203_v8 = vld [vmem:[#allocation109_spill] sm:$0xff] }
 0x256   :  { %9192 = vst [vmem:[#allocation136_spill] sm:$0xff] %v7257_v21  ;;  %v7269_v42 = vadd.f32 %v7138_v58, %v979_v23  ;;  %v7271_v47 = vadd.f32 1.0, %v605_v51  ;;  %v1648_v43 = vsub.f32 0.0, %v1584_v30  ;;  %4211 = vrcp.f32 %v7253_v10  ;;  %vm7358_vm4 = vmor %vm726_vm8, %vm727_vm5 }
 0x257   :  { %vm7264_vm10 = vcmp.eq.f32.partialorder %v9194_v4, 8.507059e+37  ;;  %v7283_v57 = vmul.f32 %v2807_v62, %v7018_v7  ;;  %v2680_v45 = vadd.f32 1.4214138, %v2648_v39  ;;  %4213 = vpow2.f32 %v2966_v50  ;;  %v9204_v7 = vld [vmem:[#allocation97_spill] sm:$0xff] }
 0x258   :  { %v1649_v23 = vsub.f32 0.0, %v1585_v17  ;;  %v9200_v51 = vand.u32 2147483647, %v9191_v28  ;;  %vm682_vm13 = vweird.f32 %v9203_v8  ;;  %v1680_v37 = vsel %vm1616_vm7, %v1648_v43, %v1584_v30  ;;  %v9207_v30 = vld [vmem:[#allocation102_spill] sm:$0xff]  ;;  %vm7345_vm7 = vmor %vm711_vm6, %vm712_vm3 }
 0x259   :  { %9199 = vst [vmem:[#allocation77_spill] sm:$0xff] %v7283_v57  ;;  %v1198_v29 = vmul.f32 %v1166_v55, %v7211_v44  ;;  %v1199_v4 = vmul.f32 %v1167_v35, %v7236_v41  ;;  %v744_v50 = vsel %vm7278_vm11, %v9170_v34, %v9204_v7  ;;  %v7301_v62 = vmul.f32 0.5, %v7152_v36  ;;  %v7306_v61 = vpop.eup %4209  ;;  %v9208_v7 = vld [vmem:[#allocation93_spill] sm:$0xff]  ;;  %v9214_v36 = vld [vmem:[#allocation135_spill] sm:$0xff] }
 0x25a   :  { %vm7287_vm12 = vcmp.eq.f32.partialorder %v9200_v51, 8.507059e+37  ;;  %v1681_v51 = vsel %vm1617_vm9, %v1649_v23, %v1585_v17  ;;  %v1712_v21 = vadd.f32 1.0, %v1680_v37  ;;  %9206 = vst [vmem:[#allocation141_spill] sm:$0xff] %v7306_v61  ;;  %vm681_vm14 = vweird.f32 %v9207_v30  ;;  %v9211_v37 = vld [vmem:[#allocation144_spill] sm:$0xff]  ;;  %v9222_v23 = vld [vmem:[#allocation121_spill] sm:$0xff] }
 0x25b   :  { %9205 = vst [vmem:[#allocation128_spill] sm:$0xff] %v7301_v62  ;;  %4215 = vrcp.f32 %v7271_v47  ;;  %v1713_v55 = vadd.f32 1.0, %v1681_v51  ;;  %v2548_v35 = vand.u32 2147483647, %v7253_v10  ;;  %v1230_v43 = vadd.f32 1.4214138, %v1198_v29  ;;  %vm7393_vm6 = vmor %vm681_vm14, %vm682_vm13 }
 0x25c   :  { %v7312_v34 = vmul.f32 %v2680_v45, %v7159_v24  ;;  %v1231_v12 = vadd.f32 1.4214138, %v1199_v4  ;;  %v7318_v9 = vsel %vm7240_vm2, %v9208_v7, %v744_v50  ;;  %v4212_v17 = vpop.eup %4211  ;;  %v1744_v45 = vmul.f32 %v1712_v21, %v9211_v37  ;;  %v9212_v29 = vld [vmem:[#allocation151_spill] sm:$0xff]  ;;  %v9219_v37 = vld [vmem:[#allocation58_spill] sm:$0xff]  ;;  %v9223_v57 = vld [vmem:[#allocation73_spill] sm:$0xff] }
 0x25d   :  { %v1745_v51 = vmul.f32 %v1713_v55, %v9212_v29  ;;  %vm2544_vm15 = vweird.f32 %v7253_v10  ;;  %v1262_v4 = vmul.f32 %v1230_v43, %v7211_v44  ;;  %v7332_v53 = vpop.eup %4213  ;;  %v2540_v50 = vmul.f32 %v4212_v17, %v7253_v10  ;;  %v9226_v62 = vld [vmem:[#allocation68_spill] sm:$0xff] }
 0x25e   :  { %9213 = vst [vmem:[#allocation157_spill] sm:$0xff] %v7332_v53  ;;  %v2550_v7 = vand.u32 2147483648, %v7253_v10  ;;  %v1263_v60 = vmul.f32 %v1231_v12, %v7236_v41  ;;  %v759_v39 = vsel %vm7324_vm1, %v9181_v56, %v9214_v36  ;;  %vm2545_vm9 = vweird.f32 %v4212_v17 }
 0x25f   :  { %v1771_v55 = vpack.c.bf16 %v1745_v51, %v1744_v45  ;;  %vm7349_vm0 = vcmp.eq.f32.partialorder %v2548_v35, 8.507059e+37  ;;  %v1294_v12 = vadd.f32 -0.28449672, %v1262_v4  ;;  %vm697_vm2 = vweird.f32 %v9219_v37  ;;  %vm2546_vm11 = vmor %vm2544_vm15, %vm2545_vm9 }
 0x260   :  { %v2541_v28 = vsub.f32 1.0, %v2540_v50  ;;  %v1295_v36 = vadd.f32 -0.28449672, %v1263_v60  ;;  %v7365_v35 = vsel %vm7264_vm10, %v9222_v23, %v759_v39  ;;  %v1132_v45 = vmul.f32 1.0614054, %v7318_v9  ;;  %v9224_v60 = vld [vmem:[#allocation107_spill] sm:$0xff] }
 0x261   :  { %v7368_v29 = vpop.eup %4215  ;;  %1791 = vmatpush.bf16.msrb.mxu1 %v1771_v55  ;;  %v1326_v51 = vmul.f32 %v1294_v12, %v7211_v44  ;;  %v1133_v4 = vmul.f32 1.0614054, %v7365_v35  ;;  %v714_v50 = vsel %vm7345_vm7, %v9187_v15, %v9223_v57  ;;  %v729_v20 = vsel %vm7358_vm4, %v9190_v1, %v9224_v60  ;;  %v9225_v39 = vld [vmem:[#allocation46_spill] sm:$0xff] }
 0x262   :  { %vm696_vm3 = vweird.f32 %v9225_v39  ;;  %v2542_v23 = vmul.f32 %v4212_v17, %v2541_v28  ;;  %v1327_v53 = vmul.f32 %v1295_v36, %v7236_v41  ;;  %v1164_v55 = vadd.f32 -1.4531521, %v1132_v45  ;;  %v9230_v57 = vld [vmem:[#allocation118_spill] sm:$0xff]  ;;  %v9232_v36 = vld [vmem:[#allocation120_spill] sm:$0xff] }
 0x263   :  { %v7385_v12 = vsel %vm7287_vm12, %v9226_v62, %v714_v50  ;;  %v2551_v61 = vor.u32 1.1754944e-38, %v2550_v7  ;;  %v1358_v13 = vadd.f32 0.2548296, %v1326_v51  ;;  %v1165_v21 = vadd.f32 -1.4531521, %v1133_v4  ;;  %v9231_v7 = vld [vmem:[#allocation105_spill] sm:$0xff]  ;;  %vm7432_vm13 = vmor %vm696_vm3, %vm697_vm2 }
 0x264   :  { %v9227_v15 = vand.u32 2147483647, %v9193_v3  ;;  %vm1614_vm8 = vcmp.lt.f32.partialorder %v9230_v57, 0.0  ;;  %v2543_v56 = vadd.f32 %v4212_v17, %v2542_v23  ;;  %v1359_v27 = vadd.f32 0.2548296, %v1327_v53 }
 0x265   :  { %v1196_v62 = vmul.f32 %v1164_v55, %v7318_v9  ;;  %vm1615_vm10 = vcmp.lt.f32.partialorder %v9232_v36, 0.0  ;;  %v1390_v3 = vmul.f32 %v1358_v13, %v7211_v44  ;;  %v1197_v45 = vmul.f32 %v1165_v21, %v7365_v35  ;;  %v9234_v13 = vld [vmem:[#allocation154_spill] sm:$0xff] }
 0x266   :  { %vm731_vm5 = vcmp.eq.f32.partialorder %v9227_v15, 8.507059e+37  ;;  %v1130_v51 = vmul.f32 1.0614054, %v7385_v12  ;;  %v2547_v53 = vsel %vm2546_vm11, %v4212_v17, %v2543_v56  ;;  %v1391_v50 = vmul.f32 %v1359_v27, %v7236_v41  ;;  %v9247_v36 = vld [vmem:[#allocation138_spill] sm:$0xff] }
 0x267   :  { %v7400_v28 = vsel %vm731_vm5, %v9231_v7, %v729_v20  ;;  %v1228_v60 = vadd.f32 1.4214138, %v1196_v62  ;;  %v9233_v20 = vld [vmem:[#allocation123_spill] sm:$0xff]  ;;  %v7417_v10 = vsel %vm7349_vm0, %v2551_v61, %v2547_v53  ;;  %v1550_v44 = vmul.f32 %v9234_v13, %v1390_v3  ;;  %v9235_v7 = vld [vmem:[#allocation33_spill] sm:$0xff] }
 0x268   :  { %v1131_v4 = vmul.f32 1.0614054, %v7400_v28  ;;  %v684_v23 = vsel %vm7393_vm6, %v9203_v8, %v9233_v20  ;;  %v1229_v55 = vadd.f32 1.4214138, %v1197_v45  ;;  %v1162_v21 = vadd.f32 -1.4531521, %v1130_v51 }
 0x269   :  { %v2585_v15 = vmul.f32 1.0614054, %v7417_v10  ;;  %v1551_v17 = vmul.f32 %v9235_v7, %v1391_v50  ;;  %v1260_v41 = vmul.f32 %v1228_v60, %v7318_v9  ;;  %v1582_v27 = vsub.f32 1.0, %v1550_v44  ;;  %v9242_v7 = vld [vmem:[#allocation126_spill] sm:$0xff] }
 0x26a   :  { %v1163_v56 = vadd.f32 -1.4531521, %v1131_v4  ;;  %v1261_v62 = vmul.f32 %v1229_v55, %v7365_v35  ;;  %v1194_v8 = vmul.f32 %v1162_v21, %v7385_v12  ;;  %v9236_v43 = vand.u32 2147483647, %v9207_v30  ;;  %v9239_v4 = vld [vmem:[#allocation134_spill] sm:$0xff]  ;;  %v9240_v30 = vld [vmem:[#allocation13_spill] sm:$0xff] }
 0x26b   :  { %v2617_v61 = vadd.f32 -1.4531521, %v2585_v15  ;;  %v1583_v1 = vsub.f32 1.0, %v1551_v17  ;;  %v1292_v3 = vadd.f32 -0.28449672, %v1260_v41  ;;  %vm652_vm14 = vweird.f32 %v9239_v4  ;;  %v9241_v21 = vld [vmem:[#allocation70_spill] sm:$0xff] }
 0x26c   :  { %vm686_vm12 = vcmp.eq.f32.partialorder %v9236_v43, 8.507059e+37  ;;  %v1195_v45 = vmul.f32 %v1163_v56, %v7400_v28  ;;  %v1646_v53 = vsub.f32 0.0, %v1582_v27  ;;  %v1293_v50 = vadd.f32 -0.28449672, %v1261_v62 }
 0x26d   :  { %v1226_v60 = vadd.f32 1.4214138, %v1194_v8  ;;  %v7438_v20 = vsel %vm686_vm12, %v9240_v30, %v684_v23  ;;  %v1647_v13 = vsub.f32 0.0, %v1583_v1  ;;  %v1324_v44 = vmul.f32 %v1292_v3, %v7318_v9 }
 0x26e   :  { %v1227_v55 = vadd.f32 1.4214138, %v1195_v45  ;;  %v699_v15 = vsel %vm7432_vm13, %v9219_v37, %v9241_v21  ;;  %vm651_vm1 = vweird.f32 %v9242_v7  ;;  %v2649_v17 = vmul.f32 %v2617_v61, %v7417_v10  ;;  %v9244_v37 = vld [vmem:[#allocation79_spill] sm:$0xff]  ;;  %v9245_v45 = vld [vmem:[#allocation130_spill] sm:$0xff] }
 0x26f   :  { %v1678_v41 = vsel %vm1614_vm8, %v1646_v53, %v1582_v27  ;;  %v1325_v56 = vmul.f32 %v1293_v50, %v7365_v35  ;;  %v1258_v23 = vmul.f32 %v1226_v60, %v7385_v12  ;;  %v1679_v62 = vsel %vm1615_vm10, %v1647_v13, %v1583_v1  ;;  %v9246_v53 = vld [vmem:[#allocation103_spill] sm:$0xff]  ;;  %v9249_v13 = vld [vmem:[#allocation124_spill] sm:$0xff]  ;;  %vm7500_vm8 = vmor %vm651_vm1, %vm652_vm14 }
 0x270   :  { %v1710_v8 = vadd.f32 1.0, %v1678_v41  ;;  %v1356_v43 = vadd.f32 0.2548296, %v1324_v44  ;;  %v9243_v3 = vand.u32 2147483647, %v9225_v39  ;;  %vm1612_vm7 = vcmp.lt.f32.partialorder %v9244_v37, 0.0 }
 0x271   :  { %vm667_vm9 = vweird.f32 %v9245_v45  ;;  %v1711_v61 = vadd.f32 1.0, %v1679_v62  ;;  %v1357_v51 = vadd.f32 0.2548296, %v1325_v56  ;;  %v1259_v57 = vmul.f32 %v1227_v55, %v7400_v28  ;;  %v9248_v39 = vld [vmem:[#allocation60_spill] sm:$0xff]  ;;  %v9253_v55 = vld [vmem:[#allocation142_spill] sm:$0xff] }
 0x272   :  { %vm701_vm15 = vcmp.eq.f32.partialorder %v9243_v3, 8.507059e+37  ;;  %v1290_v27 = vadd.f32 -0.28449672, %v1258_v23  ;;  %vm1613_vm0 = vcmp.lt.f32.partialorder %v9246_v53, 0.0  ;;  %v7460_v50 = vadd.f32 -0.28449672, %v7312_v34 }
 0x273   :  { %v1742_v1 = vmul.f32 %v1710_v8, %v9247_v36  ;;  %v1388_v60 = vmul.f32 %v1356_v43, %v7318_v9  ;;  %v7465_v30 = vsel %vm701_vm15, %v9248_v39, %v699_v15  ;;  %vm666_vm2 = vweird.f32 %v9249_v13  ;;  %v9254_v9 = vld [vmem:[#allocation96_spill] sm:$0xff]  ;;  %v9255_v36 = vld [vmem:[#allocation127_spill] sm:$0xff] }
 0x274   :  { %v9250_v44 = vand.u32 2147483647, %v9242_v7  ;;  %v1743_v41 = vmul.f32 %v1711_v61, %v9253_v55  ;;  %v1389_v34 = vmul.f32 %v1357_v51, %v7365_v35  ;;  %v1291_v56 = vadd.f32 -0.28449672, %v1259_v57  ;;  %vm7526_vm10 = vmor %vm666_vm2, %vm667_vm9 }
 0x275   :  { %v1322_v23 = vmul.f32 %v1290_v27, %v7385_v12  ;;  %v2681_v62 = vadd.f32 1.4214138, %v2649_v17  ;;  %v1548_v8 = vmul.f32 %v9254_v9, %v1388_v60  ;;  %v1128_v15 = vmul.f32 1.0614054, %v7438_v20 }
 0x276   :  { %vm7470_vm4 = vcmp.eq.f32.partialorder %v9250_v44, 8.507059e+37  ;;  %v1129_v43 = vmul.f32 1.0614054, %v7465_v30  ;;  %v1770_v3 = vpack.c.bf16 %v1743_v41, %v1742_v1  ;;  %v1549_v39 = vmul.f32 %v9255_v36, %v1389_v34  ;;  %v9260_v34 = vld [vmem:[#allocation92_spill] sm:$0xff]  ;;  %v9264_v36 = vld [vmem:[#allocation149_spill] sm:$0xff] }
 0x277   :  { %v1323_v44 = vmul.f32 %v1291_v56, %v7400_v28  ;;  %v1354_v59 = vadd.f32 0.2548296, %v1322_v23  ;;  %vm1610_vm3 = vcmp.lt.f32.partialorder %v9256_v0, 0.0  ;;  %v9257_v35 = vand.u32 2147483647, %v9249_v13  ;;  %v9268_v56 = vld [vmem:[#allocation140_spill] sm:$0xff] }
 0x278   :  { %v1002_v17 = vand.u32 2147483648, %v7271_v47  ;;  %v1580_v51 = vsub.f32 1.0, %v1548_v8  ;;  %v1160_v57 = vadd.f32 -1.4531521, %v1128_v15  ;;  %v1161_v27 = vadd.f32 -1.4531521, %v1129_v43  ;;  %1792 = vmatpush.bf16.msrb.mxu1 %v1770_v3 }
 0x279   :  { %vm7485_vm5 = vcmp.eq.f32.partialorder %v9257_v35, 8.507059e+37  ;;  %v7492_v1 = vmul.f32 %v7368_v29, %v7271_v47  ;;  %v1581_v60 = vsub.f32 1.0, %v1549_v39  ;;  %v1355_v55 = vadd.f32 0.2548296, %v1323_v44 }
 0x27a   :  { %v1386_v41 = vmul.f32 %v1354_v59, %v7385_v12  ;;  %vm1611_vm6 = vcmp.lt.f32.partialorder %v9260_v34, 0.0  ;;  %v2713_v23 = vmul.f32 %v2681_v62, %v7417_v10  ;;  %v1644_v9 = vsub.f32 0.0, %v1580_v51  ;;  %v9263_v12 = vld [vmem:[#allocation76_spill] sm:$0xff] }
 0x27b   :  { %v1192_v8 = vmul.f32 %v1160_v57, %v7438_v20  ;;  %v1193_v15 = vmul.f32 %v1161_v27, %v7465_v30  ;;  %v1645_v43 = vsub.f32 0.0, %v1581_v60  ;;  %v1387_v59 = vmul.f32 %v1355_v55, %v7400_v28  ;;  %v9265_v27 = vld [vmem:[#allocation101_spill] sm:$0xff] }
 0x27c   :  { %v1546_v3 = vmul.f32 %v9263_v12, %v1386_v41  ;;  %v654_v7 = vsel %vm7500_vm8, %v9239_v4, %v9264_v36  ;;  %v7515_v39 = vmul.f32 %v7229_v22, %v7229_v22  ;;  %v1676_v62 = vsel %vm1612_vm7, %v1644_v9, %v1580_v51  ;;  %v9271_v12 = vld [vmem:[#allocation108_spill] sm:$0xff] }
 0x27d   :  { %v1224_v44 = vadd.f32 1.4214138, %v1192_v8  ;;  %v1225_v35 = vadd.f32 1.4214138, %v1193_v15  ;;  %v1677_v57 = vsel %vm1613_vm0, %v1645_v43, %v1581_v60  ;;  %v1708_v28 = vadd.f32 1.0, %v1676_v62  ;;  %v9269_v15 = vld [vmem:[#allocation146_spill] sm:$0xff] }
 0x27e   :  { %v1547_v55 = vmul.f32 %v9265_v27, %v1387_v59  ;;  %v1578_v41 = vsub.f32 1.0, %v1546_v3  ;;  %v1709_v22 = vadd.f32 1.0, %v1677_v57  ;;  %v7535_v53 = vsel %vm7470_vm4, %v9268_v56, %v654_v7  ;;  %v9270_v43 = vld [vmem:[#allocation78_spill] sm:$0xff]  ;;  %v9272_v7 = vld [vmem:[#allocation137_spill] sm:$0xff] }
 0x27f   :  { %v1256_v37 = vmul.f32 %v1224_v44, %v7438_v20  ;;  %v1257_v51 = vmul.f32 %v1225_v35, %v7465_v30  ;;  %v2745_v60 = vadd.f32 -0.28449672, %v2713_v23  ;;  %v669_v13 = vsel %vm7526_vm10, %v9245_v45, %v9269_v15  ;;  %v9274_v15 = vld [vmem:[#allocation35_spill] sm:$0xff] }
 0x280   :  { %v1579_v9 = vsub.f32 1.0, %v1547_v55  ;;  %v1642_v8 = vsub.f32 0.0, %v1578_v41  ;;  %v1740_v59 = vmul.f32 %v1708_v28, %v9270_v43  ;;  %v1741_v3 = vmul.f32 %v1709_v22, %v9271_v12  ;;  %v9277_v12 = vld [vmem:[#allocation104_spill] sm:$0xff] }
 0x281   :  { %v1288_v36 = vadd.f32 -0.28449672, %v1256_v37  ;;  %v1289_v62 = vadd.f32 -0.28449672, %v1257_v51  ;;  %v7548_v23 = vsel %vm7485_vm5, %v9272_v7, %v669_v13  ;;  %v1126_v35 = vmul.f32 1.0614054, %v7535_v53 }
 0x282   :  { %v1643_v44 = vsub.f32 0.0, %v1579_v9  ;;  %v1674_v21 = vsel %vm1610_vm3, %v1642_v8, %v1578_v41  ;;  %v2776_v45 = vmul.f32 %v7460_v50, %v7159_v24  ;;  %v1769_v57 = vpack.c.bf16 %v1741_v3, %v1740_v59  ;;  %v9273_v51 = vld [vmem:[#allocation99_spill] sm:$0xff]  ;;  %v9278_v3 = vld [vmem:[#allocation122_spill] sm:$0xff] }
 0x283   :  { %v1706_v28 = vadd.f32 1.0, %v1674_v21  ;;  %v1320_v27 = vmul.f32 %v1288_v36, %v7438_v20  ;;  %vm982_vm11 = vweird.f32 %v7138_v58  ;;  %v1321_v55 = vmul.f32 %v1289_v62, %v7465_v30 }
 0x284   :  { %v1675_v0 = vsel %vm1611_vm6, %v1643_v44, %v1579_v9  ;;  %v1127_v61 = vmul.f32 1.0614054, %v7548_v23  ;;  %v1158_v41 = vadd.f32 -1.4531521, %v1126_v35  ;;  %v993_v4 = vsub.f32 1.0, %v7492_v1  ;;  %1793 = vmatpush.bf16.msrb.mxu1 %v1769_v57  ;;  %v9275_v1 = vld [vmem:[#allocation54_spill] sm:$0xff] }
 0x285   :  { %v2905_v22 = vsub.f32 0.0, %v7515_v39  ;;  %v1707_v50 = vadd.f32 1.0, %v1675_v0  ;;  %v1352_v37 = vadd.f32 0.2548296, %v1320_v27  ;;  %vm1608_vm12 = vcmp.lt.f32.partialorder %v9273_v51, 0.0  ;;  %v9276_v39 = vld [vmem:[#allocation87_spill] sm:$0xff] }
 0x286   :  { %vm981_vm13 = vweird.f32 %v7086_v48  ;;  %v2777_v56 = vmul.f32 %v2745_v60, %v7417_v10  ;;  %v1353_v34 = vadd.f32 0.2548296, %v1321_v55  ;;  %v1159_v9 = vadd.f32 -1.4531521, %v1127_v61  ;;  %v9284_v0 = vld [vmem:[#allocation95_spill] sm:$0xff] }
 0x287   :  { %v1190_v8 = vmul.f32 %v1158_v41, %v7535_v53  ;;  %vm1609_vm14 = vcmp.lt.f32.partialorder %v9274_v15, 0.0  ;;  %vm952_vm1 = vweird.f32 %v6815_v14  ;;  %v1738_v13 = vmul.f32 %v1706_v28, %v9275_v1  ;;  %v9286_v41 = vld [vmem:[#allocation63_spill] sm:$0xff]  ;;  %vm7630_vm4 = vmor %vm981_vm13, %vm982_vm11 }
 0x288   :  { %v1739_v43 = vmul.f32 %v1707_v50, %v9276_v39  ;;  %v1384_v59 = vmul.f32 %v1352_v37, %v7438_v20  ;;  %v3200_v36 = vpack.c.bf16 %v9278_v3, %v9277_v12  ;;  %v9279_v62 = vsub.f32 0.0, %v7259_v11  ;;  %v9283_v11 = vld [vmem:[#allocation12_spill] sm:$0xff] }
 0x289   :  { %v1385_v44 = vmul.f32 %v1353_v34, %v7465_v30  ;;  %v1191_v21 = vmul.f32 %v1159_v9, %v7548_v23  ;;  %v1222_v7 = vadd.f32 1.4214138, %v1190_v8  ;;  %vm951_vm15 = vweird.f32 %v6747_v33  ;;  %v9285_v30 = vld [vmem:[#allocation110_spill] sm:$0xff]  ;;  %v9323_v8 = vld [vmem:[#allocation143_spill] sm:$0xff] }
 0x28a   :  { %v1524_v60 = vmul.f32 1.442695, %v9279_v62  ;;  %vm967_vm7 = vweird.f32 %v6996_v26  ;;  %v9280_v35 = vand.u32 2147483647, %v7086_v48  ;;  %v994_v20 = vmul.f32 %v7368_v29, %v993_v4 }
 0x28b   :  { %v1768_v28 = vpack.c.bf16 %v1739_v43, %v1738_v13  ;;  %v1544_v27 = vmul.f32 %v9283_v11, %v1384_v59  ;;  %v3199_v55 = vpack.c.bf16 %v9285_v30, %v9284_v0  ;;  %v2808_v61 = vadd.f32 0.2548296, %v2776_v45 }
 0x28c   :  { %vm7580_vm9 = vcmp.eq.f32.partialorder %v9280_v35, 8.507059e+37  ;;  %v1545_v50 = vmul.f32 %v9286_v41, %v1385_v44  ;;  %v1223_v37 = vadd.f32 1.4214138, %v1191_v21  ;;  %v1254_v34 = vmul.f32 %v1222_v7, %v7535_v53 }
 0x28d   :  { %v9287_v9 = vand.u32 2147483647, %v6747_v33  ;;  %vm996_vm3 = vweird.f32 %v7271_v47  ;;  %v2809_v4 = vadd.f32 0.2548296, %v2777_v56  ;;  %v2968_v1 = vmul.f32 1.442695, %v2905_v22  ;;  %1794 = vmatpush.bf16.msrb.mxu1 %v1768_v28 }
 0x28e   :  { %v1576_v45 = vsub.f32 1.0, %v1544_v27  ;;  %v9290_v13 = vand.u32 2147483647, %v7271_v47  ;;  %v1577_v43 = vsub.f32 1.0, %v1545_v50  ;;  %v1255_v59 = vmul.f32 %v1223_v37, %v7548_v23 }
 0x28f   :  { %vm7593_vm2 = vcmp.eq.f32.partialorder %v9287_v9, 8.507059e+37  ;;  %v1286_v62 = vadd.f32 -0.28449672, %v1254_v34  ;;  %v9293_v44 = vand.u32 2147483647, %v6891_v6  ;;  %v995_v56 = vadd.f32 %v7368_v29, %v994_v20  ;;  %v9303_v9 = vld [vmem:[#allocation117_spill] sm:$0xff] }
 0x290   :  { %vm7601_vm5 = vcmp.eq.f32.partialorder %v9290_v13, 8.507059e+37  ;;  %vm997_vm0 = vweird.f32 %v7368_v29  ;;  %v1003_v21 = vor.u32 1.1754944e-38, %v1002_v17  ;;  %v1640_v7 = vsub.f32 0.0, %v1576_v45 }
 0x291   :  { %vm7610_vm10 = vcmp.eq.f32.partialorder %v9293_v44, 8.507059e+37  ;;  %4217 = vpow2.f32 %v1524_v60  ;;  %v1641_v35 = vsub.f32 0.0, %v1577_v43  ;;  %v1287_v28 = vadd.f32 -0.28449672, %v1255_v59  ;;  %vm7644_vm6 = vmor %vm996_vm3, %vm997_vm0  ;;  %v9311_v59 = vld [vmem:[#allocation106_spill] sm:$0xff] }
 0x292   :  { %v1318_v11 = vmul.f32 %v1286_v62, %v7535_v53  ;;  %v9296_v27 = vand.u32 2147483647, %v6647_v40  ;;  %v7635_v60 = vmul.f32 %v2808_v61, %v7159_v24  ;;  %v7638_v20 = vmul.f32 %v2809_v4, %v7417_v10  ;;  %v9307_v4 = vld [vmem:[#allocation125_spill] sm:$0xff] }
 0x293   :  { %4219 = vpow2.f32 %v2968_v1  ;;  %v1672_v50 = vsel %vm1608_vm12, %v1640_v7, %v1576_v45  ;;  %v1673_v48 = vsel %vm1609_vm14, %v1641_v35, %v1577_v43  ;;  %v1319_v24 = vmul.f32 %v1287_v28, %v7548_v23  ;;  %v9308_v1 = vld [vmem:[#allocation75_spill] sm:$0xff]  ;;  %vm7671_vm12 = vmor %vm951_vm15, %vm952_vm1 }
 0x294   :  { %vm7621_vm8 = vcmp.eq.f32.partialorder %v9296_v27, 8.507059e+37  ;;  %v1704_v34 = vadd.f32 1.0, %v1672_v50  ;;  %v1350_v61 = vadd.f32 0.2548296, %v1318_v11  ;;  %vm1606_vm11 = vcmp.lt.f32.partialorder %v9303_v9, 0.0  ;;  %v9318_v27 = vld [vmem:[#allocation66_spill] sm:$0xff] }
 0x295   :  { %v9304_v10 = vand.u32 2147483647, %v6674_v16  ;;  %v1705_v47 = vadd.f32 1.0, %v1673_v48  ;;  %v3198_v45 = vpack.c.bf16 %v9308_v1, %v9307_v4  ;;  %v984_v15 = vsel %vm7630_vm4, %v7138_v58, %v7269_v42  ;;  %v9312_v42 = vld [vmem:[#allocation114_spill] sm:$0xff] }
 0x296   :  { %v999_v13 = vsel %vm7644_vm6, %v7368_v29, %v995_v56  ;;  %v1736_v62 = vmul.f32 %v1704_v34, %v9311_v59  ;;  %v1351_v44 = vadd.f32 0.2548296, %v1319_v24  ;;  %v1382_v7 = vmul.f32 %v1350_v61, %v7535_v53  ;;  %v9313_v29 = vld [vmem:[#allocation52_spill] sm:$0xff]  ;;  %v9359_v4 = vld [vmem:[#allocation162_spill] sm:$0xff] }
 0x297   :  { %vm7654_vm13 = vcmp.eq.f32.partialorder %v9304_v10, 8.507059e+37  ;;  %v7680_v58 = vsel %vm7580_vm9, %v7179_v31, %v984_v15  ;;  %vm1607_vm14 = vcmp.lt.f32.partialorder %v9312_v42, 0.0  ;;  %vm892_vm0 = vweird.f32 %v6528_v5  ;;  %v7694_v57 = vpop.eup %4217 }
 0x298   :  { %v1737_v33 = vmul.f32 %v1705_v47, %v9313_v29  ;;  %v7687_v56 = vsel %vm7601_vm5, %v1003_v21, %v999_v13  ;;  %v1148_v35 = vmul.f32 1.0614054, %v7680_v58  ;;  %v954_v53 = vsel %vm7671_vm12, %v6815_v14, %v7036_v19  ;;  %v9317_v21 = vld [vmem:[#allocation147_spill] sm:$0xff] }
 0x299   :  { %vm9314_vm1 = vweird.f32 %v6891_v6  ;;  %v1383_v39 = vmul.f32 %v1351_v44, %v7548_v23  ;;  %v1542_v28 = vmul.f32 %v9317_v21, %v1382_v7  ;;  %v1149_v11 = vmul.f32 1.0614054, %v7687_v56  ;;  %v7712_v19 = vpop.eup %4219  ;;  %v9329_v7 = vld [vmem:[#allocation31_spill] sm:$0xff]  ;;  %v9333_v21 = vld [vmem:[#allocation132_spill] sm:$0xff] }
 0x29a   :  { %vm7700_vm15 = vmor %vm9314_vm1, %vm967_vm7  ;;  %v7710_v14 = vsel %vm7593_vm2, %v6854_v49, %v954_v53  ;;  %vm891_vm9 = vweird.f32 %v9318_v27  ;;  %v1767_v6 = vpack.c.bf16 %v1737_v33, %v1736_v62  ;;  %v1180_v17 = vadd.f32 -1.4531521, %v1148_v35 }
 0x29b   :  { %v969_v23 = vsel %vm7700_vm15, %v6996_v26, %v7124_v18  ;;  %v1146_v50 = vmul.f32 1.0614054, %v7710_v14  ;;  %vm9319_vm7 = vweird.f32 %v6703_v38  ;;  %vm9320_vm4 = vweird.f32 %v6647_v40 }
 0x29c   :  { %vm7724_vm3 = vmor %vm9320_vm4, %vm9319_vm7  ;;  %v1543_v37 = vmul.f32 %v9323_v8, %v1383_v39  ;;  %v1574_v48 = vsub.f32 1.0, %v1542_v28  ;;  %v1181_v34 = vadd.f32 -1.4531521, %v1149_v11  ;;  %v7732_v24 = vsel %vm7610_vm10, %v7046_v32, %v969_v23  ;;  %1795 = vmatpush.bf16.msrb.mxu1 %v1767_v6  ;;  %v9336_v8 = vld [vmem:[#allocation131_spill] sm:$0xff] }
 0x29d   :  { %vm907_vm2 = vweird.f32 %v6613_v63  ;;  %v1212_v26 = vmul.f32 %v1180_v17, %v7680_v58  ;;  %v1147_v40 = vmul.f32 1.0614054, %v7732_v24  ;;  %v1178_v18 = vadd.f32 -1.4531521, %v1146_v50 }
 0x29e   :  { %v924_v61 = vsel %vm7724_vm3, %v6703_v38, %v6811_v25  ;;  %v9324_v10 = vand.u32 2147483647, %v9318_v27  ;;  %vm9327_vm6 = vweird.f32 %v6735_v46  ;;  %vm9328_vm10 = vweird.f32 %v6674_v16 }
 0x29f   :  { %vm938_vm12 = vmor %vm9328_vm10, %vm9327_vm6  ;;  %v1575_v32 = vsub.f32 1.0, %v1543_v37  ;;  %v1638_v22 = vsub.f32 0.0, %v1574_v48  ;;  %v1213_v15 = vmul.f32 %v1181_v34, %v7687_v56  ;;  %v7755_v13 = vsel %vm7621_vm8, %v6763_v2, %v924_v61 }
 0x2a0   :  { %vm7743_vm5 = vcmp.eq.f32.partialorder %v9324_v10, 8.507059e+37  ;;  %vm906_vm1 = vweird.f32 %v6555_v54  ;;  %v1244_v38 = vadd.f32 1.4214138, %v1212_v26  ;;  %v1179_v25 = vadd.f32 -1.4531521, %v1147_v40  ;;  %v9337_v26 = vld [vmem:[#allocation56_spill] sm:$0xff] }
 0x2a1   :  { %v1210_v43 = vmul.f32 %v1178_v18, %v7710_v14  ;;  %v939_v59 = vsel %vm938_vm12, %v6735_v46, %v6840_v52  ;;  %v1639_v16 = vsub.f32 0.0, %v1575_v32  ;;  %v1670_v62 = vsel %vm1606_vm11, %v1638_v22, %v1574_v48  ;;  %vm7786_vm11 = vmor %vm891_vm9, %vm892_vm0 }
 0x2a2   :  { %v1245_v44 = vadd.f32 1.4214138, %v1213_v15  ;;  %v7766_v41 = vsel %vm7654_vm13, %v9329_v7, %v939_v59  ;;  %v1702_v2 = vadd.f32 1.0, %v1670_v62  ;;  %v1276_v29 = vmul.f32 %v1244_v38, %v7680_v58  ;;  %v9338_v38 = vld [vmem:[#allocation41_spill] sm:$0xff]  ;;  %vm7810_vm13 = vmor %vm906_vm1, %vm907_vm2  ;;  %v9342_v7 = vld [vmem:[#allocation80_spill] sm:$0xff] }
 0x2a3   :  { %v1211_v33 = vmul.f32 %v1179_v25, %v7732_v24  ;;  %v1242_v35 = vadd.f32 1.4214138, %v1210_v43  ;;  %v9330_v53 = vand.u32 2147483647, %v6555_v54  ;;  %v1671_v52 = vsel %vm1607_vm14, %v1639_v16, %v1575_v32  ;;  %v9341_v43 = vld [vmem:[#allocation148_spill] sm:$0xff] }
 0x2a4   :  { %v1277_v9 = vmul.f32 %v1245_v44, %v7687_v56  ;;  %v1144_v51 = vmul.f32 1.0614054, %v7755_v13  ;;  %v1145_v31 = vmul.f32 1.0614054, %v7766_v41  ;;  %v1703_v39 = vadd.f32 1.0, %v1671_v52 }
 0x2a5   :  { %vm7772_vm8 = vcmp.eq.f32.partialorder %v9330_v53, 8.507059e+37  ;;  %v1734_v28 = vmul.f32 %v1702_v2, %v9333_v21  ;;  %v1308_v11 = vadd.f32 -0.28449672, %v1276_v29  ;;  %v1243_v6 = vadd.f32 1.4214138, %v1211_v33  ;;  %v9343_v29 = vld [vmem:[#allocation37_spill] sm:$0xff] }
 0x2a6   :  { %v1309_v42 = vadd.f32 -0.28449672, %v1277_v9  ;;  %v1274_v23 = vmul.f32 %v1242_v35, %v7710_v14  ;;  %v1176_v50 = vadd.f32 -1.4531521, %v1144_v51  ;;  %v1177_v49 = vadd.f32 -1.4531521, %v1145_v31 }
 0x2a7   :  { %v1735_v37 = vmul.f32 %v1703_v39, %v9336_v8  ;;  %v1340_v48 = vmul.f32 %v1308_v11, %v7680_v58  ;;  %v1275_v34 = vmul.f32 %v1243_v6, %v7732_v24  ;;  %v894_v27 = vsel %vm7786_vm11, %v6528_v5, %v9337_v26  ;;  %v9344_v35 = vld [vmem:[#allocation116_spill] sm:$0xff]  ;;  %v9345_v53 = vld [vmem:[#allocation115_spill] sm:$0xff]  ;;  %v9347_v39 = vld [vmem:[#allocation69_spill] sm:$0xff] }
 0x2a8   :  { %v1341_v40 = vmul.f32 %v1309_v42, %v7687_v56  ;;  %v1306_v18 = vadd.f32 -0.28449672, %v1274_v23  ;;  %v1208_v61 = vmul.f32 %v1176_v50, %v7755_v13  ;;  %v1209_v10 = vmul.f32 %v1177_v49, %v7766_v41  ;;  %v9348_v21 = vld [vmem:[#allocation141_spill] sm:$0xff]  ;;  %v9349_v6 = vld [vmem:[#allocation44_spill] sm:$0xff]  ;;  %v9350_v42 = vld [vmem:[#allocation51_spill] sm:$0xff] }
 0x2a9   :  { %v1766_v32 = vpack.c.bf16 %v1735_v37, %v1734_v28  ;;  %v1372_v22 = vadd.f32 0.2548296, %v1340_v48  ;;  %v1307_v15 = vadd.f32 -0.28449672, %v1275_v34  ;;  %v7804_v25 = vsel %vm7743_vm5, %v9338_v38, %v894_v27  ;;  %v9351_v26 = vld [vmem:[#allocation166_spill] sm:$0xff]  ;;  %v9353_v5 = vld [vmem:[#allocation48_spill] sm:$0xff] }
 0x2aa   :  { %vm1628_vm14 = vcmp.lt.f32.partialorder %v9341_v43, 0.0  ;;  %v1373_v59 = vadd.f32 0.2548296, %v1341_v40  ;;  %v1338_v16 = vmul.f32 %v1306_v18, %v7710_v14  ;;  %v1240_v62 = vadd.f32 1.4214138, %v1208_v61  ;;  %v9352_v18 = vld [vmem:[#allocation139_spill] sm:$0xff] }
 0x2ab   :  { %v1241_v44 = vadd.f32 1.4214138, %v1209_v10  ;;  %vm1629_vm0 = vcmp.lt.f32.partialorder %v9342_v7, 0.0  ;;  %1796 = vmatpush.bf16.msrb.mxu1 %v1766_v32  ;;  %v1404_v47 = vmul.f32 %v1372_v22, %v7680_v58  ;;  %v1339_v2 = vmul.f32 %v1307_v15, %v7732_v24 }
 0x2ac   :  { %v909_v54 = vsel %vm7810_vm13, %v6613_v63, %v9343_v29  ;;  %v1142_v33 = vmul.f32 1.0614054, %v7804_v25  ;;  %v9346_v52 = vpack.c.bf16 %v9344_v35, %v9345_v53  ;;  %v1405_v9 = vmul.f32 %v1373_v59, %v7687_v56  ;;  %v9355_v35 = vld [vmem:[#allocation145_spill] sm:$0xff] }
 0x2ad   :  { %v1370_v51 = vadd.f32 0.2548296, %v1338_v16  ;;  %v1272_v31 = vmul.f32 %v1240_v62, %v7755_v13  ;;  %v1273_v58 = vmul.f32 %v1241_v44, %v7766_v41  ;;  %vm1626_vm15 = vcmp.lt.f32.partialorder %v9347_v39, 0.0  ;;  %v9354_v16 = vld [vmem:[#allocation29_spill] sm:$0xff] }
 0x2ae   :  { %v1564_v28 = vmul.f32 %v9348_v21, %v1404_v47  ;;  %v1371_v11 = vadd.f32 0.2548296, %v1339_v2  ;;  %v7835_v63 = vsel %vm7772_vm8, %v9349_v6, %v909_v54  ;;  %v1174_v17 = vadd.f32 -1.4531521, %v1142_v33 }
 0x2af   :  { %3210 = vmatpush.bf16.msra.mxu1 %v9346_v52  ;;  %vm1627_vm9 = vcmp.lt.f32.partialorder %v9350_v42, 0.0  ;;  %v1565_v56 = vmul.f32 %v7694_v57, %v1405_v9  ;;  %v1402_v23 = vmul.f32 %v1370_v51, %v7710_v14  ;;  %v1304_v50 = vadd.f32 -0.28449672, %v1272_v31  ;;  %v9356_v9 = vld [vmem:[#allocation7_spill] sm:$0xff] }
 0x2b0   :  { %v1305_v49 = vadd.f32 -0.28449672, %v1273_v58  ;;  %v1596_v8 = vsub.f32 1.0, %v1564_v28  ;;  %v1403_v37 = vmul.f32 %v1371_v11, %v7732_v24  ;;  %v1143_v48 = vmul.f32 1.0614054, %v7835_v63  ;;  %v7879_v11 = vld [vmem:[%s8514_s3] sm:$0xff] }
 0x2b1   :  { %v1206_v34 = vmul.f32 %v1174_v17, %v7804_v25  ;;  %v1597_v46 = vsub.f32 1.0, %v1565_v56  ;;  %v1562_v27 = vmul.f32 %v9351_v26, %v1402_v23  ;;  %v1336_v57 = vmul.f32 %v1304_v50, %v7755_v13  ;;  %v9362_v26 = vld [vmem:[#allocation77_spill] sm:$0xff] }
 0x2b2   :  { %v1337_v14 = vmul.f32 %v1305_v49, %v7766_v41  ;;  %v1660_v40 = vsub.f32 0.0, %v1596_v8  ;;  %v1563_v61 = vmul.f32 %v9352_v18, %v1403_v37  ;;  %v1175_v10 = vadd.f32 -1.4531521, %v1143_v48  ;;  %v9360_v49 = vld [vmem:[#allocation157_spill] sm:$0xff] }
 0x2b3   :  { %3211 = vmatpush.bf16.msra.mxu1 %v3200_v36  ;;  %v1238_v24 = vadd.f32 1.4214138, %v1206_v34  ;;  %v1661_v32 = vsub.f32 0.0, %v1597_v46  ;;  %v1594_v22 = vsub.f32 1.0, %v1562_v27  ;;  %v1368_v15 = vadd.f32 0.2548296, %v1336_v57 }
 0x2b4   :  { %v1369_v38 = vadd.f32 0.2548296, %v1337_v14  ;;  %vm1624_vm7 = vcmp.lt.f32.partialorder %v9353_v5, 0.0  ;;  %v1692_v12 = vsel %vm1628_vm14, %v1660_v40, %v1596_v8  ;;  %v1595_v3 = vsub.f32 1.0, %v1563_v61  ;;  %v9361_v37 = vld [vmem:[#allocation165_spill] sm:$0xff]  ;;  %v9366_v5 = vld [vmem:[#allocation62_spill] sm:$0xff] }
 0x2b5   :  { %v1207_v36 = vmul.f32 %v1175_v10, %v7835_v63  ;;  %v1270_v59 = vmul.f32 %v1238_v24, %v7804_v25  ;;  %vm1625_vm4 = vcmp.lt.f32.partialorder %v9354_v16, 0.0  ;;  %v1693_v62 = vsel %vm1629_vm0, %v1661_v32, %v1597_v46  ;;  %v9364_v10 = vld [vmem:[#allocation38_spill] sm:$0xff] }
 0x2b6   :  { %v1724_v44 = vadd.f32 1.0, %v1692_v12  ;;  %v1658_v47 = vsub.f32 0.0, %v1594_v22  ;;  %v1400_v2 = vmul.f32 %v1368_v15, %v7755_v13  ;;  %v1725_v43 = vadd.f32 1.0, %v1693_v62  ;;  %v9358_v13 = vld [vmem:[#allocation16_spill] sm:$0xff]  ;;  %v9365_v15 = vld [vmem:[#allocation22_spill] sm:$0xff]  ;;  %v9367_v12 = vld [vmem:[#allocation23_spill] sm:$0xff] }
 0x2b7   :  { %3212 = vmatpush.bf16.msra.mxu1 %v3199_v55  ;;  %v1659_v29 = vsub.f32 0.0, %v1595_v3  ;;  %v1401_v54 = vmul.f32 %v1369_v38, %v7766_v41  ;;  %v1239_v33 = vadd.f32 1.4214138, %v1207_v36  ;;  %v1302_v30 = vadd.f32 -0.28449672, %v1270_v59  ;;  %v9357_v55 = vld [vmem:[#allocation128_spill] sm:$0xff] }
 0x2b8   :  { %v1756_v53 = vmul.f32 %v1724_v44, %v9355_v35  ;;  %v1690_v52 = vsel %vm1626_vm15, %v1658_v47, %v1594_v22  ;;  %v1560_v0 = vmul.f32 %v9356_v9, %v1400_v2  ;;  %v1757_v7 = vmul.f32 %v1725_v43, %v9357_v55  ;;  %v9368_v36 = vld [vmem:[#allocation11_spill] sm:$0xff]  ;;  %v9369_v59 = vld [vmem:[#allocation18_spill] sm:$0xff]  ;;  %v9370_v62 = vld [vmem:[#allocation136_spill] sm:$0xff] }
 0x2b9   :  { %v1691_v51 = vsel %vm1627_vm9, %v1659_v29, %v1595_v3  ;;  %v1722_v31 = vadd.f32 1.0, %v1690_v52  ;;  %v1561_v58 = vmul.f32 %v9358_v13, %v1401_v54  ;;  %v1271_v39 = vmul.f32 %v1239_v33, %v7835_v63  ;;  %v9371_v44 = vld [vmem:[#allocation167_spill] sm:$0xff]  ;;  %v9373_v35 = vld [vmem:[#allocation45_spill] sm:$0xff]  ;;  %v9375_v9 = vld [vmem:[#allocation84_spill] sm:$0xff] }
 0x2ba   :  { %v1723_v41 = vadd.f32 1.0, %v1691_v51  ;;  %v1592_v21 = vsub.f32 1.0, %v1560_v0  ;;  %v1334_v28 = vmul.f32 %v1302_v30, %v7804_v25  ;;  %v3001_v6 = vmul.f32 %v7712_v19, %v7638_v20  ;;  %v9363_v20 = vld [vmem:[#allocation155_spill] sm:$0xff]  ;;  %v9376_v0 = vld [vmem:[#allocation9_spill] sm:$0xff] }
 0x2bb   :  { %3213 = vmatpush.bf16.msra.mxu1 %v3198_v45  ;;  %v1777_v17 = vpack.c.bf16 %v1757_v7, %v1756_v53  ;;  %v1593_v42 = vsub.f32 1.0, %v1561_v58  ;;  %v1783_v56 = vunpack.c.l.b16 %v7879_v11  ;;  %v1303_v23 = vadd.f32 -0.28449672, %v1271_v39  ;;  %v9372_v2 = vld [vmem:[#allocation55_spill] sm:$0xff]  ;;  %v9374_v53 = vld [vmem:[#allocation89_spill] sm:$0xff] }
 0x2bc   :  { %v1755_v1 = vmul.f32 %v1723_v41, %v9359_v4  ;;  %v1656_v45 = vsub.f32 0.0, %v1592_v21  ;;  %v1366_v50 = vadd.f32 0.2548296, %v1334_v28  ;;  %v3000_v8 = vmul.f32 %v9360_v49, %v7635_v60  ;;  %v9378_v41 = vld [vmem:[#allocation74_spill] sm:$0xff]  ;;  %v9380_v28 = vld [vmem:[#allocation32_spill] sm:$0xff]  ;;  %v9384_v4 = vld [vmem:[#allocation19_spill] sm:$0xff] }
 0x2bd   :  { %1806 = vmatpush.bf16.msra.mxu2 %v1777_v17  ;;  %v1754_v48 = vmul.f32 %v1722_v31, %v9361_v37  ;;  %v1657_v34 = vsub.f32 0.0, %v1593_v42  ;;  %v7888_v46 = vpack.c.b16 %v1783_v56, %v1783_v56  ;;  %v2999_v19 = vmul.f32 %v9363_v20, %v9362_v26  ;;  %v9377_v31 = vld [vmem:[#allocation39_spill] sm:$0xff]  ;;  %v9382_v17 = vld [vmem:[#allocation25_spill] sm:$0xff]  ;;  %v9387_v26 = vld [vmem:[#allocation86_spill] sm:$0xff] }
 0x2be   :  { %v1688_v27 = vsel %vm1624_vm7, %v1656_v45, %v1592_v21  ;;  %v1335_v57 = vmul.f32 %v1303_v23, %v7835_v63  ;;  %v1398_v14 = vmul.f32 %v1366_v50, %v7804_v25  ;;  %v3033_v40 = vsub.f32 1.0, %v3001_v6  ;;  %v9379_v21 = vld [vmem:[#allocation20_spill] sm:$0xff]  ;;  %v9381_v6 = vld [vmem:[#allocation161_spill] sm:$0xff]  ;;  %v9388_v20 = vld [vmem:[#allocation158_spill] sm:$0xff] }
 0x2bf   :  { %v1776_v18 = vpack.c.bf16 %v1755_v1, %v1754_v48  ;;  %v1689_v60 = vsel %vm1625_vm4, %v1657_v34, %v1593_v42  ;;  %v1720_v61 = vadd.f32 1.0, %v1688_v27  ;;  %1797 = vmatmul.bf16.vlgmr.msrb.gmra.mxu1 %v7888_v46  ;;  %v505_v24 = vmul.f32 0.5, %v9364_v10  ;;  %v9383_v56 = vld [vmem:[#allocation57_spill] sm:$0xff]  ;;  %v9390_v10 = vld [vmem:[#allocation27_spill] sm:$0xff] }
 0x2c0   :  { %v1721_v32 = vadd.f32 1.0, %v1689_v60  ;;  %v1367_v22 = vadd.f32 0.2548296, %v1335_v57  ;;  %v1558_v38 = vmul.f32 %v9365_v15, %v1398_v14  ;;  %v2835_v3 = vmul.f32 %v9367_v12, %v9366_v5  ;;  %v9386_v48 = vld [vmem:[#allocation61_spill] sm:$0xff]  ;;  %v9389_v60 = vld [vmem:[#allocation14_spill] sm:$0xff] }
 0x2c1   :  { %v2836_v25 = vmul.f32 %v9369_v59, %v9368_v36  ;;  %v2998_v47 = vmul.f32 %v9371_v44, %v9370_v62  ;;  %v3032_v16 = vsub.f32 1.0, %v3000_v8  ;;  %1807 = vmatpush.bf16.msra.mxu2 %v1776_v18  ;;  %v1752_v43 = vmul.f32 %v1720_v61, %v9372_v2  ;;  %v9385_v8 = vld [vmem:[#allocation17_spill] sm:$0xff]  ;;  %v9394_v62 = vld [vmem:[#allocation71_spill] sm:$0xff] }
 0x2c2   :  { %v1753_v29 = vmul.f32 %v1721_v32, %v505_v24  ;;  %v1399_v54 = vmul.f32 %v1367_v22, %v7835_v63  ;;  %v1590_v33 = vsub.f32 1.0, %v1558_v38  ;;  %v2834_v52 = vmul.f32 %v9374_v53, %v9373_v35  ;;  %v9391_v24 = vld [vmem:[#allocation65_spill] sm:$0xff]  ;;  %v9397_v35 = vld [vmem:[#allocation42_spill] sm:$0xff] }
 0x2c3   :  { %v2997_v30 = vmul.f32 %v9376_v0, %v9375_v9  ;;  %v3031_v55 = vsub.f32 1.0, %v2999_v19  ;;  %v3097_v7 = vsub.f32 0.0, %v3033_v40  ;;  %v3205_v39 = vpack.c.bf16 %v9379_v21, %v9378_v41  ;;  %v9392_v12 = vld [vmem:[#allocation21_spill] sm:$0xff]  ;;  %v9398_v9 = vld [vmem:[#allocation47_spill] sm:$0xff]  ;;  %v4272_v21 = vld [vmem:[%s8512_s1 + $0x18] sm:$0xff] }
 0x2c4   :  { %v1775_v51 = vpack.c.bf16 %v1753_v29, %v1752_v43  ;;  %v1559_v13 = vmul.f32 %v9377_v31, %v1399_v54  ;;  %v1654_v58 = vsub.f32 0.0, %v1590_v33  ;;  %vm1622_vm3 = vcmp.lt.f32.partialorder %v9380_v28, 0.0  ;;  %v9395_v43 = vld [vmem:[#allocation30_spill] sm:$0xff]  ;;  %v9400_v28 = vld [vmem:[#allocation64_spill] sm:$0xff]  ;;  %v4271_v41 = vld [vmem:[%s8512_s1 + $0x10] sm:$0xff] }
 0x2c5   :  { %v2995_v63 = vmul.f32 %v9381_v6, %v2835_v3  ;;  %v2996_v42 = vmul.f32 %v9382_v17, %v2836_v25  ;;  %v3204_v1 = vpack.c.bf16 %v9384_v4, %v9383_v56  ;;  %v3030_v45 = vsub.f32 1.0, %v2998_v47  ;;  %v9393_v3 = vld [vmem:[#allocation6_spill] sm:$0xff] }
 0x2c6   :  { %v3096_v23 = vsub.f32 0.0, %v3032_v16  ;;  %1808 = vmatpush.bf16.msra.mxu2 %v1775_v51  ;;  %v1591_v50 = vsub.f32 1.0, %v1559_v13  ;;  %v1686_v49 = vsel %vm1622_vm3, %v1654_v58, %v1590_v33  ;;  %v2994_v37 = vmul.f32 %v9385_v8, %v2834_v52  ;;  %v9396_v33 = vld [vmem:[#allocation164_spill] sm:$0xff] }
 0x2c7   :  { %v503_v34 = vmul.f32 0.5, %v9386_v48  ;;  %vm1623_vm2 = vcmp.lt.f32.partialorder %v9387_v26, 0.0  ;;  %vm3065_vm5 = vcmp.lt.f32.partialorder %v9388_v20, 0.0  ;;  %v3029_v19 = vsub.f32 1.0, %v2997_v30 }
 0x2c8   :  { %v3095_v27 = vsub.f32 0.0, %v3031_v55  ;;  %v3129_v57 = vsel %vm3065_vm5, %v3097_v7, %v3033_v40  ;;  %v1655_v14 = vsub.f32 0.0, %v1591_v50  ;;  %v3027_v18 = vsub.f32 1.0, %v2995_v63  ;;  %v9399_v7 = vld [vmem:[#allocation8_spill] sm:$0xff]  ;;  %v9401_v63 = vld [vmem:[#allocation10_spill] sm:$0xff] }
 0x2c9   :  { %vm3064_vm6 = vcmp.lt.f32.partialorder %v9389_v60, 0.0  ;;  %v1718_v61 = vadd.f32 1.0, %v1686_v49  ;;  %v3203_v32 = vpack.c.bf16 %v9391_v24, %v9390_v10  ;;  %v3028_v22 = vsub.f32 1.0, %v2996_v42 }
 0x2ca   :  { %v3094_v15 = vsub.f32 0.0, %v3030_v45  ;;  %v3128_v38 = vsel %vm3064_vm6, %v3096_v23, %v3032_v16  ;;  %v1687_v5 = vsel %vm1623_vm2, %v1655_v14, %v1591_v50  ;;  %vm3062_vm10 = vcmp.lt.f32.partialorder %v9392_v12, 0.0  ;;  %v9402_v50 = vld [vmem:[#allocation26_spill] sm:$0xff] }
 0x2cb   :  { %vm3063_vm12 = vcmp.lt.f32.partialorder %v9393_v3, 0.0  ;;  %v3161_v36 = vadd.f32 1.0, %v3129_v57  ;;  %v1719_v59 = vadd.f32 1.0, %v1687_v5  ;;  %v3093_v25 = vsub.f32 0.0, %v3029_v19  ;;  %v9406_v57 = vld [vmem:[#allocation67_spill] sm:$0xff] }
 0x2cc   :  { %v3127_v40 = vsel %vm3063_vm12, %v3095_v27, %v3031_v55  ;;  %v1945_v44 = vmul.f32 0.5, %v9394_v62  ;;  %v1784_v47 = vunpack.c.h.b16 %v7879_v11  ;;  %v3160_v2 = vadd.f32 1.0, %v3128_v38  ;;  %v9407_v38 = vld [vmem:[#allocation34_spill] sm:$0xff] }
 0x2cd   :  { %v1750_v29 = vmul.f32 %v1718_v61, %v9395_v43  ;;  %v1751_v54 = vmul.f32 %v1719_v59, %v503_v34  ;;  %v3202_v16 = vpack.c.bf16 %v9397_v35, %v9396_v33  ;;  %v3026_v53 = vsub.f32 1.0, %v2994_v37  ;;  %v9404_v37 = vld [vmem:[#allocation82_spill] sm:$0xff]  ;;  %v4269_v43 = vld [vmem:[%s8512_s1] sm:$0xff]  ;;  %v9414_v33 = vld [vmem:[#allocation113_spill] sm:$0xff] }
 0x2ce   :  { %v3092_v52 = vsub.f32 0.0, %v3028_v22  ;;  %vm3061_vm1 = vcmp.lt.f32.partialorder %v9398_v9, 0.0  ;;  %v3126_v0 = vsel %vm3062_vm10, %v3094_v15, %v3030_v45  ;;  %v3159_v30 = vadd.f32 1.0, %v3127_v40  ;;  %v9403_v45 = vld [vmem:[#allocation5_spill] sm:$0xff] }
 0x2cf   :  { %v1944_v51 = vmul.f32 0.5, %v9399_v7  ;;  %v3193_v55 = vmul.f32 %v3161_v36, %v1945_v44  ;;  %v1774_v31 = vpack.c.bf16 %v1751_v54, %v1750_v29  ;;  %v3091_v13 = vsub.f32 0.0, %v3027_v18  ;;  %v9408_v36 = vld [vmem:[#allocation53_spill] sm:$0xff]  ;;  %v4270_v29 = vld [vmem:[%s8512_s1 + $0x8] sm:$0xff] }
 0x2d0   :  { %v3125_v58 = vsel %vm3061_vm1, %v3093_v25, %v3029_v19  ;;  %v1786_v11 = vpack.c.b16 %v1784_v47, %v1784_v47  ;;  %vm3060_vm8 = vcmp.lt.f32.partialorder %v9400_v28, 0.0  ;;  %v3158_v6 = vadd.f32 1.0, %v3126_v0  ;;  %v9405_v19 = vld [vmem:[#allocation50_spill] sm:$0xff]  ;;  %v9415_v0 = vld [vmem:[#allocation111_spill] sm:$0xff]  ;;  %v9418_v28 = vld [vmem:[#allocation28_spill] sm:$0xff] }
 0x2d1   :  { %v1943_v17 = vmul.f32 0.5, %v9401_v63  ;;  %v3192_v42 = vmul.f32 %v3160_v2, %v1944_v51  ;;  %1809 = vmatpush.bf16.msra.mxu2 %v1774_v31  ;;  %v3090_v23 = vsub.f32 0.0, %v3026_v53  ;;  %vm3059_vm11 = vcmp.lt.f32.partialorder %v9402_v50, 0.0  ;;  %v9416_v51 = vld [vmem:[#allocation94_spill] sm:$0xff]  ;;  %v9417_v31 = vld [vmem:[#allocation24_spill] sm:$0xff] }
 0x2d2   :  { %v3124_v49 = vsel %vm3060_vm8, %v3092_v52, %v3028_v22  ;;  %v3157_v8 = vadd.f32 1.0, %v3125_v58  ;;  %v1942_v48 = vmul.f32 0.5, %v9404_v37  ;;  %v3123_v20 = vsel %vm3059_vm11, %v3091_v13, %v3027_v18  ;;  %v9409_v18 = vld [vmem:[#allocation40_spill] sm:$0xff] }
 0x2d3   :  { %v3191_v34 = vmul.f32 %v3159_v30, %v1943_v17  ;;  %v3209_v26 = vpack.c.bf16 %v3193_v55, %v3192_v42  ;;  %vm3058_vm13 = vcmp.lt.f32.partialorder %v9405_v19, 0.0  ;;  %v3156_v27 = vadd.f32 1.0, %v3124_v49 }
 0x2d4   :  { %1810 = vmatmul.bf16.vlgmr.msra.gmra.mxu2 %v1786_v11  ;;  %v1941_v14 = vmul.f32 0.5, %v9406_v57  ;;  %v3190_v60 = vmul.f32 %v3158_v6, %v1942_v48  ;;  %v3122_v61 = vsel %vm3058_vm13, %v3090_v23, %v3026_v53  ;;  %v3155_v15 = vadd.f32 1.0, %v3123_v20  ;;  %v9419_v57 = vld [vmem:[#allocation81_spill] sm:$0xff] }
 0x2d5   :  { %1832 = vmatpush.bf16.msrb.mxu2 %v9403_v45  ;;  %v1940_v22 = vmul.f32 0.5, %v9407_v38  ;;  %v3154_v3 = vadd.f32 1.0, %v3122_v61  ;;  %v1939_v59 = vmul.f32 0.5, %v9408_v36  ;;  %v1938_v40 = vmul.f32 0.5, %v9409_v18 }
 0x2d6   :  { %v3189_v5 = vmul.f32 %v3157_v8, %v1941_v14  ;;  %v3208_v12 = vpack.c.bf16 %v3191_v34, %v3190_v60  ;;  %vm9410_vm14 = vcmask 64512  }
 0x2d7   :  { %v3188_v25 = vmul.f32 %v3156_v27, %v1940_v22  ;;  %v3187_v62 = vmul.f32 %v3155_v15, %v1939_v59  ;;  %v3186_v47 = vmul.f32 %v3154_v3, %v1938_v40  ;;  %vm9411_vm0 = vmmov %vm9410_vm14 }
 0x2d8   :  { %vm9412_vm15 = vmmov %vm9411_vm0 }
 0x2d9   :  { %3223 = vmatpush.bf16.msra.mxu2 %v3209_v26  ;;  %v3207_v44 = vpack.c.bf16 %v3189_v5, %v3188_v25  ;;  %v3206_v2 = vpack.c.bf16 %v3187_v62, %v3186_v47  ;;  %vm9413_vm9 = vmmov %vm9411_vm0 }
 0x2dd   :  { %3224 = vmatpush.bf16.msra.mxu2 %v3208_v12 }
 0x2e1   :  { %3225 = vmatpush.bf16.msra.mxu2 %v3207_v44 }
 0x2e4   :  { %3795 = vmatmul.msk.bf16.vlgmr.msrb.gmra.mxu2 %vm9410_vm14, %v4269_v43 }
 0x2e5   :  { %3226 = vmatpush.bf16.msra.mxu2 %v3206_v2 }
 0x2e9   :  { %3227 = vmatpush.bf16.msra.mxu2 %v3205_v39 }
 0x2ed   :  { %3228 = vmatpush.bf16.msra.mxu2 %v3204_v1 }
 0x2f1   :  { %3229 = vmatpush.bf16.msra.mxu2 %v3203_v32 }
 0x2f4   :  { %3796 = vmatmul.msk.bf16.gmra.mxu2 %vm9411_vm0, %v4270_v29 }
 0x2f5   :  { %3230 = vmatpush.bf16.msra.mxu2 %v3202_v16 }
 0x304   :  { %3797 = vmatmul.msk.bf16.gmra.mxu2 %vm9412_vm15, %v4271_v41 }
 0x314   :  { %3798 = vmatmul.msk.bf16.gmra.mxu2 %vm9413_vm9, %v4272_v21 }
 0x324   :  { %3231 = vmatmul.bf16.vlgmr.msra.gmra.mxu2 %v1786_v11 }
 0x33c   :  { %v1798_v39 = vpop.f32.mrf.mxu1 }
 0x344   :  { %v1800_v56 = vpop.f32.mrf.mxu1 }
 0x357   :  { %v1811_v4 = vpop.f32.mrf.mxu2 }
 0x358   :  { %v7972_v1 = vadd.f32 %v1811_v4, %v1798_v39 }
 0x35f   :  { %v1813_v10 = vpop.f32.mrf.mxu2 }
 0x367   :  { %v1834_v24 = vpop.f32.mrf.mxu2 }
 0x368   :  { %v7975_v35 = vadd.f32 %v1834_v24, %v9414_v33 }
 0x36a   :  { %v7978_v53 = vmul.f32 0.70710677, %v7975_v35 }
 0x36c   :  { %v7981_v52 = vand.u32 2147483647, %v7978_v53 }
 0x36e   :  { %v2010_v9 = vmul.f32 0.3275911, %v7981_v52 }
 0x36f   :  { %v1836_v32 = vpop.f32.mrf.mxu2 }
 0x370   :  { %v7985_v30 = vadd.f32 %v1836_v32, %v9415_v0  ;;  %v2042_v58 = vadd.f32 1.0, %v2010_v9 }
 0x372   :  { %v7994_v11 = vmul.f32 0.70710677, %v7985_v30  ;;  %4221 = vrcp.f32 %v2042_v58  ;;  %v2085_v47 = vand.u32 2147483648, %v2042_v58  ;;  %vm2079_vm4 = vweird.f32 %v2042_v58 }
 0x373   :  { %v2083_v2 = vand.u32 2147483647, %v2042_v58 }
 0x374   :  { %v8006_v42 = vand.u32 2147483647, %v7994_v11  ;;  %v2086_v4 = vor.u32 1.1754944e-38, %v2085_v47 }
 0x375   :  { %vm2084_vm2 = vcmp.eq.f32.partialorder %v2083_v2, 8.507059e+37 }
 0x376   :  { %v2011_v45 = vmul.f32 0.3275911, %v8006_v42 }
 0x377   :  { %v1839_v54 = vpop.f32.mrf.mxu2 }
 0x378   :  { %v7988_v55 = vadd.f32 %v1839_v54, %v9416_v51  ;;  %v4222_v37 = vpop.eup %4221  ;;  %v8023_v26 = vadd.f32 1.0, %v2011_v45 }
 0x379   :  { %v2075_v27 = vmul.f32 %v4222_v37, %v2042_v58  ;;  %vm2080_vm7 = vweird.f32 %v4222_v37 }
 0x37a   :  { %v8000_v63 = vmul.f32 0.70710677, %v7988_v55  ;;  %4223 = vrcp.f32 %v8023_v26  ;;  %vm2081_vm3 = vmor %vm2079_vm4, %vm2080_vm7  ;;  %v2100_v54 = vand.u32 2147483648, %v8023_v26  ;;  %vm2094_vm5 = vweird.f32 %v8023_v26 }
 0x37b   :  { %v2076_v22 = vsub.f32 1.0, %v2075_v27 }
 0x37c   :  { %v8012_v50 = vand.u32 2147483647, %v8000_v63  ;;  %v2101_v45 = vor.u32 1.1754944e-38, %v2100_v54 }
 0x37d   :  { %v2077_v3 = vmul.f32 %v4222_v37, %v2076_v22 }
 0x37e   :  { %v2012_v48 = vmul.f32 0.3275911, %v8012_v50 }
 0x37f   :  { %v1841_v16 = vpop.f32.mrf.mxu2  ;;  %v2078_v40 = vadd.f32 %v4222_v37, %v2077_v3 }
 0x380   :  { %v7997_v6 = vadd.f32 %v1841_v16, %v9418_v28  ;;  %v8029_v60 = vadd.f32 1.0, %v2012_v48  ;;  %v8048_v59 = vpop.eup %4223  ;;  %v9420_v48 = vld [vmem:[#allocation72_spill] sm:$0xff] }
 0x381   :  { %v2090_v62 = vmul.f32 %v8048_v59, %v8023_v26  ;;  %v2082_v21 = vsel %vm2081_vm3, %v4222_v37, %v2078_v40  ;;  %vm2095_vm6 = vweird.f32 %v8048_v59 }
 0x382   :  { %v8009_v23 = vmul.f32 0.70710677, %v7997_v6  ;;  %4225 = vrcp.f32 %v8029_v60  ;;  %v8069_v32 = vsel %vm2084_vm2, %v2086_v4, %v2082_v21  ;;  %vm2109_vm10 = vweird.f32 %v8029_v60  ;;  %vm8103_vm11 = vmor %vm2094_vm5, %vm2095_vm6 }
 0x383   :  { %v2091_v39 = vsub.f32 1.0, %v2090_v62  ;;  %v8075_v51 = vmul.f32 1.0614054, %v8069_v32 }
 0x384   :  { %v8019_v8 = vand.u32 2147483647, %v8009_v23 }
 0x385   :  { %v2092_v9 = vmul.f32 %v8048_v59, %v2091_v39 }
 0x386   :  { %v2013_v20 = vmul.f32 0.3275911, %v8019_v8 }
 0x387   :  { %v1844_v7 = vpop.f32.mrf.mxu2 }
 0x388   :  { %v7991_v13 = vadd.f32 %v1844_v7, %v9417_v31  ;;  %v8037_v38 = vadd.f32 1.0, %v2013_v20  ;;  %v8051_v25 = vpop.eup %4225  ;;  %v2098_v31 = vand.u32 2147483647, %v8023_v26  ;;  %v2093_v20 = vadd.f32 %v8048_v59, %v2092_v9 }
 0x389   :  { %v2105_v43 = vmul.f32 %v8051_v25, %v8029_v60  ;;  %vm2110_vm1 = vweird.f32 %v8051_v25 }
 0x38a   :  { %v8003_v17 = vmul.f32 0.70710677, %v7991_v13  ;;  %v2130_v21 = vand.u32 2147483648, %v8037_v38  ;;  %vm8125_vm15 = vmor %vm2109_vm10, %vm2110_vm1  ;;  %vm2124_vm7 = vweird.f32 %v8037_v38 }
 0x38b   :  { %v2106_v24 = vsub.f32 1.0, %v2105_v43 }
 0x38c   :  { %v8015_v49 = vand.u32 2147483647, %v8003_v17 }
 0x38d   :  { %v2107_v58 = vmul.f32 %v8051_v25, %v2106_v24  ;;  %v2097_v24 = vsel %vm8103_vm11, %v8048_v59, %v2093_v20 }
 0x38e   :  { %v2014_v34 = vmul.f32 0.3275911, %v8015_v49 }
 0x38f   :  { %v1846_v19 = vpop.f32.mrf.mxu2  ;;  %v2108_v3 = vadd.f32 %v8051_v25, %v2107_v58 }
 0x390   :  { %v8027_v14 = vadd.f32 %v1846_v19, %v9419_v57  ;;  %v8031_v61 = vadd.f32 1.0, %v2014_v34  ;;  %v2113_v19 = vand.u32 2147483647, %v8029_v60  ;;  %v2115_v57 = vand.u32 2147483648, %v8029_v60 }
 0x391   :  { %v2128_v60 = vand.u32 2147483647, %v8037_v38 }
 0x392   :  { %v8034_v15 = vmul.f32 0.70710677, %v8027_v14  ;;  %4227 = vrcp.f32 %v8031_v61  ;;  %v2145_v26 = vand.u32 2147483648, %v8031_v61  ;;  %vm2139_vm9 = vweird.f32 %v8031_v61 }
 0x393   :  { %4229 = vrcp.f32 %v8037_v38  ;;  %vm2114_vm5 = vcmp.eq.f32.partialorder %v2113_v19, 8.507059e+37  ;;  %vm2129_vm10 = vcmp.eq.f32.partialorder %v2128_v60, 8.507059e+37 }
 0x394   :  { %v8040_v5 = vand.u32 2147483647, %v8034_v15 }
 0x396   :  { %v2015_v12 = vmul.f32 0.3275911, %v8040_v5 }
 0x397   :  { %v1849_v28 = vpop.f32.mrf.mxu2 }
 0x398   :  { %v8046_v36 = vadd.f32 1.0, %v2015_v12  ;;  %v8053_v18 = vpop.eup %4227  ;;  %v8083_v34 = vadd.f32 %v1849_v28, %v9420_v48 }
 0x399   :  { %v8057_v44 = vpop.eup %4229  ;;  %v2135_v29 = vmul.f32 %v8053_v18, %v8031_v61  ;;  %vm2140_vm8 = vweird.f32 %v8053_v18 }
 0x39a   :  { %4231 = vrcp.f32 %v8046_v36  ;;  %v2120_v56 = vmul.f32 %v8057_v44, %v8037_v38  ;;  %v8093_v12 = vmul.f32 0.70710677, %v8083_v34  ;;  %v2160_v40 = vand.u32 2147483648, %v8046_v36  ;;  %vm8142_vm4 = vmor %vm2139_vm9, %vm2140_vm8 }
 0x39b   :  { %v2136_v33 = vsub.f32 1.0, %v2135_v29  ;;  %vm2154_vm13 = vweird.f32 %v8046_v36  ;;  %v2158_v2 = vand.u32 2147483647, %v8046_v36  ;;  %vm2125_vm14 = vweird.f32 %v8057_v44 }
 0x39c   :  { %v2121_v0 = vsub.f32 1.0, %v2120_v56  ;;  %v8111_v43 = vand.u32 2147483647, %v8093_v12  ;;  %v2143_v56 = vand.u32 2147483647, %v8031_v61  ;;  %v2161_v61 = vor.u32 1.1754944e-38, %v2160_v40  ;;  %vm8151_vm3 = vmor %vm2124_vm7, %vm2125_vm14 }
 0x39d   :  { %v2137_v37 = vmul.f32 %v8053_v18, %v2136_v33  ;;  %vm2159_vm2 = vcmp.eq.f32.partialorder %v2158_v2, 8.507059e+37  ;;  %vm3040_vm7 = vcmp.lt.f32.partialorder %v8093_v12, 0.0 }
 0x39e   :  { %v2122_v27 = vmul.f32 %v8057_v44, %v2121_v0  ;;  %v2146_v0 = vor.u32 1.1754944e-38, %v2145_v26  ;;  %vm2144_vm6 = vcmp.eq.f32.partialorder %v2143_v56, 8.507059e+37 }
 0x39f   :  { %v2138_v47 = vadd.f32 %v8053_v18, %v2137_v37  ;;  %v1851_v58 = vpop.f32.mrf.mxu2 }
 0x3a0   :  { %v8063_v41 = vpop.eup %4231  ;;  %v2123_v29 = vadd.f32 %v8057_v44, %v2122_v27 }
 0x3a1   :  { %v2150_v10 = vmul.f32 %v8063_v41, %v8046_v36  ;;  %vm2155_vm12 = vweird.f32 %v8063_v41  ;;  %v2142_v38 = vsel %vm8142_vm4, %v8053_v18, %v2138_v47  ;;  %v9431_v18 = vld [vmem:[#allocation90_spill] sm:$0xff]  ;;  %vm3039_vm4 = vcmp.lt.f32.partialorder %v8034_v15, 0.0  ;;  %v3963_v15 = vld [vmem:[%s8516_s5 + $0x44] sm:$0xf] }
 0x3a2   :  { %vm8119_vm0 = vmor %vm2154_vm13, %vm2155_vm12  ;;  %v2127_v9 = vsel %vm8151_vm3, %v8057_v44, %v2123_v29  ;;  %v8165_v37 = vsel %vm2144_vm6, %v2146_v0, %v2142_v38  ;;  %v8168_v48 = vadd.f32 %v1851_v58, %v9431_v18  ;;  %vm2099_vm12 = vcmp.eq.f32.partialorder %v2098_v31, 8.507059e+37 }
 0x3a3   :  { %v2151_v16 = vsub.f32 1.0, %v2150_v10  ;;  %v2016_v10 = vmul.f32 0.3275911, %v8111_v43  ;;  %v8173_v27 = vsel %vm2099_vm12, %v2101_v45, %v2097_v24  ;;  %vm3038_vm3 = vcmp.lt.f32.partialorder %v8003_v17, 0.0 }
 0x3a4   :  { %v8176_v19 = vmul.f32 0.70710677, %v8168_v48  ;;  %v2555_v47 = vmul.f32 1.0614054, %v8173_v27  ;;  %v1920_v17 = vmul.f32 0.5, %v8083_v34  ;;  %vm3036_vm6 = vcmp.lt.f32.partialorder %v8000_v63, 0.0 }
 0x3a5   :  { %v2152_v7 = vmul.f32 %v8063_v41, %v2151_v16  ;;  %v2048_v59 = vadd.f32 1.0, %v2016_v10  ;;  %v2116_v16 = vor.u32 1.1754944e-38, %v2115_v57  ;;  %v3961_v34 = vld [vmem:[%s8516_s5 + $0x34] sm:$0xf]  ;;  %v3839_v63 = vld [vmem:[%s8516_s5 + $0x38] sm:$0xf0] }
 0x3a6   :  { %v8183_v62 = vand.u32 2147483647, %v8176_v19  ;;  %vm3034_vm12 = vcmp.lt.f32.partialorder %v7978_v53, 0.0 }
 0x3a7   :  { %v2153_v22 = vadd.f32 %v8063_v41, %v2152_v7  ;;  %4233 = vrcp.f32 %v2048_v59  ;;  %v2175_v24 = vand.u32 2147483648, %v2048_v59  ;;  %v2173_v54 = vand.u32 2147483647, %v2048_v59 }
 0x3a8   :  { %v2017_v29 = vmul.f32 0.3275911, %v8183_v62  ;;  %vm2169_vm8 = vweird.f32 %v2048_v59 }
 0x3a9   :  { %v2157_v4 = vsel %vm8119_vm0, %v8063_v41, %v2153_v22  ;;  %v2112_v41 = vsel %vm8125_vm15, %v8051_v25, %v2108_v3  ;;  %v2131_v25 = vor.u32 1.1754944e-38, %v2130_v21  ;;  %v2558_v22 = vmul.f32 1.0614054, %v8165_v37 }
 0x3aa   :  { %v8161_v7 = vsel %vm2159_vm2, %v2161_v61, %v2157_v4  ;;  %v8163_v28 = vsel %vm2114_vm5, %v2116_v16, %v2112_v41  ;;  %v2586_v3 = vadd.f32 -1.4531521, %v8075_v51  ;;  %v8188_v4 = vadd.f32 1.0, %v2017_v29 }
 0x3ab   :  { %v8170_v20 = vsel %vm2129_vm10, %v2131_v25, %v2127_v9  ;;  %v2559_v44 = vmul.f32 1.0614054, %v8161_v7  ;;  %v2556_v57 = vmul.f32 1.0614054, %v8163_v28  ;;  %v2590_v26 = vadd.f32 -1.4531521, %v2558_v22 }
 0x3ac   :  { %v2557_v40 = vmul.f32 1.0614054, %v8170_v20  ;;  %v2618_v39 = vmul.f32 %v2586_v3, %v8069_v32  ;;  %v2587_v51 = vadd.f32 -1.4531521, %v2555_v47  ;;  %4235 = vrcp.f32 %v8188_v4 }
 0x3ad   :  { %v4234_v31 = vpop.eup %4233  ;;  %v2591_v2 = vadd.f32 -1.4531521, %v2559_v44  ;;  %v2588_v21 = vadd.f32 -1.4531521, %v2556_v57  ;;  %v8194_v61 = vmul.f32 %v7981_v52, %v7981_v52  ;;  %v2622_v33 = vmul.f32 %v2590_v26, %v8165_v37 }
 0x3ae   :  { %v2165_v45 = vmul.f32 %v4234_v31, %v2048_v59  ;;  %v2589_v36 = vadd.f32 -1.4531521, %v2557_v40  ;;  %vm2170_vm1 = vweird.f32 %v4234_v31  ;;  %v2650_v38 = vadd.f32 1.4214138, %v2618_v39 }
 0x3af   :  { %v2623_v10 = vmul.f32 %v2591_v2, %v8161_v7  ;;  %v2620_v41 = vmul.f32 %v2588_v21, %v8163_v28  ;;  %v2619_v0 = vmul.f32 %v2587_v51, %v8173_v27  ;;  %v8202_v25 = vmul.f32 %v8006_v42, %v8006_v42  ;;  %vm2171_vm11 = vmor %vm2169_vm8, %vm2170_vm1 }
 0x3b0   :  { %v2166_v56 = vsub.f32 1.0, %v2165_v45  ;;  %v2621_v16 = vmul.f32 %v2589_v36, %v8170_v20  ;;  %v2176_v18 = vor.u32 1.1754944e-38, %v2175_v24  ;;  %vm2174_vm13 = vcmp.eq.f32.partialorder %v2173_v54, 8.507059e+37 }
 0x3b1   :  { %v2655_v58 = vadd.f32 1.4214138, %v2623_v10  ;;  %v2874_v44 = vsub.f32 0.0, %v8194_v61  ;;  %v2652_v57 = vadd.f32 1.4214138, %v2620_v41  ;;  %v2682_v59 = vmul.f32 %v2650_v38, %v8069_v32 }
 0x3b2   :  { %v2167_v60 = vmul.f32 %v4234_v31, %v2166_v56  ;;  %v2654_v22 = vadd.f32 1.4214138, %v2622_v33  ;;  %v4236_v40 = vpop.eup %4235  ;;  %v2653_v47 = vadd.f32 1.4214138, %v2621_v16  ;;  %v2848_v42 = vmul.f32 %v8111_v43, %v8111_v43 }
 0x3b3   :  { %v2651_v45 = vadd.f32 1.4214138, %v2619_v0  ;;  %v2875_v29 = vsub.f32 0.0, %v8202_v25  ;;  %v2180_v21 = vmul.f32 %v4236_v40, %v8188_v4  ;;  %v2844_v26 = vmul.f32 %v8012_v50, %v8012_v50 }
 0x3b4   :  { %v2168_v9 = vadd.f32 %v4234_v31, %v2167_v60  ;;  %v2845_v39 = vmul.f32 %v8019_v8, %v8019_v8  ;;  %v2847_v36 = vmul.f32 %v8040_v5, %v8040_v5  ;;  %v2684_v51 = vmul.f32 %v2652_v57, %v8163_v28 }
 0x3b5   :  { %v2686_v43 = vmul.f32 %v2654_v22, %v8165_v37  ;;  %v2846_v10 = vmul.f32 %v8015_v49, %v8015_v49  ;;  %v2181_v24 = vsub.f32 1.0, %v2180_v21  ;;  %v2685_v60 = vmul.f32 %v2653_v47, %v8170_v20 }
 0x3b6   :  { %v2172_v52 = vsel %vm2171_vm11, %v4234_v31, %v2168_v9  ;;  %v2687_v31 = vmul.f32 %v2655_v58, %v8161_v7  ;;  %v2880_v50 = vsub.f32 0.0, %v2848_v42  ;;  %v2190_v41 = vand.u32 2147483648, %v8188_v4 }
 0x3b7   :  { %v8205_v3 = vsel %vm2174_vm13, %v2176_v18, %v2172_v52  ;;  %v2182_v33 = vmul.f32 %v4236_v40, %v2181_v24  ;;  %vm2185_vm14 = vweird.f32 %v4236_v40  ;;  %v2188_v5 = vand.u32 2147483647, %v8188_v4 }
 0x3b8   :  { %v2560_v2 = vmul.f32 1.0614054, %v8205_v3  ;;  %v2719_v8 = vadd.f32 -0.28449672, %v2687_v31  ;;  %v2683_v38 = vmul.f32 %v2651_v45, %v8173_v27  ;;  %v2877_v16 = vsub.f32 0.0, %v2845_v39 }
 0x3b9   :  { %v2879_v9 = vsub.f32 0.0, %v2847_v36  ;;  %v2716_v58 = vadd.f32 -0.28449672, %v2684_v51  ;;  %v2718_v49 = vadd.f32 -0.28449672, %v2686_v43  ;;  %v2183_v18 = vadd.f32 %v4236_v40, %v2182_v33 }
 0x3ba   :  { %v2592_v56 = vadd.f32 -1.4531521, %v2560_v2  ;;  %vm2184_vm0 = vweird.f32 %v8188_v4  ;;  %v2878_v52 = vsub.f32 0.0, %v2846_v10  ;;  %v2918_v22 = vmul.f32 1.442695, %v2880_v50 }
 0x3bb   :  { %vm2186_vm15 = vmor %vm2184_vm0, %vm2185_vm14  ;;  %v2191_v47 = vor.u32 1.1754944e-38, %v2190_v41  ;;  %v2717_v2 = vadd.f32 -0.28449672, %v2685_v60  ;;  %v2751_v42 = vmul.f32 %v2719_v8, %v8161_v7  ;;  %vm2189_vm9 = vcmp.eq.f32.partialorder %v2188_v5, 8.507059e+37 }
 0x3bc   :  { %v2624_v54 = vmul.f32 %v2592_v56, %v8205_v3  ;;  %v2187_v31 = vsel %vm2186_vm15, %v4236_v40, %v2183_v18  ;;  %v2916_v45 = vmul.f32 1.442695, %v2879_v9  ;;  %v2849_v36 = vmul.f32 %v8183_v62, %v8183_v62 }
 0x3bd   :  { %v8232_v39 = vsel %vm2189_vm9, %v2191_v47, %v2187_v31  ;;  %v2714_v56 = vadd.f32 -0.28449672, %v2682_v59  ;;  %v2876_v4 = vsub.f32 0.0, %v2844_v26  ;;  %v2750_v51 = vmul.f32 %v2718_v49, %v8165_v37 }
 0x3be   :  { %v2656_v0 = vadd.f32 1.4214138, %v2624_v54  ;;  %v2561_v43 = vmul.f32 1.0614054, %v8232_v39  ;;  %v2715_v10 = vadd.f32 -0.28449672, %v2683_v38  ;;  %4237 = vpow2.f32 %v2918_v22 }
 0x3bf   :  { %v2914_v24 = vmul.f32 1.442695, %v2878_v52  ;;  %v2749_v40 = vmul.f32 %v2717_v2, %v8170_v20  ;;  %v2912_v54 = vmul.f32 1.442695, %v2877_v16  ;;  %v2783_v50 = vadd.f32 0.2548296, %v2751_v42 }
 0x3c0   :  { %v2688_v57 = vmul.f32 %v2656_v0, %v8205_v3  ;;  %v2593_v41 = vadd.f32 -1.4531521, %v2561_v43  ;;  %v2748_v8 = vmul.f32 %v2716_v58, %v8163_v28  ;;  %4239 = vpow2.f32 %v2916_v45 }
 0x3c1   :  { %v2881_v59 = vsub.f32 0.0, %v2849_v36  ;;  %v2910_v26 = vmul.f32 1.442695, %v2876_v4  ;;  %v2782_v33 = vadd.f32 0.2548296, %v2750_v51  ;;  %v2747_v9 = vmul.f32 %v2715_v10, %v8173_v27 }
 0x3c2   :  { %v2720_v21 = vadd.f32 -0.28449672, %v2688_v57  ;;  %v2625_v5 = vmul.f32 %v2593_v41, %v8232_v39  ;;  %v2906_v38 = vmul.f32 1.442695, %v2874_v44  ;;  %4241 = vpow2.f32 %v2914_v24 }
 0x3c3   :  { %v2908_v16 = vmul.f32 1.442695, %v2875_v29  ;;  %v2781_v49 = vadd.f32 0.2548296, %v2749_v40  ;;  %v2815_v58 = vmul.f32 %v2783_v50, %v8161_v7  ;;  %v2746_v57 = vmul.f32 %v2714_v56, %v8069_v32 }
 0x3c4   :  { %v2752_v60 = vmul.f32 %v2720_v21, %v8205_v3  ;;  %v2657_v18 = vadd.f32 1.4214138, %v2625_v5  ;;  %v4238_v52 = vpop.eup %4237  ;;  %v2780_v22 = vadd.f32 0.2548296, %v2748_v8  ;;  %4243 = vpow2.f32 %v2912_v54  ;;  %v3871_v54 = vld [vmem:[%s8516_s5 + $0x78] sm:$0xf0] }
 0x3c5   :  { %v2920_v47 = vmul.f32 1.442695, %v2881_v59  ;;  %4245 = vpow2.f32 %v2910_v26  ;;  %v2814_v61 = vmul.f32 %v2782_v33, %v8165_v37  ;;  %v2779_v42 = vadd.f32 0.2548296, %v2747_v9  ;;  %v3967_v59 = vld [vmem:[%s8516_s5 + $0x64] sm:$0xf] }
 0x3c6   :  { %v2784_v62 = vadd.f32 0.2548296, %v2752_v60  ;;  %v2689_v2 = vmul.f32 %v2657_v18, %v8232_v39  ;;  %4247 = vpow2.f32 %v2908_v16  ;;  %v2813_v25 = vmul.f32 %v2781_v49, %v8170_v20  ;;  %v3863_v33 = vld [vmem:[%s8516_s5 + $0x68] sm:$0xf0] }
 0x3c7   :  { %v2778_v45 = vadd.f32 0.2548296, %v2746_v57  ;;  %v2812_v21 = vmul.f32 %v2780_v22, %v8163_v28  ;;  %4249 = vpow2.f32 %v2920_v47  ;;  %v2811_v51 = vmul.f32 %v2779_v42, %v8173_v27  ;;  %v3969_v28 = vld [vmem:[%s8516_s5 + $0x74] sm:$0xf]  ;;  %v3855_v22 = vld [vmem:[%s8516_s5 + $0x58] sm:$0xf0] }
 0x3c8   :  { %v2816_v0 = vmul.f32 %v2784_v62, %v8205_v3  ;;  %v4240_v3 = vpop.eup %4239  ;;  %v2721_v7 = vadd.f32 -0.28449672, %v2689_v2  ;;  %4251 = vpow2.f32 %v2906_v38  ;;  %v3874_v62 = vor.u32 %v3969_v28, %v3871_v54  ;;  %v3965_v57 = vld [vmem:[%s8516_s5 + $0x54] sm:$0xf] }
 0x3c9   :  { %v2975_v29 = vmul.f32 %v4240_v3, %v2815_v58  ;;  %v4242_v31 = vpop.eup %4241  ;;  %v2810_v20 = vmul.f32 %v2778_v45, %v8069_v32  ;;  %v3866_v16 = vor.u32 %v3967_v59, %v3863_v33  ;;  %v3858_v3 = vor.u32 %v3965_v57, %v3855_v22  ;;  %v8287_v45 = vpop.f32.mrf.mxu2  ;;  %v3853_v57 = vld [vmem:[%s8516_s5 + $0x50] sm:$0xf]  ;;  %v3966_v22 = vld [vmem:[%s8516_s5 + $0x54] sm:$0xf0] }
 0x3ca   :  { %v2976_v44 = vmul.f32 %v4238_v52, %v2816_v0  ;;  %v2974_v36 = vmul.f32 %v4242_v31, %v2814_v61  ;;  %v2753_v37 = vmul.f32 %v2721_v7, %v8232_v39  ;;  %v4244_v4 = vpop.eup %4243  ;;  %3355 = vmatpush.bf16.msrb.mxu2 %v3874_v62  ;;  %vm3041_vm2 = vcmp.lt.f32.partialorder %v8176_v19, 0.0  ;;  %v3847_v31 = vld [vmem:[%s8516_s5 + $0x48] sm:$0xf0] }
 0x3cb   :  { %v4246_v43 = vpop.eup %4245  ;;  %v2973_v10 = vmul.f32 %v4244_v4, %v2813_v25  ;;  %v3007_v24 = vsub.f32 1.0, %v2975_v29  ;;  %vm3037_vm5 = vcmp.lt.f32.partialorder %v8009_v23, 0.0  ;;  %v1921_v19 = vmul.f32 0.5, %v8168_v48 }
 0x3cc   :  { %v3008_v56 = vsub.f32 1.0, %v2976_v44  ;;  %v2785_v60 = vadd.f32 0.2548296, %v2753_v37  ;;  %v2972_v40 = vmul.f32 %v4246_v43, %v2812_v21  ;;  %v4248_v50 = vpop.eup %4247  ;;  %v3006_v41 = vsub.f32 1.0, %v2974_v36 }
 0x3cd   :  { %v4250_v32 = vpop.eup %4249  ;;  %v2971_v26 = vmul.f32 %v4248_v50, %v2811_v51  ;;  %v3005_v38 = vsub.f32 1.0, %v2973_v10  ;;  %v3071_v9 = vsub.f32 0.0, %v3007_v24  ;;  %v3850_v37 = vor.u32 %v3963_v15, %v3847_v31  ;;  %v3958_v15 = vld [vmem:[%s8516_s5 + $0x14] sm:$0xf0]  ;;  %v3957_v31 = vld [vmem:[%s8516_s5 + $0x14] sm:$0xf] }
 0x3ce   :  { %v3072_v8 = vsub.f32 0.0, %v3008_v56  ;;  %v2817_v27 = vmul.f32 %v2785_v60, %v8232_v39  ;;  %v4252_v5 = vpop.eup %4251  ;;  %v3004_v58 = vsub.f32 1.0, %v2972_v40  ;;  %v3070_v39 = vsub.f32 0.0, %v3006_v41  ;;  %3356 = vmatpush.bf16.msrb.mxu2 %v3866_v16 }
 0x3cf   :  { %v2970_v49 = vmul.f32 %v4252_v5, %v2810_v20  ;;  %v3003_v47 = vsub.f32 1.0, %v2971_v26  ;;  %v3069_v61 = vsub.f32 0.0, %v3005_v38  ;;  %v3103_v44 = vsel %vm3039_vm4, %v3071_v9, %v3007_v24 }
 0x3d0   :  { %v2977_v0 = vmul.f32 %v4250_v32, %v2817_v27  ;;  %v3104_v18 = vsel %vm3040_vm7, %v3072_v8, %v3008_v56  ;;  %v3068_v25 = vsub.f32 0.0, %v3004_v58  ;;  %v3102_v29 = vsel %vm3038_vm3, %v3070_v39, %v3006_v41  ;;  %v3959_v27 = vld [vmem:[%s8516_s5 + $0x24] sm:$0xf] }
 0x3d1   :  { %v3002_v12 = vsub.f32 1.0, %v2970_v49  ;;  %v3136_v42 = vadd.f32 1.0, %v3104_v18  ;;  %v3135_v21 = vadd.f32 1.0, %v3103_v44  ;;  %v3067_v56 = vsub.f32 0.0, %v3003_v47  ;;  %v3234_v62 = vpop.f32.mrf.mxu2  ;;  %v3869_v49 = vld [vmem:[%s8516_s5 + $0x70] sm:$0xf] }
 0x3d2   :  { %v3009_v52 = vsub.f32 1.0, %v2977_v0  ;;  %v3101_v23 = vsel %vm3037_vm5, %v3069_v61, %v3005_v38  ;;  %3357 = vmatpush.bf16.msrb.mxu2 %v3858_v3  ;;  %v3134_v4 = vadd.f32 1.0, %v3102_v29  ;;  %v1919_v51 = vmul.f32 0.5, %v8027_v14  ;;  %v3845_v61 = vld [vmem:[%s8516_s5 + $0x40] sm:$0xf] }
 0x3d3   :  { %v3168_v43 = vmul.f32 %v3136_v42, %v1920_v17  ;;  %v3066_v24 = vsub.f32 0.0, %v3002_v12  ;;  %vm3035_vm10 = vcmp.lt.f32.partialorder %v7994_v11, 0.0  ;;  %v3100_v60 = vsel %vm3036_vm6, %v3068_v25, %v3004_v58  ;;  %v3964_v44 = vld [vmem:[%s8516_s5 + $0x44] sm:$0xf0]  ;;  %v3837_v3 = vld [vmem:[%s8516_s5 + $0x30] sm:$0xf] }
 0x3d4   :  { %v3073_v2 = vsub.f32 0.0, %v3009_v52  ;;  %v3133_v48 = vadd.f32 1.0, %v3101_v23  ;;  %v1918_v20 = vmul.f32 0.5, %v7991_v13  ;;  %v3167_v40 = vmul.f32 %v3135_v21, %v1919_v51  ;;  %v3831_v13 = vld [vmem:[%s8516_s5 + $0x28] sm:$0xf0] }
 0x3d5   :  { %v3099_v14 = vsel %vm3035_vm10, %v3067_v56, %v3003_v47  ;;  %v3842_v54 = vor.u32 %v3961_v34, %v3839_v63  ;;  %v3132_v11 = vadd.f32 1.0, %v3100_v60  ;;  %v1917_v50 = vmul.f32 0.5, %v7997_v6  ;;  %v3829_v42 = vld [vmem:[%s8516_s5 + $0x20] sm:$0xf]  ;;  %v3960_v25 = vld [vmem:[%s8516_s5 + $0x24] sm:$0xf0] }
 0x3d6   :  { %v3105_v7 = vsel %vm3041_vm2, %v3073_v2, %v3009_v52  ;;  %3358 = vmatpush.bf16.msrb.mxu2 %v3850_v37  ;;  %v3166_v41 = vmul.f32 %v3134_v4, %v1918_v20  ;;  %v3098_v8 = vsel %vm3034_vm12, %v3066_v24, %v3002_v12  ;;  %v3131_v59 = vadd.f32 1.0, %v3099_v14  ;;  %v3823_v17 = vld [vmem:[%s8516_s5 + $0x18] sm:$0xf0]  ;;  %v3955_v23 = vld [vmem:[%s8516_s5 + $0x4] sm:$0xf]  ;;  %v4274_v34 = vld [vmem:[%s8511_s0 + $0x8] sm:$0xff] }
 0x3d7   :  { %v3137_v36 = vadd.f32 1.0, %v3105_v7  ;;  %v1916_v32 = vmul.f32 0.5, %v7988_v55  ;;  %v3165_v26 = vmul.f32 %v3133_v48, %v1917_v50  ;;  %v3834_v33 = vor.u32 %v3959_v27, %v3831_v13  ;;  %v3970_v55 = vld [vmem:[%s8516_s5 + $0x74] sm:$0xf0]  ;;  %v3821_v7 = vld [vmem:[%s8516_s5 + $0x10] sm:$0xf]  ;;  %v1819_v48 = vpop.permute.xlu2 %1818 }
 0x3d8   :  { %v3196_v53 = vpack.c.bf16 %v3167_v40, %v3166_v41  ;;  %v3130_v6 = vadd.f32 1.0, %v3098_v8  ;;  %v1915_v5 = vmul.f32 0.5, %v7985_v30  ;;  %v1914_v9 = vmul.f32 0.5, %v7975_v35  ;;  %v3861_v30 = vld [vmem:[%s8516_s5 + $0x60] sm:$0xf] }
 0x3d9   :  { %v3169_v10 = vmul.f32 %v3137_v36, %v1921_v19  ;;  %v3164_v38 = vmul.f32 %v3132_v11, %v1916_v32  ;;  %v3870_v39 = vor.u32 %v3970_v55, %v3869_v49  ;;  %v3968_v35 = vld [vmem:[%s8516_s5 + $0x64] sm:$0xf0]  ;;  %v3854_v47 = vor.u32 %v3966_v22, %v3853_v57  ;;  %v3813_v19 = vld [vmem:[%s8516_s5] sm:$0xf]  ;;  %v3815_v37 = vld [vmem:[%s8516_s5 + $0x8] sm:$0xf0] }
 0x3da   :  { %3359 = vmatpush.bf16.msrb.mxu2 %v3842_v54  ;;  %v3163_v0 = vmul.f32 %v3131_v59, %v1915_v5  ;;  %v3162_v58 = vmul.f32 %v3130_v6, %v1914_v9  ;;  %v3862_v52 = vor.u32 %v3968_v35, %v3861_v30  ;;  %v3846_v2 = vor.u32 %v3964_v44, %v3845_v61  ;;  %v3956_v36 = vld [vmem:[%s8516_s5 + $0x4] sm:$0xf0] }
 0x3db   :  { %v3197_v28 = vpack.c.bf16 %v3169_v10, %v3168_v43  ;;  %v3195_v16 = vpack.c.bf16 %v3165_v26, %v3164_v38  ;;  %v3830_v29 = vor.u32 %v3960_v25, %v3829_v42  ;;  %v3822_v21 = vor.u32 %v3958_v15, %v3821_v7  ;;  %v4273_v10 = vld [vmem:[%s8511_s0] sm:$0xff] }
 0x3dc   :  { %v3194_v18 = vpack.c.bf16 %v3163_v0, %v3162_v58  ;;  %v3826_v56 = vor.u32 %v3957_v31, %v3823_v17  ;;  %v3814_v4 = vor.u32 %v3956_v36, %v3813_v19  ;;  %v3818_v51 = vor.u32 %v3955_v23, %v3815_v37 }
 0x3dd   :  { %3214 = vmatpush.bf16.msra.mxu1 %v3197_v28  ;;  %v1815_v24 = vadd.f32 %v4273_v10, %v7972_v1  ;;  %v3255_v1 = vld [vmem:[%s8517_s6] sm:$0x3] }
 0x3de   :  { %3360 = vmatpush.bf16.msrb.mxu2 %v3834_v33  ;;  %v3258_v8 = vperm.slane %v3255_v1, 1 }
 0x3df   :  { %v8381_v20 = vadd.f32 %v1819_v48, %v1815_v24 }
 0x3e1   :  { %3215 = vmatpush.bf16.msra.mxu1 %v3196_v53 }
 0x3e2   :  { %3361 = vmatpush.bf16.msrb.mxu2 %v3826_v56 }
 0x3e5   :  { %3216 = vmatpush.bf16.msra.mxu1 %v3195_v16 }
 0x3e6   :  { %3362 = vmatpush.bf16.msrb.mxu2 %v3818_v51 }
 0x3e9   :  { %3217 = vmatpush.bf16.msra.mxu1 %v3194_v18 }
 0x3ec   :  { %3218 = vmatmul.bf16.vlgmr.msra.gmra.mxu1 %v7888_v46  ;;  %v3962_v46 = vld [vmem:[%s8516_s5 + $0x34] sm:$0xf0] }
 0x3ed   :  { %3341 = vmatpush.bf16.msrb.mxu1 %v3870_v39  ;;  %v3838_v12 = vor.u32 %v3962_v46, %v3837_v3 }
 0x3f1   :  { %3342 = vmatpush.bf16.msrb.mxu1 %v3862_v52 }
 0x3f5   :  { %3343 = vmatpush.bf16.msrb.mxu1 %v3854_v47 }
 0x3f9   :  { %3344 = vmatpush.bf16.msrb.mxu1 %v3846_v2 }
 0x3fd   :  { %3345 = vmatpush.bf16.msrb.mxu1 %v3838_v12 }
 0x401   :  { %3346 = vmatpush.bf16.msrb.mxu1 %v3830_v29 }
 0x405   :  { %3347 = vmatpush.bf16.msrb.mxu1 %v3822_v21 }
 0x409   :  { %3348 = vmatpush.bf16.msrb.mxu1 %v3814_v4 }
 0x469   :  { %v3219_v43 = vpop.f32.mrf.mxu1 }
 0x46a   :  { %v3233_v60 = vadd.f32 %v8287_v45, %v3219_v43  ;;  %v3257_v45 = vperm.slane %v3255_v1, 0 }
 0x46c   :  { %v3236_v63 = vadd.f32 %v4274_v34, %v3233_v60 }
 0x46e   :  { %v8383_v40 = vadd.f32 %v3236_v63, %v1819_v48 }
 0x470   :  { %v3238_v28 = vpack.c.bf16 %v8383_v40, %v8381_v20 }
 0x471   :  { %v3221_v14 = vpop.f32.mrf.mxu1 }
 0x472   :  { %3349 = vmatmul.bf16.vlgmr.msrb.gmra.mxu1 %v3238_v28  ;;  %3363 = vmatmul.bf16.vlgmr.msrb.gmra.mxu2 %v3238_v28 }
 0x4ef   :  { %v3350_v54 = vpop.f32.mrf.mxu1 }
 0x4f0   :  { %v8390_v11 = vadd.f32 %v3350_v54, %v3257_v45  ;;  %v3978_v54 = vld [vmem:[%s8518_s7 + $0x38] sm:$0xff] }
 0x4f1   :  { %3659 = vmatpush.bf16.msra.mxu1 %v3978_v54 }
 0x4f2   :  { %v8393_v50 = vmul.f32 0.70710677, %v8390_v11 }
 0x4f4   :  { %v3377_v41 = vand.u32 2147483647, %v8393_v50 }
 0x4f5   :  { %v3364_v27 = vpop.f32.mrf.mxu2 }
 0x4f6   :  { %v3381_v13 = vmul.f32 0.3275911, %v3377_v41  ;;  %v8396_v62 = vadd.f32 %v3364_v27, %v3258_v8  ;;  %v3485_v47 = vmul.f32 %v3377_v41, %v3377_v41 }
 0x4f7   :  { %v3352_v59 = vpop.f32.mrf.mxu1 }
 0x4f8   :  { %v3385_v32 = vadd.f32 1.0, %v3381_v13  ;;  %v8399_v26 = vmul.f32 0.70710677, %v8396_v62  ;;  %v8401_v53 = vadd.f32 %v3352_v59, %v3257_v45  ;;  %v3489_v29 = vsub.f32 0.0, %v3485_v47  ;;  %v3986_v47 = vld [vmem:[%s8518_s7 + $0x78] sm:$0xff] }
 0x4f9   :  { %3673 = vmatpush.bf16.msra.mxu2 %v3986_v47 }
 0x4fa   :  { %4253 = vrcp.f32 %v3385_v32  ;;  %v3378_v33 = vand.u32 2147483647, %v8399_v26  ;;  %v8405_v6 = vmul.f32 0.70710677, %v8401_v53  ;;  %v3400_v52 = vand.u32 2147483648, %v3385_v32 }
 0x4fb   :  { %v3398_v22 = vand.u32 2147483647, %v3385_v32  ;;  %vm3394_vm8 = vweird.f32 %v3385_v32  ;;  %v3493_v37 = vmul.f32 1.442695, %v3489_v29 }
 0x4fc   :  { %v3382_v5 = vmul.f32 0.3275911, %v3378_v33  ;;  %v3379_v9 = vand.u32 2147483647, %v8405_v6  ;;  %v3401_v3 = vor.u32 1.1754944e-38, %v3400_v52  ;;  %v3486_v23 = vmul.f32 %v3378_v33, %v3378_v33 }
 0x4fd   :  { %v3366_v38 = vpop.f32.mrf.mxu2  ;;  %vm3399_vm13 = vcmp.eq.f32.partialorder %v3398_v22, 8.507059e+37 }
 0x4fe   :  { %v8408_v0 = vadd.f32 %v3366_v38, %v3258_v8  ;;  %v3386_v16 = vadd.f32 1.0, %v3382_v5  ;;  %v3383_v55 = vmul.f32 0.3275911, %v3379_v9  ;;  %v3490_v1 = vsub.f32 0.0, %v3486_v23 }
 0x4ff   :  { %v3487_v27 = vmul.f32 %v3379_v9, %v3379_v9  ;;  %v3977_v9 = vld [vmem:[%s8518_s7 + $0x30] sm:$0xff] }
 0x500   :  { %v4254_v49 = vpop.eup %4253  ;;  %v8411_v58 = vmul.f32 0.70710677, %v8408_v0  ;;  %4255 = vrcp.f32 %v3386_v16  ;;  %v3387_v18 = vadd.f32 1.0, %v3383_v55  ;;  %v3415_v21 = vand.u32 2147483648, %v3386_v16  ;;  %3660 = vmatpush.bf16.msra.mxu1 %v3977_v9 }
 0x501   :  { %v3390_v39 = vmul.f32 %v4254_v49, %v3385_v32  ;;  %vm3395_vm1 = vweird.f32 %v4254_v49  ;;  %v3413_v19 = vand.u32 2147483647, %v3386_v16  ;;  %vm3409_vm0 = vweird.f32 %v3386_v16 }
 0x502   :  { %v8414_v35 = vand.u32 2147483647, %v8411_v58  ;;  %4257 = vrcp.f32 %v3387_v18  ;;  %vm3396_vm11 = vmor %vm3394_vm8, %vm3395_vm1  ;;  %v3416_v10 = vor.u32 1.1754944e-38, %v3415_v21  ;;  %v3428_v24 = vand.u32 2147483647, %v3387_v18 }
 0x503   :  { %v3391_v30 = vsub.f32 1.0, %v3390_v39  ;;  %v3430_v60 = vand.u32 2147483648, %v3387_v18  ;;  %vm3414_vm9 = vcmp.eq.f32.partialorder %v3413_v19, 8.507059e+37  ;;  %vm3424_vm4 = vweird.f32 %v3387_v18 }
 0x504   :  { %v3384_v61 = vmul.f32 0.3275911, %v8414_v35  ;;  %vm3429_vm2 = vcmp.eq.f32.partialorder %v3428_v24, 8.507059e+37  ;;  %v3488_v21 = vmul.f32 %v8414_v35, %v8414_v35  ;;  %vm3509_vm1 = vcmp.lt.f32.partialorder %v8393_v50, 0.0 }
 0x505   :  { %v3392_v57 = vmul.f32 %v4254_v49, %v3391_v30  ;;  %v3431_v59 = vor.u32 1.1754944e-38, %v3430_v60  ;;  %vm3511_vm8 = vcmp.lt.f32.partialorder %v8405_v6, 0.0 }
 0x506   :  { %v4256_v44 = vpop.eup %4255  ;;  %v8417_v12 = vadd.f32 1.0, %v3384_v61  ;;  %v3492_v24 = vsub.f32 0.0, %v3488_v21 }
 0x507   :  { %v3393_v2 = vadd.f32 %v4254_v49, %v3392_v57  ;;  %v3405_v46 = vmul.f32 %v4256_v44, %v3386_v16  ;;  %vm3410_vm14 = vweird.f32 %v4256_v44  ;;  %v3495_v57 = vmul.f32 1.442695, %v3490_v1  ;;  %v3983_v1 = vld [vmem:[%s8518_s7 + $0x60] sm:$0xff] }
 0x508   :  { %4259 = vrcp.f32 %v8417_v12  ;;  %v4258_v15 = vpop.eup %4257  ;;  %vm3411_vm15 = vmor %vm3409_vm0, %vm3410_vm14  ;;  %v3443_v38 = vand.u32 2147483647, %v8417_v12  ;;  %v3445_v16 = vand.u32 2147483648, %v8417_v12  ;;  %vm3439_vm6 = vweird.f32 %v8417_v12 }
 0x509   :  { %v3397_v42 = vsel %vm3396_vm11, %v4254_v49, %v3393_v2  ;;  %v3406_v7 = vsub.f32 1.0, %v3405_v46  ;;  %v3420_v36 = vmul.f32 %v4258_v15, %v3387_v18  ;;  %vm3425_vm7 = vweird.f32 %v4258_v15 }
 0x50a   :  { %v8419_v25 = vsel %vm3399_vm13, %v3401_v3, %v3397_v42  ;;  %vm3426_vm3 = vmor %vm3424_vm4, %vm3425_vm7  ;;  %4261 = vpow2.f32 %v3493_v37  ;;  %v3446_v2 = vor.u32 1.1754944e-38, %v3445_v16  ;;  %v3976_v3 = vld [vmem:[%s8518_s7 + $0x28] sm:$0xff]  ;;  %v3491_v42 = vsub.f32 0.0, %v3487_v27 }
 0x50b   :  { %v3449_v31 = vmul.f32 1.0614054, %v8419_v25  ;;  %v3407_v17 = vmul.f32 %v4256_v44, %v3406_v7  ;;  %v3421_v51 = vsub.f32 1.0, %v3420_v36  ;;  %vm3444_vm12 = vcmp.eq.f32.partialorder %v3443_v38, 8.507059e+37  ;;  %3661 = vmatpush.bf16.msra.mxu1 %v3976_v3  ;;  %v3975_v36 = vld [vmem:[%s8518_s7 + $0x20] sm:$0xff]  ;;  %v3982_v38 = vld [vmem:[%s8518_s7 + $0x58] sm:$0xff] }
 0x50c   :  { %4263 = vpow2.f32 %v3495_v57  ;;  %v3981_v57 = vld [vmem:[%s8518_s7 + $0x50] sm:$0xff]  ;;  %vm3510_vm11 = vcmp.lt.f32.partialorder %v8399_v26, 0.0  ;;  %vm3512_vm13 = vcmp.lt.f32.partialorder %v8411_v58, 0.0  ;;  %v3996_v58 = vld [vmem:[%s8519_s8] ss:$0 sm:$0xff]  ;;  %s4303_s8 = smov 128  }
 0x50d   :  { %v3453_v56 = vadd.f32 -1.4531521, %v3449_v31  ;;  %v3408_v4 = vadd.f32 %v4256_v44, %v3407_v17  ;;  %v3422_v48 = vmul.f32 %v4258_v15, %v3421_v51 }
 0x50e   :  { %v4260_v34 = vpop.eup %4259 }
 0x50f   :  { %v3457_v43 = vmul.f32 %v3453_v56, %v8419_v25  ;;  %v3412_v63 = vsel %vm3411_vm15, %v4256_v44, %v3408_v4  ;;  %v3435_v45 = vmul.f32 %v4260_v34, %v8417_v12  ;;  %v3423_v8 = vadd.f32 %v4258_v15, %v3422_v48  ;;  %v3985_v12 = vld [vmem:[%s8518_s7 + $0x70] sm:$0xff]  ;;  %3662 = vmatpush.bf16.msra.mxu1 %v3975_v36  ;;  %v3979_v36 = vld [vmem:[%s8518_s7 + $0x40] sm:$0xff] }
 0x510   :  { %v8424_v14 = vsel %vm3414_vm9, %v3416_v10, %v3412_v63  ;;  %vm3440_vm5 = vweird.f32 %v4260_v34  ;;  %v4262_v56 = vpop.eup %4261  ;;  %v3497_v4 = vmul.f32 1.442695, %v3491_v42  ;;  %3674 = vmatpush.bf16.msra.mxu2 %v3985_v12  ;;  %v3980_v42 = vld [vmem:[%s8518_s7 + $0x48] sm:$0xff] }
 0x511   :  { %v3461_v28 = vadd.f32 1.4214138, %v3457_v43  ;;  %v3450_v41 = vmul.f32 1.0614054, %v8424_v14  ;;  %v3436_v32 = vsub.f32 1.0, %v3435_v45  ;;  %v3427_v5 = vsel %vm3426_vm3, %v4258_v15, %v3423_v8  ;;  %vm3441_vm10 = vmor %vm3439_vm6, %vm3440_vm5  ;;  %v3984_v43 = vld [vmem:[%s8518_s7 + $0x68] sm:$0xff] }
 0x512   :  { %v8434_v55 = vsel %vm3429_vm2, %v3431_v59, %v3427_v5  ;;  %4265 = vpow2.f32 %v3497_v4  ;;  %v3499_v8 = vmul.f32 1.442695, %v3492_v24  ;;  %v4264_v27 = vpop.eup %4263  ;;  %v3973_v59 = vld [vmem:[%s8518_s7 + $0x10] sm:$0xff] }
 0x513   :  { %v3465_v13 = vmul.f32 %v3461_v28, %v8419_v25  ;;  %v3454_v33 = vadd.f32 -1.4531521, %v3450_v41  ;;  %v3437_v39 = vmul.f32 %v4260_v34, %v3436_v32  ;;  %v3451_v30 = vmul.f32 1.0614054, %v8434_v55 }
 0x514   :  { %3675 = vmatpush.bf16.msra.mxu2 %v3984_v43  ;;  %4267 = vpow2.f32 %v3499_v8 }
 0x515   :  { %v3469_v49 = vadd.f32 -0.28449672, %v3465_v13  ;;  %v3458_v18 = vmul.f32 %v3454_v33, %v8424_v14  ;;  %v3438_v22 = vadd.f32 %v4260_v34, %v3437_v39  ;;  %v3455_v44 = vadd.f32 -1.4531521, %v3451_v30 }
 0x517   :  { %v3473_v52 = vmul.f32 %v3469_v49, %v8419_v25  ;;  %v3462_v61 = vadd.f32 1.4214138, %v3458_v18  ;;  %v3442_v29 = vsel %vm3441_vm10, %v4260_v34, %v3438_v22  ;;  %v3459_v15 = vmul.f32 %v3455_v44, %v8434_v55  ;;  %v3974_v34 = vld [vmem:[%s8518_s7 + $0x18] sm:$0xff]  ;;  %v3972_v18 = vld [vmem:[%s8518_s7 + $0x8] sm:$0xff]  ;;  %v3971_v44 = vld [vmem:[%s8518_s7] sm:$0xff] }
 0x518   :  { %v3447_v31 = vsel %vm3444_vm12, %v3446_v2, %v3442_v29  ;;  %3663 = vmatpush.bf16.msra.mxu1 %v3974_v34  ;;  %3676 = vmatpush.bf16.msra.mxu2 %v3983_v1  ;;  %v4266_v49 = vpop.eup %4265  ;;  %v3369_v29 = vmul.f32 0.5, %v8390_v11 }
 0x519   :  { %v3477_v46 = vadd.f32 0.2548296, %v3473_v52  ;;  %v3466_v7 = vmul.f32 %v3462_v61, %v8424_v14  ;;  %v3452_v19 = vmul.f32 1.0614054, %v3447_v31  ;;  %v3463_v37 = vadd.f32 1.4214138, %v3459_v15 }
 0x51a   :  { %v4268_v2 = vpop.eup %4267  ;;  %v3371_v15 = vmul.f32 0.5, %v8401_v53  ;;  %v3372_v53 = vmul.f32 0.5, %v8408_v0 }
 0x51b   :  { %v3481_v17 = vmul.f32 %v3477_v46, %v8419_v25  ;;  %v3470_v23 = vadd.f32 -0.28449672, %v3466_v7  ;;  %v3456_v51 = vadd.f32 -1.4531521, %v3452_v19  ;;  %v3467_v10 = vmul.f32 %v3463_v37, %v8434_v55 }
 0x51c   :  { %3664 = vmatpush.bf16.msra.mxu1 %v3973_v59  ;;  %3677 = vmatpush.bf16.msra.mxu2 %v3982_v38 }
 0x51d   :  { %v3501_v35 = vmul.f32 %v4262_v56, %v3481_v17  ;;  %v3474_v25 = vmul.f32 %v3470_v23, %v8424_v14  ;;  %v3460_v60 = vmul.f32 %v3456_v51, %v3447_v31  ;;  %v3471_v48 = vadd.f32 -0.28449672, %v3467_v10 }
 0x51e   :  { %v3370_v23 = vmul.f32 0.5, %v8396_v62 }
 0x51f   :  { %v3478_v63 = vadd.f32 0.2548296, %v3474_v25  ;;  %v3464_v28 = vadd.f32 1.4214138, %v3460_v60  ;;  %v3505_v45 = vsub.f32 1.0, %v3501_v35  ;;  %v3475_v41 = vmul.f32 %v3471_v48, %v8434_v55 }
 0x520   :  { %3665 = vmatpush.bf16.msra.mxu1 %v3972_v18  ;;  %3678 = vmatpush.bf16.msra.mxu2 %v3981_v57 }
 0x521   :  { %v3482_v54 = vmul.f32 %v3478_v63, %v8424_v14  ;;  %v3468_v13 = vmul.f32 %v3464_v28, %v3447_v31  ;;  %v3479_v33 = vadd.f32 0.2548296, %v3475_v41  ;;  %v3513_v16 = vsub.f32 0.0, %v3505_v45 }
 0x523   :  { %v3502_v32 = vmul.f32 %v4264_v27, %v3482_v54  ;;  %v3472_v5 = vadd.f32 -0.28449672, %v3468_v13  ;;  %v3483_v14 = vmul.f32 %v3479_v33, %v8434_v55  ;;  %v3517_v22 = vsel %vm3509_vm1, %v3513_v16, %v3505_v45 }
 0x524   :  { %v3521_v46 = vadd.f32 1.0, %v3517_v22  ;;  %3666 = vmatpush.bf16.msra.mxu1 %v3971_v44  ;;  %3679 = vmatpush.bf16.msra.mxu2 %v3980_v42 }
 0x525   :  { %v3506_v39 = vsub.f32 1.0, %v3502_v32  ;;  %v3476_v9 = vmul.f32 %v3472_v5, %v3447_v31  ;;  %v3503_v30 = vmul.f32 %v4266_v49, %v3483_v14 }
 0x526   :  { %v3525_v17 = vmul.f32 %v3521_v46, %v3369_v29 }
 0x527   :  { %v3480_v52 = vadd.f32 0.2548296, %v3476_v9  ;;  %v3507_v55 = vsub.f32 1.0, %v3503_v30  ;;  %v3514_v47 = vsub.f32 0.0, %v3506_v39 }
 0x528   :  { %3680 = vmatpush.bf16.msra.mxu2 %v3979_v36 }
 0x529   :  { %v3484_v61 = vmul.f32 %v3480_v52, %v3447_v31  ;;  %v3515_v3 = vsub.f32 0.0, %v3507_v55  ;;  %v3518_v7 = vsel %vm3510_vm11, %v3514_v47, %v3506_v39 }
 0x52a   :  { %v3522_v56 = vadd.f32 1.0, %v3518_v7 }
 0x52b   :  { %v3504_v50 = vmul.f32 %v4268_v2, %v3484_v61  ;;  %v3519_v12 = vsel %vm3511_vm8, %v3515_v3, %v3507_v55 }
 0x52c   :  { %v3523_v31 = vadd.f32 1.0, %v3519_v12  ;;  %v3526_v4 = vmul.f32 %v3522_v56, %v3370_v23 }
 0x52d   :  { %v3508_v21 = vsub.f32 1.0, %v3504_v50 }
 0x52e   :  { %v3527_v19 = vmul.f32 %v3523_v31, %v3371_v15 }
 0x52f   :  { %v3516_v6 = vsub.f32 0.0, %v3508_v21 }
 0x530   :  { %v3529_v11 = vpack.c.bf16 %v3527_v19, %v3525_v17 }
 0x531   :  { %v3520_v26 = vsel %vm3512_vm13, %v3516_v6, %v3508_v21 }
 0x532   :  { %v3524_v37 = vadd.f32 1.0, %v3520_v26  ;;  %3667 = vmatmul.bf16.vlgmr.msra.gmra.mxu1 %v3529_v11 }
 0x534   :  { %v3528_v51 = vmul.f32 %v3524_v37, %v3372_v53 }
 0x536   :  { %v3530_v43 = vpack.c.bf16 %v3528_v51, %v3526_v4 }
 0x538   :  { %3681 = vmatmul.bf16.vlgmr.msra.gmra.mxu2 %v3530_v43 }
 0x5af   :  { %v3668_v35 = vpop.f32.mrf.mxu1 }
 0x5b7   :  { %v3670_v62 = vpop.f32.mrf.mxu1 }
 0x5bb   :  { %v3682_v25 = vpop.f32.mrf.mxu2 }
 0x5bc   :  { %v3683_v10 = vadd.f32 %v3682_v25, %v3668_v35 }
 0x5be   :  { %v3687_v24 = vadd.f32 %v3683_v10, %v8381_v20 }
 0x5c0   :  { %v3693_v60 = vadd.f32 %v3996_v58, %v3687_v24 }
 0x5c2   :  { %3695 = vst [vmem:[#allocation2] sm:$0xff] %v3693_v60 }
 0x5c3   :  { %v3684_v0 = vpop.f32.mrf.mxu2 }
 0x5c4   :  { %v3685_v34 = vadd.f32 %v3684_v0, %v3670_v62 }
 0x5c6   :  { %v3688_v63 = vadd.f32 %v3685_v34, %v8383_v40 }
 0x5c8   :  { %v3694_v48 = vadd.f32 %v3996_v58, %v3688_v63 }
 0x5ca   :  { %3696 = vst [vmem:[#allocation2 + $0x8] sm:$0xff] %v3694_v48 }
 0x5cb   :  { %3709 = dma.vmem_to_hbm [thread:$0]  %s3702_s11, 256, %s3704_s13, [#allocation3], %s4303_s8, %s4303_s8, %s4304_s14  }
 0x5cc   :  { %4299 = dma.done.wait [#allocation3], 256  }
 0x5cd   :  { %4300 = vsyncadd [#allocation3], 4294967040 }
 0x5ce   :  { %3714 = vsyncpa [#allocation3], 1 }

</bundles_post_ra>
